<compile_context>
chip_gen: v5e
topology: v5e:2x2
jax: 0.10.0
libtpu: 0.0.40
codegen_flags: <defaults>
</compile_context>

<pallas_src>
import functools

import jax
import jax.numpy as jnp
from jax.experimental import pallas as pl
from jax.experimental.pallas import tpu as pltpu

# ----------------------------- configuration -----------------------------
IMG_CHANNELS = 3
IMAGE_SIZE = 16
PATCH = 4
GRID = IMAGE_SIZE // PATCH            # 4
NUM_TOKENS = GRID * GRID              # 16
PATCH_DIM = IMG_CHANNELS * PATCH * PATCH   # 48
D_MODEL = 32
NUM_HEADS = 4
HEAD_DIM = D_MODEL // NUM_HEADS       # 8
ENC_DEPTH = 2
MLP_RATIO = 4
NUM_SLOTS = 4
SLOT_SIZE = 32
SA_MLP_HIDDEN = 64
NUM_ITERS = 2
DEC_HIDDEN = 64
SA_EPS = 1e-8
S_TOK = NUM_TOKENS + 1                # 17 (CLS + patch tokens)
SLAB_WIDTH = 128                      # lane width of the packed parameter slab

F32 = jnp.float32


# ----------------------------- in-kernel helpers --------------------------
def _layernorm(x, g, b, eps=1e-5):
    mu = jnp.mean(x, axis=-1, keepdims=True)
    var = jnp.mean(jnp.square(x - mu), axis=-1, keepdims=True)
    return (x - mu) * jax.lax.rsqrt(var + eps) * g + b


def _erf(x):
    # Abramowitz & Stegun 7.1.26 rational approximation, |err| <= 1.5e-7.
    # Mosaic has no erf primitive; exp/VPU ops only.
    a1, a2, a3, a4, a5 = (0.254829592, -0.284496736, 1.421413741,
                          -1.453152027, 1.061405429)
    p = 0.3275911
    ax = jnp.abs(x)
    t = 1.0 / (1.0 + p * ax)
    poly = ((((a5 * t + a4) * t + a3) * t + a2) * t + a1) * t
    y = 1.0 - poly * jnp.exp(-ax * ax)
    return jnp.where(x >= 0.0, y, -y)


def _gelu_exact(x):
    # matches PyTorch nn.GELU() default (exact erf form) to f32 precision.
    return 0.5 * x * (1.0 + _erf(x * 0.7071067811865476))


def _softmax_last(x):
    # softmax over the last axis; divide replaced by EUP approx-reciprocal.
    m = jnp.max(x, axis=-1, keepdims=True)
    e = jnp.exp(x - m)
    return e * pl.reciprocal(jnp.sum(e, axis=-1, keepdims=True), approx=True)


def _slab(slab_ref, offs, name):
    o, r, c = offs[name]            # static python ints -> static slice
    return slab_ref[o:o + r, 0:c]


# ------------------------------ parameter packing --------------------------
def _pack_params(params):
    """Pack every weight / bias / LN param into one (rows, 128) f32 slab."""
    entries = []

    def add(name, arr):
        a = jnp.asarray(arr, F32)
        if a.ndim == 1:
            a = a.reshape(1, -1)
        entries.append((name, a))

    enc = params['enc']
    add('patch_w', enc['patch_w'])
    add('patch_b', enc['patch_b'])
    add('cls', enc['cls_token'].reshape(1, D_MODEL))
    add('pos', enc['pos_embed'].reshape(S_TOK, D_MODEL))
    for i, blk in enumerate(enc['blocks']):
        for key in ('ln1_g', 'ln1_b', 'qkv_w', 'qkv_b', 'proj_w', 'proj_b',
                    'ln2_g', 'ln2_b', 'fc1_w', 'fc1_b', 'fc2_w', 'fc2_b'):
            add(f'b{i}_{key}', blk[key])
    add('norm_g', enc['norm_g'])
    add('norm_b', enc['norm_b'])

    psa = params['slot_attn']
    sa = psa['sa']
    add('sa_ln_g', psa['ln_g'])
    add('sa_ln_b', psa['ln_b'])
    add('sa_mlp0_w1', psa['mlp_w1'])
    add('sa_mlp0_b1', psa['mlp_b1'])
    add('sa_mlp0_w2', psa['mlp_w2'])
    add('sa_mlp0_b2', psa['mlp_b2'])
    add('slots_emb', psa['slots_emb'])
    add('nin_g', sa['norm_in_g'])
    add('nin_b', sa['norm_in_b'])
    add('k_w', sa['k_w'])
    add('v_w', sa['v_w'])
    add('q_w', sa['q_w'])
    add('ns_g', sa['norm_s_g'])
    add('ns_b', sa['norm_s_b'])
    add('gru_wi', sa['gru_wi'])
    add('gru_bi', sa['gru_bi'])
    add('gru_wh', sa['gru_wh'])
    add('gru_bh', sa['gru_bh'])
    add('nm_g', sa['norm_m_g'])
    add('nm_b', sa['norm_m_b'])
    add('smlp_w1', sa['mlp_w1'])
    add('smlp_b1', sa['mlp_b1'])
    add('smlp_w2', sa['mlp_w2'])
    add('smlp_b2', sa['mlp_b2'])

    dec = params['dec']
    add('proj_w', params['slot_proj_w'])
    add('pln_g', params['slot_proj_ln_g'])
    add('pln_b', params['slot_proj_ln_b'])
    add('dec_pos', dec['pos_embed'])
    add('dec_w1', dec['w1'])
    add('dec_b1', dec['b1'])
    add('dec_w2', dec['w2'])
    add('dec_b2', dec['b2'])
    add('dec_w3', dec['w3'])
    add('dec_b3', dec['b3'])

    offs = {}
    blocks = []
    cursor = 0
    for name, a in entries:
        r, c = a.shape
        r_pad = -(-r // 8) * 8                       # 8-aligned row offsets
        blocks.append(jnp.pad(a, ((0, r_pad - r), (0, SLAB_WIDTH - c))))
        offs[name] = (cursor, r, c)
        cursor += r_pad
    slab = jnp.concatenate(blocks, axis=0)           # (rows, 128) f32
    return slab, offs


# ------------------------------ fused kernel --------------------------------
def _spot_kernel(offs, patches_ref, slab_ref,
                 slots_ref, attn_t_ref, logits_ref,
                 recon_ref, masks_ref, loss_ref):
    g = lambda name: _slab(slab_ref, offs, name)

    # ---------------- ViT encoder (patch embed + blocks + final LN) ---------
    tok = jnp.dot(patches_ref[0], g('patch_w'),
                  preferred_element_type=F32) + g('patch_b')          # (N, D)
    x = jnp.concatenate([g('cls'), tok], axis=0) + g('pos')           # (N+1, D)

    scale = HEAD_DIM ** -0.5
    for i in range(ENC_DEPTH):
        pf = f'b{i}_'
        h = _layernorm(x, g(pf + 'ln1_g'), g(pf + 'ln1_b'))
        qkv = (jnp.dot(h, g(pf + 'qkv_w'), preferred_element_type=F32)
               + g(pf + 'qkv_b'))                                     # (N+1, 3D)
        # head-major stacks (H, N+1, hd): all heads share one batched matmul
        # pair and ONE softmax (flash-style 'bqd,bkd->bqk' pattern).
        qh = jnp.stack([qkv[:, hh * HEAD_DIM:(hh + 1) * HEAD_DIM]
                        for hh in range(NUM_HEADS)], axis=0)
        kh = jnp.stack(
            [qkv[:, D_MODEL + hh * HEAD_DIM:D_MODEL + (hh + 1) * HEAD_DIM]
             for hh in range(NUM_HEADS)], axis=0)
        vh = jnp.stack(
            [qkv[:, 2 * D_MODEL + hh * HEAD_DIM:
                 2 * D_MODEL + (hh + 1) * HEAD_DIM]
             for hh in range(NUM_HEADS)], axis=0)
        s = jnp.einsum('hnd,hmd->hnm', qh, kh,
                       preferred_element_type=F32) * scale            # (H,N+1,N+1)
        p = _softmax_last(s)
        o = jnp.einsum('hnm,hmd->hnd', p, vh,
                       preferred_element_type=F32)                    # (H,N+1,hd)
        pw = g(pf + 'proj_w')
        attn_out = jnp.zeros_like(x)
        for hh in range(NUM_HEADS):
            # per-head row-block of the output projection (sum == concat+proj)
            attn_out = attn_out + jnp.dot(
                o[hh], pw[hh * HEAD_DIM:(hh + 1) * HEAD_DIM, :],
                preferred_element_type=F32)
        x = x + attn_out + g(pf + 'proj_b')

        h2 = _layernorm(x, g(pf + 'ln2_g'), g(pf + 'ln2_b'))
        y = _gelu_exact(jnp.dot(h2, g(pf + 'fc1_w'),
                                preferred_element_type=F32) + g(pf + 'fc1_b'))
        x = x + jnp.dot(y, g(pf + 'fc2_w'),
                        preferred_element_type=F32) + g(pf + 'fc2_b')

    x = _layernorm(x, g('norm_g'), g('norm_b'))
    emb = x[1:, :]     # drop CLS (offset=1) -> (N, D); emb_input == emb_target

    # ---------------- slot-attention encoder --------------------------------
    z = _layernorm(emb, g('sa_ln_g'), g('sa_ln_b'))
    z = jnp.maximum(jnp.dot(z, g('sa_mlp0_w1'),
                            preferred_element_type=F32) + g('sa_mlp0_b1'), 0.0)
    z = jnp.dot(z, g('sa_mlp0_w2'), preferred_element_type=F32) + g('sa_mlp0_b2')

    inputs = _layernorm(z, g('nin_g'), g('nin_b'))
    k_sa = jnp.dot(inputs, g('k_w'),
                   preferred_element_type=F32) * (SLOT_SIZE ** -0.5)  # (N, S)
    v_sa = jnp.dot(inputs, g('v_w'), preferred_element_type=F32)      # (N, S)

    # hoist loop-invariant parameter loads (JAX does not CSE re-loads)
    ns_g, ns_b = g('ns_g'), g('ns_b')
    q_w = g('q_w')
    gru_wi, gru_bi = g('gru_wi'), g('gru_bi')
    gru_wh, gru_bh = g('gru_wh'), g('gru_bh')
    nm_g, nm_b = g('nm_g'), g('nm_b')
    smlp_w1, smlp_b1 = g('smlp_w1'), g('smlp_b1')
    smlp_w2, smlp_b2 = g('smlp_w2'), g('smlp_b2')

    slots = g('slots_emb')                                            # (K, S)
    attn = None
    logits = None
    Hs = SLOT_SIZE
    for _ in range(NUM_ITERS):
        slots_prev = slots
        sn = _layernorm(slots, ns_g, ns_b)
        q_s = jnp.dot(sn, q_w, preferred_element_type=F32)            # (K, S)
        logits = jnp.dot(k_sa, q_s.T, preferred_element_type=F32)     # (N, K)
        attn = _softmax_last(logits)                                  # over slots
        w = attn + SA_EPS
        w = w * pl.reciprocal(jnp.sum(w, axis=0, keepdims=True), approx=True)
        updates = jnp.dot(w.T, v_sa, preferred_element_type=F32)      # (K, S)

        # GRU cell (torch.nn.GRUCell gate order r,z,n)
        xw = jnp.dot(updates, gru_wi, preferred_element_type=F32) + gru_bi
        hw = jnp.dot(slots_prev, gru_wh, preferred_element_type=F32) + gru_bh
        r = jax.nn.sigmoid(xw[:, :Hs] + hw[:, :Hs])
        u = jax.nn.sigmoid(xw[:, Hs:2 * Hs] + hw[:, Hs:2 * Hs])
        n = jnp.tanh(xw[:, 2 * Hs:] + r * hw[:, 2 * Hs:])
        slots = (1.0 - u) * n + u * slots_prev

        # slot MLP (residual)
        mn = _layernorm(slots, nm_g, nm_b)
        hid = jnp.maximum(jnp.dot(mn, smlp_w1,
                                  preferred_element_type=F32) + smlp_b1, 0.0)
        slots = slots + jnp.dot(hid, smlp_w2,
                                preferred_element_type=F32) + smlp_b2

    slots_ref[0] = slots
    attn_t_ref[0] = attn.T                                            # (K, N)
    logits_ref[0] = logits                                            # (N, K)

    # ---------------- MLP decoder + alpha mixture + SSE ----------------------
    sp = jnp.dot(slots, g('proj_w'), preferred_element_type=F32)      # (K, D)
    sp = _layernorm(sp, g('pln_g'), g('pln_b'))
    pos_d = g('dec_pos')                                              # (N, D)
    xd = (sp[:, None, :] + pos_d[None, :, :]).reshape(
        NUM_SLOTS * NUM_TOKENS, D_MODEL)                              # (K*N, D)
    hd1 = jnp.maximum(jnp.dot(xd, g('dec_w1'),
                              preferred_element_type=F32) + g('dec_b1'), 0.0)
    hd2 = jnp.maximum(jnp.dot(hd1, g('dec_w2'),
                              preferred_element_type=F32) + g('dec_b2'), 0.0)
    out = jnp.dot(hd2, g('dec_w3'),
                  preferred_element_type=F32) + g('dec_b3')           # (K*N, D+1)
    out3 = out.reshape(NUM_SLOTS, NUM_TOKENS, D_MODEL + 1)
    imgs = out3[:, :, :D_MODEL]                                       # (K, N, D)
    alpha = out3[:, :, D_MODEL:D_MODEL + 1]                           # (K, N, 1)
    am = jnp.max(alpha, axis=0, keepdims=True)                        # over slots
    ae = jnp.exp(alpha - am)
    m3 = ae * pl.reciprocal(jnp.sum(ae, axis=0, keepdims=True), approx=True)
    recon = jnp.sum(m3 * imgs, axis=0)                                # (N, D)

    recon_ref[0] = recon
    masks_ref[0] = m3                                                 # (K, N, 1)
    d = emb - recon
    loss_ref[0] = jnp.sum(jnp.sum(d * d, axis=-1, keepdims=True),
                          axis=0, keepdims=True)                      # (1, 1)


# --------------------------------- forward ----------------------------------
def spot_forward(offs, slab, image):
    """Full SPOT forward: ONE fused pallas_call gridded over the batch."""
    B = image.shape[0]
    # patch-embedding "conv" (kernel = stride = PATCH) == extraction + matmul
    patches = image.reshape(B, IMG_CHANNELS, GRID, PATCH, GRID, PATCH)
    patches = jnp.transpose(patches, (0, 2, 4, 1, 3, 5)).reshape(
        B, NUM_TOKENS, PATCH_DIM)

    kern = functools.partial(_spot_kernel, offs)
    out_shape = (
        jax.ShapeDtypeStruct((B, NUM_SLOTS, SLOT_SIZE), F32),       # slots
        jax.ShapeDtypeStruct((B, NUM_SLOTS, NUM_TOKENS), F32),      # slot attn^T
        jax.ShapeDtypeStruct((B, NUM_TOKENS, NUM_SLOTS), F32),      # attn logits
        jax.ShapeDtypeStruct((B, NUM_TOKENS, D_MODEL), F32),        # dec recon
        jax.ShapeDtypeStruct((B, NUM_SLOTS, NUM_TOKENS, 1), F32),   # dec masks
        jax.ShapeDtypeStruct((B, 1, 1), F32),                       # per-image SSE
    )
    out_specs = (
        pl.BlockSpec((1, NUM_SLOTS, SLOT_SIZE), lambda b: (b, 0, 0)),
        pl.BlockSpec((1, NUM_SLOTS, NUM_TOKENS), lambda b: (b, 0, 0)),
        pl.BlockSpec((1, NUM_TOKENS, NUM_SLOTS), lambda b: (b, 0, 0)),
        pl.BlockSpec((1, NUM_TOKENS, D_MODEL), lambda b: (b, 0, 0)),
        pl.BlockSpec((1, NUM_SLOTS, NUM_TOKENS, 1), lambda b: (b, 0, 0, 0)),
        pl.BlockSpec((1, 1, 1), lambda b: (b, 0, 0)),
    )
    in_specs = [
        pl.BlockSpec((1, NUM_TOKENS, PATCH_DIM), lambda b: (b, 0, 0)),
        # one resident parameter slab (constant block across the grid)
        pl.BlockSpec(slab.shape, lambda b: (0, 0)),
    ]
    slots, attn_t, logits, recon, masks, sse = pl.pallas_call(
        kern,
        out_shape=out_shape,
        grid=(B,),
        in_specs=in_specs,
        out_specs=out_specs,
        compiler_params=pltpu.CompilerParams(
            dimension_semantics=("parallel",)),
    )(patches, slab)

    loss_mse = jnp.sum(sse) / (B * GRID * GRID * D_MODEL)
    slots_attns = attn_t.reshape(B, NUM_SLOTS, GRID, GRID)
    dec_slots_attns = masks.reshape(B, NUM_SLOTS, GRID, GRID)
    # TODO(synk): reference computes input_proj(cat(bos, emb_target[:, :-1]))
    # but it is unused by the MLP-decoder output path, so it is omitted.
    # attn_logits.squeeze() is a no-op for B>=2; keep explicit (B, N, K).
    return loss_mse, slots_attns, dec_slots_attns, slots, recon, logits


# ---------------------------- deterministic init ----------------------------
def init_params(seed=0):
    keys = iter(jax.random.split(jax.random.PRNGKey(seed), 128))

    def dense(shape):
        return jax.random.normal(next(keys), shape, F32) * (shape[0] ** -0.5)

    def small(shape, std=0.02):
        return jax.random.normal(next(keys), shape, F32) * std

    zeros = lambda s: jnp.zeros(s, F32)
    ones = lambda s: jnp.ones(s, F32)

    blocks = []
    for _ in range(ENC_DEPTH):
        blocks.append(dict(
            ln1_g=ones((D_MODEL,)), ln1_b=zeros((D_MODEL,)),
            qkv_w=dense((D_MODEL, 3 * D_MODEL)), qkv_b=zeros((3 * D_MODEL,)),
            proj_w=dense((D_MODEL, D_MODEL)), proj_b=zeros((D_MODEL,)),
            ln2_g=ones((D_MODEL,)), ln2_b=zeros((D_MODEL,)),
            fc1_w=dense((D_MODEL, MLP_RATIO * D_MODEL)),
            fc1_b=zeros((MLP_RATIO * D_MODEL,)),
            fc2_w=dense((MLP_RATIO * D_MODEL, D_MODEL)),
            fc2_b=zeros((D_MODEL,)),
        ))
    enc = dict(
        patch_w=dense((PATCH_DIM, D_MODEL)),
        patch_b=zeros((D_MODEL,)),
        cls_token=small((1, 1, D_MODEL)),
        pos_embed=small((1, S_TOK, D_MODEL)),
        blocks=blocks,
        norm_g=ones((D_MODEL,)), norm_b=zeros((D_MODEL,)),
    )
    sa = dict(
        norm_in_g=ones((D_MODEL,)), norm_in_b=zeros((D_MODEL,)),
        norm_s_g=ones((SLOT_SIZE,)), norm_s_b=zeros((SLOT_SIZE,)),
        norm_m_g=ones((SLOT_SIZE,)), norm_m_b=zeros((SLOT_SIZE,)),
        q_w=dense((SLOT_SIZE, SLOT_SIZE)),
        k_w=dense((D_MODEL, SLOT_SIZE)),
        v_w=dense((D_MODEL, SLOT_SIZE)),
        gru_wi=dense((SLOT_SIZE, 3 * SLOT_SIZE)), gru_bi=zeros((3 * SLOT_SIZE,)),
        gru_wh=dense((SLOT_SIZE, 3 * SLOT_SIZE)), gru_bh=zeros((3 * SLOT_SIZE,)),
        mlp_w1=dense((SLOT_SIZE, SA_MLP_HIDDEN)), mlp_b1=zeros((SA_MLP_HIDDEN,)),
        mlp_w2=dense((SA_MLP_HIDDEN, SLOT_SIZE)), mlp_b2=zeros((SLOT_SIZE,)),
    )
    slot_attn = dict(
        ln_g=ones((D_MODEL,)), ln_b=zeros((D_MODEL,)),
        mlp_w1=dense((D_MODEL, D_MODEL)), mlp_b1=zeros((D_MODEL,)),
        mlp_w2=dense((D_MODEL, D_MODEL)), mlp_b2=zeros((D_MODEL,)),
        slots_emb=small((NUM_SLOTS, SLOT_SIZE)),
        sa=sa,
    )
    dec = dict(
        pos_embed=small((NUM_TOKENS, D_MODEL)),
        w1=dense((D_MODEL, DEC_HIDDEN)), b1=zeros((DEC_HIDDEN,)),
        w2=dense((DEC_HIDDEN, DEC_HIDDEN)), b2=zeros((DEC_HIDDEN,)),
        w3=dense((DEC_HIDDEN, D_MODEL + 1)), b3=zeros((D_MODEL + 1,)),
    )
    return dict(
        enc=enc,
        slot_attn=slot_attn,
        slot_proj_w=dense((SLOT_SIZE, D_MODEL)),
        slot_proj_ln_g=ones((D_MODEL,)), slot_proj_ln_b=zeros((D_MODEL,)),
        bos_tokens=small((1, 1, 1, D_MODEL)),  # present in reference; unused by MLP decoder path
        dec=dec,
    )


# --------------------------------- main --------------------------------------
if __name__ == "__main__":
    params = init_params(0)
    slab, offs = _pack_params(params)      # pack once, outside the hot path

    key = jax.random.PRNGKey(0)
    image = jax.random.uniform(key, (2, IMG_CHANNELS, IMAGE_SIZE, IMAGE_SIZE), F32)

    fwd = jax.jit(functools.partial(spot_forward, offs))
    outs = jax.block_until_ready(fwd(slab, image))
    loss_mse, slots_attns, dec_slots_attns, slots, dec_recon, attn_logits = outs

    assert loss_mse.shape == ()
    assert slots_attns.shape == (2, NUM_SLOTS, GRID, GRID)
    assert dec_slots_attns.shape == (2, NUM_SLOTS, GRID, GRID)
    assert slots.shape == (2, NUM_SLOTS, SLOT_SIZE)
    assert dec_recon.shape == (2, NUM_TOKENS, D_MODEL)
    assert attn_logits.shape == (2, NUM_TOKENS, NUM_SLOTS)
    assert bool(jnp.isfinite(loss_mse))
    print("KERNEL_OK")
</pallas_src>

<mosaic_0001>
module attributes {stable_mosaic.version = 11 : i64} {
  func.func @_spot_kernel(%arg0: i32, %arg1: memref<1x16x48xf32, #tpu.memory_space<vmem>>, %arg2: memref<1368x128xf32, #tpu.memory_space<vmem>>, %arg3: memref<1x4x32xf32, #tpu.memory_space<vmem>>, %arg4: memref<1x4x16xf32, #tpu.memory_space<vmem>>, %arg5: memref<1x16x4xf32, #tpu.memory_space<vmem>>, %arg6: memref<1x16x32xf32, #tpu.memory_space<vmem>>, %arg7: memref<1x4x16x1xf32, #tpu.memory_space<vmem>>, %arg8: memref<1x1x1xf32, #tpu.memory_space<vmem>>) attributes {dimension_semantics = [#tpu.dimension_semantics<parallel>], iteration_bounds = array<i64: 2>, scalar_prefetch = 0 : i64, scratch_operands = 0 : i64, tpu.core_type = #tpu.core_type<tc>, window_params = [{transform_indices = @transform_0, window_bounds = array<i64: 1, 16, 48>}, {pipeline_mode = #tpu.pipeline_mode<synchronous>, transform_indices = @transform_1, window_bounds = array<i64: 1368, 128>}, {transform_indices = @transform_2, window_bounds = array<i64: 1, 4, 32>}, {transform_indices = @transform_3, window_bounds = array<i64: 1, 4, 16>}, {transform_indices = @transform_4, window_bounds = array<i64: 1, 16, 4>}, {transform_indices = @transform_5, window_bounds = array<i64: 1, 16, 32>}, {transform_indices = @transform_6, window_bounds = array<i64: 1, 4, 16, 1>}, {transform_indices = @transform_7, window_bounds = array<i64: 1, 1, 1>}]} {
    %c0 = arith.constant 0 : index
    %c0_0 = arith.constant 0 : index
    %c0_1 = arith.constant 0 : index
    %0 = vector.load %arg1[%c0, %c0_0, %c0_1] : memref<1x16x48xf32, #tpu.memory_space<vmem>>, vector<1x16x48xf32>
    %1 = vector.shape_cast %0 : vector<1x16x48xf32> to vector<16x48xf32>
    %c0_2 = arith.constant 0 : index
    %c0_3 = arith.constant 0 : index
    %2 = vector.load %arg2[%c0_2, %c0_3] : memref<1368x128xf32, #tpu.memory_space<vmem>>, vector<48x32xf32>
    %cst = arith.constant dense<0.000000e+00> : vector<16x32xf32>
    %3 = tpu.matmul %1, %2, %cst {dimension_numbers = #tpu.dot_dimension_numbers<[1], [0], [0], [1], [0, 0, 1, 1], [], []>} : vector<16x48xf32>, vector<48x32xf32>, vector<16x32xf32> -> vector<16x32xf32>
    %c48 = arith.constant 48 : index
    %c0_4 = arith.constant 0 : index
    %4 = vector.load %arg2[%c48, %c0_4] : memref<1368x128xf32, #tpu.memory_space<vmem>>, vector<1x32xf32>
    %5 = vector.broadcast %4 : vector<1x32xf32> to vector<16x32xf32>
    %6 = arith.addf %3, %5 : vector<16x32xf32>
    %c56 = arith.constant 56 : index
    %c0_5 = arith.constant 0 : index
    %7 = vector.load %arg2[%c56, %c0_5] : memref<1368x128xf32, #tpu.memory_space<vmem>>, vector<1x32xf32>
    %8 = tpu.concatenate %7, %6 in 0 : vector<1x32xf32>, vector<16x32xf32> -> vector<17x32xf32>
    %c64 = arith.constant 64 : index
    %c0_6 = arith.constant 0 : index
    %9 = vector.load %arg2[%c64, %c0_6] : memref<1368x128xf32, #tpu.memory_space<vmem>>, vector<17x32xf32>
    %10 = arith.addf %8, %9 : vector<17x32xf32>
    %c88 = arith.constant 88 : index
    %c0_7 = arith.constant 0 : index
    %11 = vector.load %arg2[%c88, %c0_7] : memref<1368x128xf32, #tpu.memory_space<vmem>>, vector<1x32xf32>
    %c96 = arith.constant 96 : index
    %c0_8 = arith.constant 0 : index
    %12 = vector.load %arg2[%c96, %c0_8] : memref<1368x128xf32, #tpu.memory_space<vmem>>, vector<1x32xf32>
    %cst_9 = arith.constant dense<0.000000e+00> : vector<17xf32>
    %13 = vector.multi_reduction <add>, %10, %cst_9 [1] : vector<17x32xf32> to vector<17xf32>
    %14 = vector.shape_cast %13 : vector<17xf32> to vector<17x1xf32>
    %cst_10 = arith.constant 3.200000e+01 : f32
    %15 = vector.broadcast %cst_10 : f32 to vector<17x1xf32>
    %16 = arith.divf %14, %15 : vector<17x1xf32>
    %17 = vector.broadcast %16 : vector<17x1xf32> to vector<17x32xf32>
    %18 = arith.subf %10, %17 : vector<17x32xf32>
    %19 = arith.mulf %18, %18 : vector<17x32xf32>
    %cst_11 = arith.constant dense<0.000000e+00> : vector<17xf32>
    %20 = vector.multi_reduction <add>, %19, %cst_11 [1] : vector<17x32xf32> to vector<17xf32>
    %21 = vector.shape_cast %20 : vector<17xf32> to vector<17x1xf32>
    %cst_12 = arith.constant 3.200000e+01 : f32
    %22 = vector.broadcast %cst_12 : f32 to vector<17x1xf32>
    %23 = arith.divf %21, %22 : vector<17x1xf32>
    %24 = vector.broadcast %16 : vector<17x1xf32> to vector<17x32xf32>
    %25 = arith.subf %10, %24 : vector<17x32xf32>
    %cst_13 = arith.constant 9.99999974E-6 : f32
    %26 = vector.broadcast %cst_13 : f32 to vector<17x1xf32>
    %27 = arith.addf %23, %26 : vector<17x1xf32>
    %28 = math.rsqrt %27 : vector<17x1xf32>
    %29 = vector.broadcast %28 : vector<17x1xf32> to vector<17x32xf32>
    %30 = arith.mulf %25, %29 : vector<17x32xf32>
    %31 = vector.broadcast %11 : vector<1x32xf32> to vector<17x32xf32>
    %32 = arith.mulf %30, %31 : vector<17x32xf32>
    %33 = vector.broadcast %12 : vector<1x32xf32> to vector<17x32xf32>
    %34 = arith.addf %32, %33 : vector<17x32xf32>
    %c104 = arith.constant 104 : index
    %c0_14 = arith.constant 0 : index
    %35 = vector.load %arg2[%c104, %c0_14] : memref<1368x128xf32, #tpu.memory_space<vmem>>, vector<32x96xf32>
    %cst_15 = arith.constant dense<0.000000e+00> : vector<17x96xf32>
    %36 = tpu.matmul %34, %35, %cst_15 {dimension_numbers = #tpu.dot_dimension_numbers<[1], [0], [0], [1], [0, 0, 1, 1], [], []>} : vector<17x32xf32>, vector<32x96xf32>, vector<17x96xf32> -> vector<17x96xf32>
    %c136 = arith.constant 136 : index
    %c0_16 = arith.constant 0 : index
    %37 = vector.load %arg2[%c136, %c0_16] : memref<1368x128xf32, #tpu.memory_space<vmem>>, vector<1x96xf32>
    %38 = vector.broadcast %37 : vector<1x96xf32> to vector<17x96xf32>
    %39 = arith.addf %36, %38 : vector<17x96xf32>
    %40 = vector.extract_strided_slice %39 {offsets = [0, 0], sizes = [17, 8], strides = [1, 1]} : vector<17x96xf32> to vector<17x8xf32>
    %41 = vector.extract_strided_slice %39 {offsets = [0, 8], sizes = [17, 8], strides = [1, 1]} : vector<17x96xf32> to vector<17x8xf32>
    %42 = vector.extract_strided_slice %39 {offsets = [0, 16], sizes = [17, 8], strides = [1, 1]} : vector<17x96xf32> to vector<17x8xf32>
    %43 = vector.extract_strided_slice %39 {offsets = [0, 24], sizes = [17, 8], strides = [1, 1]} : vector<17x96xf32> to vector<17x8xf32>
    %44 = vector.shape_cast %40 : vector<17x8xf32> to vector<1x17x8xf32>
    %45 = vector.shape_cast %41 : vector<17x8xf32> to vector<1x17x8xf32>
    %46 = vector.shape_cast %42 : vector<17x8xf32> to vector<1x17x8xf32>
    %47 = vector.shape_cast %43 : vector<17x8xf32> to vector<1x17x8xf32>
    %48 = tpu.concatenate %44, %45, %46, %47 in 0 : vector<1x17x8xf32>, vector<1x17x8xf32>, vector<1x17x8xf32>, vector<1x17x8xf32> -> vector<4x17x8xf32>
    %49 = vector.extract_strided_slice %39 {offsets = [0, 32], sizes = [17, 8], strides = [1, 1]} : vector<17x96xf32> to vector<17x8xf32>
    %50 = vector.extract_strided_slice %39 {offsets = [0, 40], sizes = [17, 8], strides = [1, 1]} : vector<17x96xf32> to vector<17x8xf32>
    %51 = vector.extract_strided_slice %39 {offsets = [0, 48], sizes = [17, 8], strides = [1, 1]} : vector<17x96xf32> to vector<17x8xf32>
    %52 = vector.extract_strided_slice %39 {offsets = [0, 56], sizes = [17, 8], strides = [1, 1]} : vector<17x96xf32> to vector<17x8xf32>
    %53 = vector.shape_cast %49 : vector<17x8xf32> to vector<1x17x8xf32>
    %54 = vector.shape_cast %50 : vector<17x8xf32> to vector<1x17x8xf32>
    %55 = vector.shape_cast %51 : vector<17x8xf32> to vector<1x17x8xf32>
    %56 = vector.shape_cast %52 : vector<17x8xf32> to vector<1x17x8xf32>
    %57 = tpu.concatenate %53, %54, %55, %56 in 0 : vector<1x17x8xf32>, vector<1x17x8xf32>, vector<1x17x8xf32>, vector<1x17x8xf32> -> vector<4x17x8xf32>
    %58 = vector.extract_strided_slice %39 {offsets = [0, 64], sizes = [17, 8], strides = [1, 1]} : vector<17x96xf32> to vector<17x8xf32>
    %59 = vector.extract_strided_slice %39 {offsets = [0, 72], sizes = [17, 8], strides = [1, 1]} : vector<17x96xf32> to vector<17x8xf32>
    %60 = vector.extract_strided_slice %39 {offsets = [0, 80], sizes = [17, 8], strides = [1, 1]} : vector<17x96xf32> to vector<17x8xf32>
    %61 = vector.extract_strided_slice %39 {offsets = [0, 88], sizes = [17, 8], strides = [1, 1]} : vector<17x96xf32> to vector<17x8xf32>
    %62 = vector.shape_cast %58 : vector<17x8xf32> to vector<1x17x8xf32>
    %63 = vector.shape_cast %59 : vector<17x8xf32> to vector<1x17x8xf32>
    %64 = vector.shape_cast %60 : vector<17x8xf32> to vector<1x17x8xf32>
    %65 = vector.shape_cast %61 : vector<17x8xf32> to vector<1x17x8xf32>
    %66 = tpu.concatenate %62, %63, %64, %65 in 0 : vector<1x17x8xf32>, vector<1x17x8xf32>, vector<1x17x8xf32>, vector<1x17x8xf32> -> vector<4x17x8xf32>
    "tpu.trace_start"() <{level = 10 : i32, message = "hnd,hmd->hnm"}> : () -> ()
    %cst_17 = arith.constant dense<0.000000e+00> : vector<4x17x17xf32>
    %67 = tpu.matmul %48, %57, %cst_17 {dimension_numbers = #tpu.dot_dimension_numbers<[2], [2], [1], [1], [0, 0, 0, 1, 1, 1], [0], [0]>} : vector<4x17x8xf32>, vector<4x17x8xf32>, vector<4x17x17xf32> -> vector<4x17x17xf32>
    "tpu.trace_stop"() : () -> ()
    %cst_18 = arith.constant 0.353553385 : f32
    %68 = vector.broadcast %cst_18 : f32 to vector<4x17x17xf32>
    %69 = arith.mulf %67, %68 : vector<4x17x17xf32>
    %cst_19 = arith.constant dense<0xFF800000> : vector<4x17xf32>
    %70 = vector.multi_reduction <maximumf>, %69, %cst_19 [2] : vector<4x17x17xf32> to vector<4x17xf32>
    %71 = vector.shape_cast %70 : vector<4x17xf32> to vector<4x17x1xf32>
    %72 = vector.broadcast %71 : vector<4x17x1xf32> to vector<4x17x17xf32>
    %73 = arith.subf %69, %72 : vector<4x17x17xf32>
    %74 = math.exp %73 : vector<4x17x17xf32>
    %cst_20 = arith.constant dense<0.000000e+00> : vector<4x17xf32>
    %75 = vector.multi_reduction <add>, %74, %cst_20 [2] : vector<4x17x17xf32> to vector<4x17xf32>
    %76 = vector.shape_cast %75 : vector<4x17xf32> to vector<4x17x1xf32>
    %77 = tpu.reciprocal %76 {approx = true} : vector<4x17x1xf32> -> vector<4x17x1xf32>
    %78 = vector.broadcast %77 : vector<4x17x1xf32> to vector<4x17x17xf32>
    %79 = arith.mulf %74, %78 : vector<4x17x17xf32>
    "tpu.trace_start"() <{level = 10 : i32, message = "hnm,hmd->hnd"}> : () -> ()
    %cst_21 = arith.constant dense<0.000000e+00> : vector<4x17x8xf32>
    %80 = tpu.matmul %79, %66, %cst_21 {dimension_numbers = #tpu.dot_dimension_numbers<[2], [1], [1], [2], [0, 0, 0, 1, 1, 2], [0], [0]>} : vector<4x17x17xf32>, vector<4x17x8xf32>, vector<4x17x8xf32> -> vector<4x17x8xf32>
    "tpu.trace_stop"() : () -> ()
    %c144 = arith.constant 144 : index
    %c0_22 = arith.constant 0 : index
    %81 = vector.load %arg2[%c144, %c0_22] : memref<1368x128xf32, #tpu.memory_space<vmem>>, vector<32x32xf32>
    %cst_23 = arith.constant 0.000000e+00 : f32
    %82 = vector.broadcast %cst_23 : f32 to vector<17x32xf32>
    %83 = vector.extract_strided_slice %80 {offsets = [0, 0, 0], sizes = [1, 17, 8], strides = [1, 1, 1]} : vector<4x17x8xf32> to vector<1x17x8xf32>
    %84 = vector.shape_cast %83 : vector<1x17x8xf32> to vector<17x8xf32>
    %85 = vector.extract_strided_slice %81 {offsets = [0, 0], sizes = [8, 32], strides = [1, 1]} : vector<32x32xf32> to vector<8x32xf32>
    %cst_24 = arith.constant dense<0.000000e+00> : vector<17x32xf32>
    %86 = tpu.matmul %84, %85, %cst_24 {dimension_numbers = #tpu.dot_dimension_numbers<[1], [0], [0], [1], [0, 0, 1, 1], [], []>} : vector<17x8xf32>, vector<8x32xf32>, vector<17x32xf32> -> vector<17x32xf32>
    %87 = arith.addf %82, %86 : vector<17x32xf32>
    %88 = vector.extract_strided_slice %80 {offsets = [1, 0, 0], sizes = [1, 17, 8], strides = [1, 1, 1]} : vector<4x17x8xf32> to vector<1x17x8xf32>
    %89 = vector.shape_cast %88 : vector<1x17x8xf32> to vector<17x8xf32>
    %90 = vector.extract_strided_slice %81 {offsets = [8, 0], sizes = [8, 32], strides = [1, 1]} : vector<32x32xf32> to vector<8x32xf32>
    %cst_25 = arith.constant dense<0.000000e+00> : vector<17x32xf32>
    %91 = tpu.matmul %89, %90, %cst_25 {dimension_numbers = #tpu.dot_dimension_numbers<[1], [0], [0], [1], [0, 0, 1, 1], [], []>} : vector<17x8xf32>, vector<8x32xf32>, vector<17x32xf32> -> vector<17x32xf32>
    %92 = arith.addf %87, %91 : vector<17x32xf32>
    %93 = vector.extract_strided_slice %80 {offsets = [2, 0, 0], sizes = [1, 17, 8], strides = [1, 1, 1]} : vector<4x17x8xf32> to vector<1x17x8xf32>
    %94 = vector.shape_cast %93 : vector<1x17x8xf32> to vector<17x8xf32>
    %95 = vector.extract_strided_slice %81 {offsets = [16, 0], sizes = [8, 32], strides = [1, 1]} : vector<32x32xf32> to vector<8x32xf32>
    %cst_26 = arith.constant dense<0.000000e+00> : vector<17x32xf32>
    %96 = tpu.matmul %94, %95, %cst_26 {dimension_numbers = #tpu.dot_dimension_numbers<[1], [0], [0], [1], [0, 0, 1, 1], [], []>} : vector<17x8xf32>, vector<8x32xf32>, vector<17x32xf32> -> vector<17x32xf32>
    %97 = arith.addf %92, %96 : vector<17x32xf32>
    %98 = vector.extract_strided_slice %80 {offsets = [3, 0, 0], sizes = [1, 17, 8], strides = [1, 1, 1]} : vector<4x17x8xf32> to vector<1x17x8xf32>
    %99 = vector.shape_cast %98 : vector<1x17x8xf32> to vector<17x8xf32>
    %100 = vector.extract_strided_slice %81 {offsets = [24, 0], sizes = [8, 32], strides = [1, 1]} : vector<32x32xf32> to vector<8x32xf32>
    %cst_27 = arith.constant dense<0.000000e+00> : vector<17x32xf32>
    %101 = tpu.matmul %99, %100, %cst_27 {dimension_numbers = #tpu.dot_dimension_numbers<[1], [0], [0], [1], [0, 0, 1, 1], [], []>} : vector<17x8xf32>, vector<8x32xf32>, vector<17x32xf32> -> vector<17x32xf32>
    %102 = arith.addf %97, %101 : vector<17x32xf32>
    %103 = arith.addf %10, %102 : vector<17x32xf32>
    %c176 = arith.constant 176 : index
    %c0_28 = arith.constant 0 : index
    %104 = vector.load %arg2[%c176, %c0_28] : memref<1368x128xf32, #tpu.memory_space<vmem>>, vector<1x32xf32>
    %105 = vector.broadcast %104 : vector<1x32xf32> to vector<17x32xf32>
    %106 = arith.addf %103, %105 : vector<17x32xf32>
    %c184 = arith.constant 184 : index
    %c0_29 = arith.constant 0 : index
    %107 = vector.load %arg2[%c184, %c0_29] : memref<1368x128xf32, #tpu.memory_space<vmem>>, vector<1x32xf32>
    %c192 = arith.constant 192 : index
    %c0_30 = arith.constant 0 : index
    %108 = vector.load %arg2[%c192, %c0_30] : memref<1368x128xf32, #tpu.memory_space<vmem>>, vector<1x32xf32>
    %cst_31 = arith.constant dense<0.000000e+00> : vector<17xf32>
    %109 = vector.multi_reduction <add>, %106, %cst_31 [1] : vector<17x32xf32> to vector<17xf32>
    %110 = vector.shape_cast %109 : vector<17xf32> to vector<17x1xf32>
    %cst_32 = arith.constant 3.200000e+01 : f32
    %111 = vector.broadcast %cst_32 : f32 to vector<17x1xf32>
    %112 = arith.divf %110, %111 : vector<17x1xf32>
    %113 = vector.broadcast %112 : vector<17x1xf32> to vector<17x32xf32>
    %114 = arith.subf %106, %113 : vector<17x32xf32>
    %115 = arith.mulf %114, %114 : vector<17x32xf32>
    %cst_33 = arith.constant dense<0.000000e+00> : vector<17xf32>
    %116 = vector.multi_reduction <add>, %115, %cst_33 [1] : vector<17x32xf32> to vector<17xf32>
    %117 = vector.shape_cast %116 : vector<17xf32> to vector<17x1xf32>
    %cst_34 = arith.constant 3.200000e+01 : f32
    %118 = vector.broadcast %cst_34 : f32 to vector<17x1xf32>
    %119 = arith.divf %117, %118 : vector<17x1xf32>
    %120 = vector.broadcast %112 : vector<17x1xf32> to vector<17x32xf32>
    %121 = arith.subf %106, %120 : vector<17x32xf32>
    %cst_35 = arith.constant 9.99999974E-6 : f32
    %122 = vector.broadcast %cst_35 : f32 to vector<17x1xf32>
    %123 = arith.addf %119, %122 : vector<17x1xf32>
    %124 = math.rsqrt %123 : vector<17x1xf32>
    %125 = vector.broadcast %124 : vector<17x1xf32> to vector<17x32xf32>
    %126 = arith.mulf %121, %125 : vector<17x32xf32>
    %127 = vector.broadcast %107 : vector<1x32xf32> to vector<17x32xf32>
    %128 = arith.mulf %126, %127 : vector<17x32xf32>
    %129 = vector.broadcast %108 : vector<1x32xf32> to vector<17x32xf32>
    %130 = arith.addf %128, %129 : vector<17x32xf32>
    %c200 = arith.constant 200 : index
    %c0_36 = arith.constant 0 : index
    %131 = vector.load %arg2[%c200, %c0_36] : memref<1368x128xf32, #tpu.memory_space<vmem>>, vector<32x128xf32>
    %cst_37 = arith.constant dense<0.000000e+00> : vector<17x128xf32>
    %132 = tpu.matmul %130, %131, %cst_37 {dimension_numbers = #tpu.dot_dimension_numbers<[1], [0], [0], [1], [0, 0, 1, 1], [], []>} : vector<17x32xf32>, vector<32x128xf32>, vector<17x128xf32> -> vector<17x128xf32>
    %c232 = arith.constant 232 : index
    %c0_38 = arith.constant 0 : index
    %133 = vector.load %arg2[%c232, %c0_38] : memref<1368x128xf32, #tpu.memory_space<vmem>>, vector<1x128xf32>
    %134 = vector.broadcast %133 : vector<1x128xf32> to vector<17x128xf32>
    %135 = arith.addf %132, %134 : vector<17x128xf32>
    %cst_39 = arith.constant 5.000000e-01 : f32
    %136 = vector.broadcast %cst_39 : f32 to vector<17x128xf32>
    %137 = arith.mulf %136, %135 : vector<17x128xf32>
    %cst_40 = arith.constant 0.707106769 : f32
    %138 = vector.broadcast %cst_40 : f32 to vector<17x128xf32>
    %139 = arith.mulf %135, %138 : vector<17x128xf32>
    %140 = math.absf %139 : vector<17x128xf32>
    %cst_41 = arith.constant 0.327591091 : f32
    %141 = vector.broadcast %cst_41 : f32 to vector<17x128xf32>
    %142 = arith.mulf %141, %140 : vector<17x128xf32>
    %cst_42 = arith.constant 1.000000e+00 : f32
    %143 = vector.broadcast %cst_42 : f32 to vector<17x128xf32>
    %144 = arith.addf %143, %142 : vector<17x128xf32>
    %cst_43 = arith.constant 1.000000e+00 : f32
    %145 = vector.broadcast %cst_43 : f32 to vector<17x128xf32>
    %146 = arith.divf %145, %144 : vector<17x128xf32>
    %cst_44 = arith.constant 1.06140542 : f32
    %147 = vector.broadcast %cst_44 : f32 to vector<17x128xf32>
    %148 = arith.mulf %147, %146 : vector<17x128xf32>
    %cst_45 = arith.constant -1.45315206 : f32
    %149 = vector.broadcast %cst_45 : f32 to vector<17x128xf32>
    %150 = arith.addf %148, %149 : vector<17x128xf32>
    %151 = arith.mulf %150, %146 : vector<17x128xf32>
    %cst_46 = arith.constant 1.42141378 : f32
    %152 = vector.broadcast %cst_46 : f32 to vector<17x128xf32>
    %153 = arith.addf %151, %152 : vector<17x128xf32>
    %154 = arith.mulf %153, %146 : vector<17x128xf32>
    %cst_47 = arith.constant -0.284496725 : f32
    %155 = vector.broadcast %cst_47 : f32 to vector<17x128xf32>
    %156 = arith.addf %154, %155 : vector<17x128xf32>
    %157 = arith.mulf %156, %146 : vector<17x128xf32>
    %cst_48 = arith.constant 0.254829586 : f32
    %158 = vector.broadcast %cst_48 : f32 to vector<17x128xf32>
    %159 = arith.addf %157, %158 : vector<17x128xf32>
    %160 = arith.mulf %159, %146 : vector<17x128xf32>
    %cst_49 = arith.constant 0.000000e+00 : f32
    %161 = vector.broadcast %cst_49 : f32 to vector<17x128xf32>
    %162 = arith.subf %161, %140 : vector<17x128xf32>
    %163 = arith.mulf %162, %140 : vector<17x128xf32>
    %164 = math.exp %163 : vector<17x128xf32>
    %165 = arith.mulf %160, %164 : vector<17x128xf32>
    %cst_50 = arith.constant 1.000000e+00 : f32
    %166 = vector.broadcast %cst_50 : f32 to vector<17x128xf32>
    %167 = arith.subf %166, %165 : vector<17x128xf32>
    %cst_51 = arith.constant 0.000000e+00 : f32
    %168 = vector.broadcast %cst_51 : f32 to vector<17x128xf32>
    %169 = arith.cmpf oge, %139, %168 : vector<17x128xf32>
    %cst_52 = arith.constant 0.000000e+00 : f32
    %170 = vector.broadcast %cst_52 : f32 to vector<17x128xf32>
    %171 = arith.subf %170, %167 : vector<17x128xf32>
    %172 = arith.select %169, %167, %171 : vector<17x128xi1>, vector<17x128xf32>
    %cst_53 = arith.constant 1.000000e+00 : f32
    %173 = vector.broadcast %cst_53 : f32 to vector<17x128xf32>
    %174 = arith.addf %173, %172 : vector<17x128xf32>
    %175 = arith.mulf %137, %174 : vector<17x128xf32>
    %c240 = arith.constant 240 : index
    %c0_54 = arith.constant 0 : index
    %176 = vector.load %arg2[%c240, %c0_54] : memref<1368x128xf32, #tpu.memory_space<vmem>>, vector<128x32xf32>
    %cst_55 = arith.constant dense<0.000000e+00> : vector<17x32xf32>
    %177 = tpu.matmul %175, %176, %cst_55 {dimension_numbers = #tpu.dot_dimension_numbers<[1], [0], [0], [1], [0, 0, 1, 1], [], []>} : vector<17x128xf32>, vector<128x32xf32>, vector<17x32xf32> -> vector<17x32xf32>
    %178 = arith.addf %106, %177 : vector<17x32xf32>
    %c368 = arith.constant 368 : index
    %c0_56 = arith.constant 0 : index
    %179 = vector.load %arg2[%c368, %c0_56] : memref<1368x128xf32, #tpu.memory_space<vmem>>, vector<1x32xf32>
    %180 = vector.broadcast %179 : vector<1x32xf32> to vector<17x32xf32>
    %181 = arith.addf %178, %180 : vector<17x32xf32>
    %c376 = arith.constant 376 : index
    %c0_57 = arith.constant 0 : index
    %182 = vector.load %arg2[%c376, %c0_57] : memref<1368x128xf32, #tpu.memory_space<vmem>>, vector<1x32xf32>
    %c384 = arith.constant 384 : index
    %c0_58 = arith.constant 0 : index
    %183 = vector.load %arg2[%c384, %c0_58] : memref<1368x128xf32, #tpu.memory_space<vmem>>, vector<1x32xf32>
    %cst_59 = arith.constant dense<0.000000e+00> : vector<17xf32>
    %184 = vector.multi_reduction <add>, %181, %cst_59 [1] : vector<17x32xf32> to vector<17xf32>
    %185 = vector.shape_cast %184 : vector<17xf32> to vector<17x1xf32>
    %cst_60 = arith.constant 3.200000e+01 : f32
    %186 = vector.broadcast %cst_60 : f32 to vector<17x1xf32>
    %187 = arith.divf %185, %186 : vector<17x1xf32>
    %188 = vector.broadcast %187 : vector<17x1xf32> to vector<17x32xf32>
    %189 = arith.subf %181, %188 : vector<17x32xf32>
    %190 = arith.mulf %189, %189 : vector<17x32xf32>
    %cst_61 = arith.constant dense<0.000000e+00> : vector<17xf32>
    %191 = vector.multi_reduction <add>, %190, %cst_61 [1] : vector<17x32xf32> to vector<17xf32>
    %192 = vector.shape_cast %191 : vector<17xf32> to vector<17x1xf32>
    %cst_62 = arith.constant 3.200000e+01 : f32
    %193 = vector.broadcast %cst_62 : f32 to vector<17x1xf32>
    %194 = arith.divf %192, %193 : vector<17x1xf32>
    %195 = vector.broadcast %187 : vector<17x1xf32> to vector<17x32xf32>
    %196 = arith.subf %181, %195 : vector<17x32xf32>
    %cst_63 = arith.constant 9.99999974E-6 : f32
    %197 = vector.broadcast %cst_63 : f32 to vector<17x1xf32>
    %198 = arith.addf %194, %197 : vector<17x1xf32>
    %199 = math.rsqrt %198 : vector<17x1xf32>
    %200 = vector.broadcast %199 : vector<17x1xf32> to vector<17x32xf32>
    %201 = arith.mulf %196, %200 : vector<17x32xf32>
    %202 = vector.broadcast %182 : vector<1x32xf32> to vector<17x32xf32>
    %203 = arith.mulf %201, %202 : vector<17x32xf32>
    %204 = vector.broadcast %183 : vector<1x32xf32> to vector<17x32xf32>
    %205 = arith.addf %203, %204 : vector<17x32xf32>
    %c392 = arith.constant 392 : index
    %c0_64 = arith.constant 0 : index
    %206 = vector.load %arg2[%c392, %c0_64] : memref<1368x128xf32, #tpu.memory_space<vmem>>, vector<32x96xf32>
    %cst_65 = arith.constant dense<0.000000e+00> : vector<17x96xf32>
    %207 = tpu.matmul %205, %206, %cst_65 {dimension_numbers = #tpu.dot_dimension_numbers<[1], [0], [0], [1], [0, 0, 1, 1], [], []>} : vector<17x32xf32>, vector<32x96xf32>, vector<17x96xf32> -> vector<17x96xf32>
    %c424 = arith.constant 424 : index
    %c0_66 = arith.constant 0 : index
    %208 = vector.load %arg2[%c424, %c0_66] : memref<1368x128xf32, #tpu.memory_space<vmem>>, vector<1x96xf32>
    %209 = vector.broadcast %208 : vector<1x96xf32> to vector<17x96xf32>
    %210 = arith.addf %207, %209 : vector<17x96xf32>
    %211 = vector.extract_strided_slice %210 {offsets = [0, 0], sizes = [17, 8], strides = [1, 1]} : vector<17x96xf32> to vector<17x8xf32>
    %212 = vector.extract_strided_slice %210 {offsets = [0, 8], sizes = [17, 8], strides = [1, 1]} : vector<17x96xf32> to vector<17x8xf32>
    %213 = vector.extract_strided_slice %210 {offsets = [0, 16], sizes = [17, 8], strides = [1, 1]} : vector<17x96xf32> to vector<17x8xf32>
    %214 = vector.extract_strided_slice %210 {offsets = [0, 24], sizes = [17, 8], strides = [1, 1]} : vector<17x96xf32> to vector<17x8xf32>
    %215 = vector.shape_cast %211 : vector<17x8xf32> to vector<1x17x8xf32>
    %216 = vector.shape_cast %212 : vector<17x8xf32> to vector<1x17x8xf32>
    %217 = vector.shape_cast %213 : vector<17x8xf32> to vector<1x17x8xf32>
    %218 = vector.shape_cast %214 : vector<17x8xf32> to vector<1x17x8xf32>
    %219 = tpu.concatenate %215, %216, %217, %218 in 0 : vector<1x17x8xf32>, vector<1x17x8xf32>, vector<1x17x8xf32>, vector<1x17x8xf32> -> vector<4x17x8xf32>
    %220 = vector.extract_strided_slice %210 {offsets = [0, 32], sizes = [17, 8], strides = [1, 1]} : vector<17x96xf32> to vector<17x8xf32>
    %221 = vector.extract_strided_slice %210 {offsets = [0, 40], sizes = [17, 8], strides = [1, 1]} : vector<17x96xf32> to vector<17x8xf32>
    %222 = vector.extract_strided_slice %210 {offsets = [0, 48], sizes = [17, 8], strides = [1, 1]} : vector<17x96xf32> to vector<17x8xf32>
    %223 = vector.extract_strided_slice %210 {offsets = [0, 56], sizes = [17, 8], strides = [1, 1]} : vector<17x96xf32> to vector<17x8xf32>
    %224 = vector.shape_cast %220 : vector<17x8xf32> to vector<1x17x8xf32>
    %225 = vector.shape_cast %221 : vector<17x8xf32> to vector<1x17x8xf32>
    %226 = vector.shape_cast %222 : vector<17x8xf32> to vector<1x17x8xf32>
    %227 = vector.shape_cast %223 : vector<17x8xf32> to vector<1x17x8xf32>
    %228 = tpu.concatenate %224, %225, %226, %227 in 0 : vector<1x17x8xf32>, vector<1x17x8xf32>, vector<1x17x8xf32>, vector<1x17x8xf32> -> vector<4x17x8xf32>
    %229 = vector.extract_strided_slice %210 {offsets = [0, 64], sizes = [17, 8], strides = [1, 1]} : vector<17x96xf32> to vector<17x8xf32>
    %230 = vector.extract_strided_slice %210 {offsets = [0, 72], sizes = [17, 8], strides = [1, 1]} : vector<17x96xf32> to vector<17x8xf32>
    %231 = vector.extract_strided_slice %210 {offsets = [0, 80], sizes = [17, 8], strides = [1, 1]} : vector<17x96xf32> to vector<17x8xf32>
    %232 = vector.extract_strided_slice %210 {offsets = [0, 88], sizes = [17, 8], strides = [1, 1]} : vector<17x96xf32> to vector<17x8xf32>
    %233 = vector.shape_cast %229 : vector<17x8xf32> to vector<1x17x8xf32>
    %234 = vector.shape_cast %230 : vector<17x8xf32> to vector<1x17x8xf32>
    %235 = vector.shape_cast %231 : vector<17x8xf32> to vector<1x17x8xf32>
    %236 = vector.shape_cast %232 : vector<17x8xf32> to vector<1x17x8xf32>
    %237 = tpu.concatenate %233, %234, %235, %236 in 0 : vector<1x17x8xf32>, vector<1x17x8xf32>, vector<1x17x8xf32>, vector<1x17x8xf32> -> vector<4x17x8xf32>
    "tpu.trace_start"() <{level = 10 : i32, message = "hnd,hmd->hnm"}> : () -> ()
    %cst_67 = arith.constant dense<0.000000e+00> : vector<4x17x17xf32>
    %238 = tpu.matmul %219, %228, %cst_67 {dimension_numbers = #tpu.dot_dimension_numbers<[2], [2], [1], [1], [0, 0, 0, 1, 1, 1], [0], [0]>} : vector<4x17x8xf32>, vector<4x17x8xf32>, vector<4x17x17xf32> -> vector<4x17x17xf32>
    "tpu.trace_stop"() : () -> ()
    %cst_68 = arith.constant 0.353553385 : f32
    %239 = vector.broadcast %cst_68 : f32 to vector<4x17x17xf32>
    %240 = arith.mulf %238, %239 : vector<4x17x17xf32>
    %cst_69 = arith.constant dense<0xFF800000> : vector<4x17xf32>
    %241 = vector.multi_reduction <maximumf>, %240, %cst_69 [2] : vector<4x17x17xf32> to vector<4x17xf32>
    %242 = vector.shape_cast %241 : vector<4x17xf32> to vector<4x17x1xf32>
    %243 = vector.broadcast %242 : vector<4x17x1xf32> to vector<4x17x17xf32>
    %244 = arith.subf %240, %243 : vector<4x17x17xf32>
    %245 = math.exp %244 : vector<4x17x17xf32>
    %cst_70 = arith.constant dense<0.000000e+00> : vector<4x17xf32>
    %246 = vector.multi_reduction <add>, %245, %cst_70 [2] : vector<4x17x17xf32> to vector<4x17xf32>
    %247 = vector.shape_cast %246 : vector<4x17xf32> to vector<4x17x1xf32>
    %248 = tpu.reciprocal %247 {approx = true} : vector<4x17x1xf32> -> vector<4x17x1xf32>
    %249 = vector.broadcast %248 : vector<4x17x1xf32> to vector<4x17x17xf32>
    %250 = arith.mulf %245, %249 : vector<4x17x17xf32>
    "tpu.trace_start"() <{level = 10 : i32, message = "hnm,hmd->hnd"}> : () -> ()
    %cst_71 = arith.constant dense<0.000000e+00> : vector<4x17x8xf32>
    %251 = tpu.matmul %250, %237, %cst_71 {dimension_numbers = #tpu.dot_dimension_numbers<[2], [1], [1], [2], [0, 0, 0, 1, 1, 2], [0], [0]>} : vector<4x17x17xf32>, vector<4x17x8xf32>, vector<4x17x8xf32> -> vector<4x17x8xf32>
    "tpu.trace_stop"() : () -> ()
    %c432 = arith.constant 432 : index
    %c0_72 = arith.constant 0 : index
    %252 = vector.load %arg2[%c432, %c0_72] : memref<1368x128xf32, #tpu.memory_space<vmem>>, vector<32x32xf32>
    %cst_73 = arith.constant 0.000000e+00 : f32
    %253 = vector.broadcast %cst_73 : f32 to vector<17x32xf32>
    %254 = vector.extract_strided_slice %251 {offsets = [0, 0, 0], sizes = [1, 17, 8], strides = [1, 1, 1]} : vector<4x17x8xf32> to vector<1x17x8xf32>
    %255 = vector.shape_cast %254 : vector<1x17x8xf32> to vector<17x8xf32>
    %256 = vector.extract_strided_slice %252 {offsets = [0, 0], sizes = [8, 32], strides = [1, 1]} : vector<32x32xf32> to vector<8x32xf32>
    %cst_74 = arith.constant dense<0.000000e+00> : vector<17x32xf32>
    %257 = tpu.matmul %255, %256, %cst_74 {dimension_numbers = #tpu.dot_dimension_numbers<[1], [0], [0], [1], [0, 0, 1, 1], [], []>} : vector<17x8xf32>, vector<8x32xf32>, vector<17x32xf32> -> vector<17x32xf32>
    %258 = arith.addf %253, %257 : vector<17x32xf32>
    %259 = vector.extract_strided_slice %251 {offsets = [1, 0, 0], sizes = [1, 17, 8], strides = [1, 1, 1]} : vector<4x17x8xf32> to vector<1x17x8xf32>
    %260 = vector.shape_cast %259 : vector<1x17x8xf32> to vector<17x8xf32>
    %261 = vector.extract_strided_slice %252 {offsets = [8, 0], sizes = [8, 32], strides = [1, 1]} : vector<32x32xf32> to vector<8x32xf32>
    %cst_75 = arith.constant dense<0.000000e+00> : vector<17x32xf32>
    %262 = tpu.matmul %260, %261, %cst_75 {dimension_numbers = #tpu.dot_dimension_numbers<[1], [0], [0], [1], [0, 0, 1, 1], [], []>} : vector<17x8xf32>, vector<8x32xf32>, vector<17x32xf32> -> vector<17x32xf32>
    %263 = arith.addf %258, %262 : vector<17x32xf32>
    %264 = vector.extract_strided_slice %251 {offsets = [2, 0, 0], sizes = [1, 17, 8], strides = [1, 1, 1]} : vector<4x17x8xf32> to vector<1x17x8xf32>
    %265 = vector.shape_cast %264 : vector<1x17x8xf32> to vector<17x8xf32>
    %266 = vector.extract_strided_slice %252 {offsets = [16, 0], sizes = [8, 32], strides = [1, 1]} : vector<32x32xf32> to vector<8x32xf32>
    %cst_76 = arith.constant dense<0.000000e+00> : vector<17x32xf32>
    %267 = tpu.matmul %265, %266, %cst_76 {dimension_numbers = #tpu.dot_dimension_numbers<[1], [0], [0], [1], [0, 0, 1, 1], [], []>} : vector<17x8xf32>, vector<8x32xf32>, vector<17x32xf32> -> vector<17x32xf32>
    %268 = arith.addf %263, %267 : vector<17x32xf32>
    %269 = vector.extract_strided_slice %251 {offsets = [3, 0, 0], sizes = [1, 17, 8], strides = [1, 1, 1]} : vector<4x17x8xf32> to vector<1x17x8xf32>
    %270 = vector.shape_cast %269 : vector<1x17x8xf32> to vector<17x8xf32>
    %271 = vector.extract_strided_slice %252 {offsets = [24, 0], sizes = [8, 32], strides = [1, 1]} : vector<32x32xf32> to vector<8x32xf32>
    %cst_77 = arith.constant dense<0.000000e+00> : vector<17x32xf32>
    %272 = tpu.matmul %270, %271, %cst_77 {dimension_numbers = #tpu.dot_dimension_numbers<[1], [0], [0], [1], [0, 0, 1, 1], [], []>} : vector<17x8xf32>, vector<8x32xf32>, vector<17x32xf32> -> vector<17x32xf32>
    %273 = arith.addf %268, %272 : vector<17x32xf32>
    %274 = arith.addf %181, %273 : vector<17x32xf32>
    %c464 = arith.constant 464 : index
    %c0_78 = arith.constant 0 : index
    %275 = vector.load %arg2[%c464, %c0_78] : memref<1368x128xf32, #tpu.memory_space<vmem>>, vector<1x32xf32>
    %276 = vector.broadcast %275 : vector<1x32xf32> to vector<17x32xf32>
    %277 = arith.addf %274, %276 : vector<17x32xf32>
    %c472 = arith.constant 472 : index
    %c0_79 = arith.constant 0 : index
    %278 = vector.load %arg2[%c472, %c0_79] : memref<1368x128xf32, #tpu.memory_space<vmem>>, vector<1x32xf32>
    %c480 = arith.constant 480 : index
    %c0_80 = arith.constant 0 : index
    %279 = vector.load %arg2[%c480, %c0_80] : memref<1368x128xf32, #tpu.memory_space<vmem>>, vector<1x32xf32>
    %cst_81 = arith.constant dense<0.000000e+00> : vector<17xf32>
    %280 = vector.multi_reduction <add>, %277, %cst_81 [1] : vector<17x32xf32> to vector<17xf32>
    %281 = vector.shape_cast %280 : vector<17xf32> to vector<17x1xf32>
    %cst_82 = arith.constant 3.200000e+01 : f32
    %282 = vector.broadcast %cst_82 : f32 to vector<17x1xf32>
    %283 = arith.divf %281, %282 : vector<17x1xf32>
    %284 = vector.broadcast %283 : vector<17x1xf32> to vector<17x32xf32>
    %285 = arith.subf %277, %284 : vector<17x32xf32>
    %286 = arith.mulf %285, %285 : vector<17x32xf32>
    %cst_83 = arith.constant dense<0.000000e+00> : vector<17xf32>
    %287 = vector.multi_reduction <add>, %286, %cst_83 [1] : vector<17x32xf32> to vector<17xf32>
    %288 = vector.shape_cast %287 : vector<17xf32> to vector<17x1xf32>
    %cst_84 = arith.constant 3.200000e+01 : f32
    %289 = vector.broadcast %cst_84 : f32 to vector<17x1xf32>
    %290 = arith.divf %288, %289 : vector<17x1xf32>
    %291 = vector.broadcast %283 : vector<17x1xf32> to vector<17x32xf32>
    %292 = arith.subf %277, %291 : vector<17x32xf32>
    %cst_85 = arith.constant 9.99999974E-6 : f32
    %293 = vector.broadcast %cst_85 : f32 to vector<17x1xf32>
    %294 = arith.addf %290, %293 : vector<17x1xf32>
    %295 = math.rsqrt %294 : vector<17x1xf32>
    %296 = vector.broadcast %295 : vector<17x1xf32> to vector<17x32xf32>
    %297 = arith.mulf %292, %296 : vector<17x32xf32>
    %298 = vector.broadcast %278 : vector<1x32xf32> to vector<17x32xf32>
    %299 = arith.mulf %297, %298 : vector<17x32xf32>
    %300 = vector.broadcast %279 : vector<1x32xf32> to vector<17x32xf32>
    %301 = arith.addf %299, %300 : vector<17x32xf32>
    %c488 = arith.constant 488 : index
    %c0_86 = arith.constant 0 : index
    %302 = vector.load %arg2[%c488, %c0_86] : memref<1368x128xf32, #tpu.memory_space<vmem>>, vector<32x128xf32>
    %cst_87 = arith.constant dense<0.000000e+00> : vector<17x128xf32>
    %303 = tpu.matmul %301, %302, %cst_87 {dimension_numbers = #tpu.dot_dimension_numbers<[1], [0], [0], [1], [0, 0, 1, 1], [], []>} : vector<17x32xf32>, vector<32x128xf32>, vector<17x128xf32> -> vector<17x128xf32>
    %c520 = arith.constant 520 : index
    %c0_88 = arith.constant 0 : index
    %304 = vector.load %arg2[%c520, %c0_88] : memref<1368x128xf32, #tpu.memory_space<vmem>>, vector<1x128xf32>
    %305 = vector.broadcast %304 : vector<1x128xf32> to vector<17x128xf32>
    %306 = arith.addf %303, %305 : vector<17x128xf32>
    %cst_89 = arith.constant 5.000000e-01 : f32
    %307 = vector.broadcast %cst_89 : f32 to vector<17x128xf32>
    %308 = arith.mulf %307, %306 : vector<17x128xf32>
    %cst_90 = arith.constant 0.707106769 : f32
    %309 = vector.broadcast %cst_90 : f32 to vector<17x128xf32>
    %310 = arith.mulf %306, %309 : vector<17x128xf32>
    %311 = math.absf %310 : vector<17x128xf32>
    %cst_91 = arith.constant 0.327591091 : f32
    %312 = vector.broadcast %cst_91 : f32 to vector<17x128xf32>
    %313 = arith.mulf %312, %311 : vector<17x128xf32>
    %cst_92 = arith.constant 1.000000e+00 : f32
    %314 = vector.broadcast %cst_92 : f32 to vector<17x128xf32>
    %315 = arith.addf %314, %313 : vector<17x128xf32>
    %cst_93 = arith.constant 1.000000e+00 : f32
    %316 = vector.broadcast %cst_93 : f32 to vector<17x128xf32>
    %317 = arith.divf %316, %315 : vector<17x128xf32>
    %cst_94 = arith.constant 1.06140542 : f32
    %318 = vector.broadcast %cst_94 : f32 to vector<17x128xf32>
    %319 = arith.mulf %318, %317 : vector<17x128xf32>
    %cst_95 = arith.constant -1.45315206 : f32
    %320 = vector.broadcast %cst_95 : f32 to vector<17x128xf32>
    %321 = arith.addf %319, %320 : vector<17x128xf32>
    %322 = arith.mulf %321, %317 : vector<17x128xf32>
    %cst_96 = arith.constant 1.42141378 : f32
    %323 = vector.broadcast %cst_96 : f32 to vector<17x128xf32>
    %324 = arith.addf %322, %323 : vector<17x128xf32>
    %325 = arith.mulf %324, %317 : vector<17x128xf32>
    %cst_97 = arith.constant -0.284496725 : f32
    %326 = vector.broadcast %cst_97 : f32 to vector<17x128xf32>
    %327 = arith.addf %325, %326 : vector<17x128xf32>
    %328 = arith.mulf %327, %317 : vector<17x128xf32>
    %cst_98 = arith.constant 0.254829586 : f32
    %329 = vector.broadcast %cst_98 : f32 to vector<17x128xf32>
    %330 = arith.addf %328, %329 : vector<17x128xf32>
    %331 = arith.mulf %330, %317 : vector<17x128xf32>
    %cst_99 = arith.constant 0.000000e+00 : f32
    %332 = vector.broadcast %cst_99 : f32 to vector<17x128xf32>
    %333 = arith.subf %332, %311 : vector<17x128xf32>
    %334 = arith.mulf %333, %311 : vector<17x128xf32>
    %335 = math.exp %334 : vector<17x128xf32>
    %336 = arith.mulf %331, %335 : vector<17x128xf32>
    %cst_100 = arith.constant 1.000000e+00 : f32
    %337 = vector.broadcast %cst_100 : f32 to vector<17x128xf32>
    %338 = arith.subf %337, %336 : vector<17x128xf32>
    %cst_101 = arith.constant 0.000000e+00 : f32
    %339 = vector.broadcast %cst_101 : f32 to vector<17x128xf32>
    %340 = arith.cmpf oge, %310, %339 : vector<17x128xf32>
    %cst_102 = arith.constant 0.000000e+00 : f32
    %341 = vector.broadcast %cst_102 : f32 to vector<17x128xf32>
    %342 = arith.subf %341, %338 : vector<17x128xf32>
    %343 = arith.select %340, %338, %342 : vector<17x128xi1>, vector<17x128xf32>
    %cst_103 = arith.constant 1.000000e+00 : f32
    %344 = vector.broadcast %cst_103 : f32 to vector<17x128xf32>
    %345 = arith.addf %344, %343 : vector<17x128xf32>
    %346 = arith.mulf %308, %345 : vector<17x128xf32>
    %c528 = arith.constant 528 : index
    %c0_104 = arith.constant 0 : index
    %347 = vector.load %arg2[%c528, %c0_104] : memref<1368x128xf32, #tpu.memory_space<vmem>>, vector<128x32xf32>
    %cst_105 = arith.constant dense<0.000000e+00> : vector<17x32xf32>
    %348 = tpu.matmul %346, %347, %cst_105 {dimension_numbers = #tpu.dot_dimension_numbers<[1], [0], [0], [1], [0, 0, 1, 1], [], []>} : vector<17x128xf32>, vector<128x32xf32>, vector<17x32xf32> -> vector<17x32xf32>
    %349 = arith.addf %277, %348 : vector<17x32xf32>
    %c656 = arith.constant 656 : index
    %c0_106 = arith.constant 0 : index
    %350 = vector.load %arg2[%c656, %c0_106] : memref<1368x128xf32, #tpu.memory_space<vmem>>, vector<1x32xf32>
    %351 = vector.broadcast %350 : vector<1x32xf32> to vector<17x32xf32>
    %352 = arith.addf %349, %351 : vector<17x32xf32>
    %c664 = arith.constant 664 : index
    %c0_107 = arith.constant 0 : index
    %353 = vector.load %arg2[%c664, %c0_107] : memref<1368x128xf32, #tpu.memory_space<vmem>>, vector<1x32xf32>
    %c672 = arith.constant 672 : index
    %c0_108 = arith.constant 0 : index
    %354 = vector.load %arg2[%c672, %c0_108] : memref<1368x128xf32, #tpu.memory_space<vmem>>, vector<1x32xf32>
    %cst_109 = arith.constant dense<0.000000e+00> : vector<17xf32>
    %355 = vector.multi_reduction <add>, %352, %cst_109 [1] : vector<17x32xf32> to vector<17xf32>
    %356 = vector.shape_cast %355 : vector<17xf32> to vector<17x1xf32>
    %cst_110 = arith.constant 3.200000e+01 : f32
    %357 = vector.broadcast %cst_110 : f32 to vector<17x1xf32>
    %358 = arith.divf %356, %357 : vector<17x1xf32>
    %359 = vector.broadcast %358 : vector<17x1xf32> to vector<17x32xf32>
    %360 = arith.subf %352, %359 : vector<17x32xf32>
    %361 = arith.mulf %360, %360 : vector<17x32xf32>
    %cst_111 = arith.constant dense<0.000000e+00> : vector<17xf32>
    %362 = vector.multi_reduction <add>, %361, %cst_111 [1] : vector<17x32xf32> to vector<17xf32>
    %363 = vector.shape_cast %362 : vector<17xf32> to vector<17x1xf32>
    %cst_112 = arith.constant 3.200000e+01 : f32
    %364 = vector.broadcast %cst_112 : f32 to vector<17x1xf32>
    %365 = arith.divf %363, %364 : vector<17x1xf32>
    %366 = vector.broadcast %358 : vector<17x1xf32> to vector<17x32xf32>
    %367 = arith.subf %352, %366 : vector<17x32xf32>
    %cst_113 = arith.constant 9.99999974E-6 : f32
    %368 = vector.broadcast %cst_113 : f32 to vector<17x1xf32>
    %369 = arith.addf %365, %368 : vector<17x1xf32>
    %370 = math.rsqrt %369 : vector<17x1xf32>
    %371 = vector.broadcast %370 : vector<17x1xf32> to vector<17x32xf32>
    %372 = arith.mulf %367, %371 : vector<17x32xf32>
    %373 = vector.broadcast %353 : vector<1x32xf32> to vector<17x32xf32>
    %374 = arith.mulf %372, %373 : vector<17x32xf32>
    %375 = vector.broadcast %354 : vector<1x32xf32> to vector<17x32xf32>
    %376 = arith.addf %374, %375 : vector<17x32xf32>
    %377 = vector.extract_strided_slice %376 {offsets = [1, 0], sizes = [16, 32], strides = [1, 1]} : vector<17x32xf32> to vector<16x32xf32>
    %c680 = arith.constant 680 : index
    %c0_114 = arith.constant 0 : index
    %378 = vector.load %arg2[%c680, %c0_114] : memref<1368x128xf32, #tpu.memory_space<vmem>>, vector<1x32xf32>
    %c688 = arith.constant 688 : index
    %c0_115 = arith.constant 0 : index
    %379 = vector.load %arg2[%c688, %c0_115] : memref<1368x128xf32, #tpu.memory_space<vmem>>, vector<1x32xf32>
    %cst_116 = arith.constant dense<0.000000e+00> : vector<16xf32>
    %380 = vector.multi_reduction <add>, %377, %cst_116 [1] : vector<16x32xf32> to vector<16xf32>
    %381 = vector.shape_cast %380 : vector<16xf32> to vector<16x1xf32>
    %cst_117 = arith.constant 3.200000e+01 : f32
    %382 = vector.broadcast %cst_117 : f32 to vector<16x1xf32>
    %383 = arith.divf %381, %382 : vector<16x1xf32>
    %384 = vector.broadcast %383 : vector<16x1xf32> to vector<16x32xf32>
    %385 = arith.subf %377, %384 : vector<16x32xf32>
    %386 = arith.mulf %385, %385 : vector<16x32xf32>
    %cst_118 = arith.constant dense<0.000000e+00> : vector<16xf32>
    %387 = vector.multi_reduction <add>, %386, %cst_118 [1] : vector<16x32xf32> to vector<16xf32>
    %388 = vector.shape_cast %387 : vector<16xf32> to vector<16x1xf32>
    %cst_119 = arith.constant 3.200000e+01 : f32
    %389 = vector.broadcast %cst_119 : f32 to vector<16x1xf32>
    %390 = arith.divf %388, %389 : vector<16x1xf32>
    %391 = vector.broadcast %383 : vector<16x1xf32> to vector<16x32xf32>
    %392 = arith.subf %377, %391 : vector<16x32xf32>
    %cst_120 = arith.constant 9.99999974E-6 : f32
    %393 = vector.broadcast %cst_120 : f32 to vector<16x1xf32>
    %394 = arith.addf %390, %393 : vector<16x1xf32>
    %395 = math.rsqrt %394 : vector<16x1xf32>
    %396 = vector.broadcast %395 : vector<16x1xf32> to vector<16x32xf32>
    %397 = arith.mulf %392, %396 : vector<16x32xf32>
    %398 = vector.broadcast %378 : vector<1x32xf32> to vector<16x32xf32>
    %399 = arith.mulf %397, %398 : vector<16x32xf32>
    %400 = vector.broadcast %379 : vector<1x32xf32> to vector<16x32xf32>
    %401 = arith.addf %399, %400 : vector<16x32xf32>
    %c696 = arith.constant 696 : index
    %c0_121 = arith.constant 0 : index
    %402 = vector.load %arg2[%c696, %c0_121] : memref<1368x128xf32, #tpu.memory_space<vmem>>, vector<32x32xf32>
    %cst_122 = arith.constant dense<0.000000e+00> : vector<16x32xf32>
    %403 = tpu.matmul %401, %402, %cst_122 {dimension_numbers = #tpu.dot_dimension_numbers<[1], [0], [0], [1], [0, 0, 1, 1], [], []>} : vector<16x32xf32>, vector<32x32xf32>, vector<16x32xf32> -> vector<16x32xf32>
    %c728 = arith.constant 728 : index
    %c0_123 = arith.constant 0 : index
    %404 = vector.load %arg2[%c728, %c0_123] : memref<1368x128xf32, #tpu.memory_space<vmem>>, vector<1x32xf32>
    %405 = vector.broadcast %404 : vector<1x32xf32> to vector<16x32xf32>
    %406 = arith.addf %403, %405 : vector<16x32xf32>
    %cst_124 = arith.constant 0.000000e+00 : f32
    %407 = vector.broadcast %cst_124 : f32 to vector<16x32xf32>
    %408 = arith.maximumf %406, %407 : vector<16x32xf32>
    %c736 = arith.constant 736 : index
    %c0_125 = arith.constant 0 : index
    %409 = vector.load %arg2[%c736, %c0_125] : memref<1368x128xf32, #tpu.memory_space<vmem>>, vector<32x32xf32>
    %cst_126 = arith.constant dense<0.000000e+00> : vector<16x32xf32>
    %410 = tpu.matmul %408, %409, %cst_126 {dimension_numbers = #tpu.dot_dimension_numbers<[1], [0], [0], [1], [0, 0, 1, 1], [], []>} : vector<16x32xf32>, vector<32x32xf32>, vector<16x32xf32> -> vector<16x32xf32>
    %c768 = arith.constant 768 : index
    %c0_127 = arith.constant 0 : index
    %411 = vector.load %arg2[%c768, %c0_127] : memref<1368x128xf32, #tpu.memory_space<vmem>>, vector<1x32xf32>
    %412 = vector.broadcast %411 : vector<1x32xf32> to vector<16x32xf32>
    %413 = arith.addf %410, %412 : vector<16x32xf32>
    %c784 = arith.constant 784 : index
    %c0_128 = arith.constant 0 : index
    %414 = vector.load %arg2[%c784, %c0_128] : memref<1368x128xf32, #tpu.memory_space<vmem>>, vector<1x32xf32>
    %c792 = arith.constant 792 : index
    %c0_129 = arith.constant 0 : index
    %415 = vector.load %arg2[%c792, %c0_129] : memref<1368x128xf32, #tpu.memory_space<vmem>>, vector<1x32xf32>
    %cst_130 = arith.constant dense<0.000000e+00> : vector<16xf32>
    %416 = vector.multi_reduction <add>, %413, %cst_130 [1] : vector<16x32xf32> to vector<16xf32>
    %417 = vector.shape_cast %416 : vector<16xf32> to vector<16x1xf32>
    %cst_131 = arith.constant 3.200000e+01 : f32
    %418 = vector.broadcast %cst_131 : f32 to vector<16x1xf32>
    %419 = arith.divf %417, %418 : vector<16x1xf32>
    %420 = vector.broadcast %419 : vector<16x1xf32> to vector<16x32xf32>
    %421 = arith.subf %413, %420 : vector<16x32xf32>
    %422 = arith.mulf %421, %421 : vector<16x32xf32>
    %cst_132 = arith.constant dense<0.000000e+00> : vector<16xf32>
    %423 = vector.multi_reduction <add>, %422, %cst_132 [1] : vector<16x32xf32> to vector<16xf32>
    %424 = vector.shape_cast %423 : vector<16xf32> to vector<16x1xf32>
    %cst_133 = arith.constant 3.200000e+01 : f32
    %425 = vector.broadcast %cst_133 : f32 to vector<16x1xf32>
    %426 = arith.divf %424, %425 : vector<16x1xf32>
    %427 = vector.broadcast %419 : vector<16x1xf32> to vector<16x32xf32>
    %428 = arith.subf %413, %427 : vector<16x32xf32>
    %cst_134 = arith.constant 9.99999974E-6 : f32
    %429 = vector.broadcast %cst_134 : f32 to vector<16x1xf32>
    %430 = arith.addf %426, %429 : vector<16x1xf32>
    %431 = math.rsqrt %430 : vector<16x1xf32>
    %432 = vector.broadcast %431 : vector<16x1xf32> to vector<16x32xf32>
    %433 = arith.mulf %428, %432 : vector<16x32xf32>
    %434 = vector.broadcast %414 : vector<1x32xf32> to vector<16x32xf32>
    %435 = arith.mulf %433, %434 : vector<16x32xf32>
    %436 = vector.broadcast %415 : vector<1x32xf32> to vector<16x32xf32>
    %437 = arith.addf %435, %436 : vector<16x32xf32>
    %c800 = arith.constant 800 : index
    %c0_135 = arith.constant 0 : index
    %438 = vector.load %arg2[%c800, %c0_135] : memref<1368x128xf32, #tpu.memory_space<vmem>>, vector<32x32xf32>
    %cst_136 = arith.constant dense<0.000000e+00> : vector<16x32xf32>
    %439 = tpu.matmul %437, %438, %cst_136 {dimension_numbers = #tpu.dot_dimension_numbers<[1], [0], [0], [1], [0, 0, 1, 1], [], []>} : vector<16x32xf32>, vector<32x32xf32>, vector<16x32xf32> -> vector<16x32xf32>
    %cst_137 = arith.constant 0.176776692 : f32
    %440 = vector.broadcast %cst_137 : f32 to vector<16x32xf32>
    %441 = arith.mulf %439, %440 : vector<16x32xf32>
    %c832 = arith.constant 832 : index
    %c0_138 = arith.constant 0 : index
    %442 = vector.load %arg2[%c832, %c0_138] : memref<1368x128xf32, #tpu.memory_space<vmem>>, vector<32x32xf32>
    %cst_139 = arith.constant dense<0.000000e+00> : vector<16x32xf32>
    %443 = tpu.matmul %437, %442, %cst_139 {dimension_numbers = #tpu.dot_dimension_numbers<[1], [0], [0], [1], [0, 0, 1, 1], [], []>} : vector<16x32xf32>, vector<32x32xf32>, vector<16x32xf32> -> vector<16x32xf32>
    %c896 = arith.constant 896 : index
    %c0_140 = arith.constant 0 : index
    %444 = vector.load %arg2[%c896, %c0_140] : memref<1368x128xf32, #tpu.memory_space<vmem>>, vector<1x32xf32>
    %c904 = arith.constant 904 : index
    %c0_141 = arith.constant 0 : index
    %445 = vector.load %arg2[%c904, %c0_141] : memref<1368x128xf32, #tpu.memory_space<vmem>>, vector<1x32xf32>
    %c864 = arith.constant 864 : index
    %c0_142 = arith.constant 0 : index
    %446 = vector.load %arg2[%c864, %c0_142] : memref<1368x128xf32, #tpu.memory_space<vmem>>, vector<32x32xf32>
    %c912 = arith.constant 912 : index
    %c0_143 = arith.constant 0 : index
    %447 = vector.load %arg2[%c912, %c0_143] : memref<1368x128xf32, #tpu.memory_space<vmem>>, vector<32x96xf32>
    %c944 = arith.constant 944 : index
    %c0_144 = arith.constant 0 : index
    %448 = vector.load %arg2[%c944, %c0_144] : memref<1368x128xf32, #tpu.memory_space<vmem>>, vector<1x96xf32>
    %c952 = arith.constant 952 : index
    %c0_145 = arith.constant 0 : index
    %449 = vector.load %arg2[%c952, %c0_145] : memref<1368x128xf32, #tpu.memory_space<vmem>>, vector<32x96xf32>
    %c984 = arith.constant 984 : index
    %c0_146 = arith.constant 0 : index
    %450 = vector.load %arg2[%c984, %c0_146] : memref<1368x128xf32, #tpu.memory_space<vmem>>, vector<1x96xf32>
    %c992 = arith.constant 992 : index
    %c0_147 = arith.constant 0 : index
    %451 = vector.load %arg2[%c992, %c0_147] : memref<1368x128xf32, #tpu.memory_space<vmem>>, vector<1x32xf32>
    %c1000 = arith.constant 1000 : index
    %c0_148 = arith.constant 0 : index
    %452 = vector.load %arg2[%c1000, %c0_148] : memref<1368x128xf32, #tpu.memory_space<vmem>>, vector<1x32xf32>
    %c1008 = arith.constant 1008 : index
    %c0_149 = arith.constant 0 : index
    %453 = vector.load %arg2[%c1008, %c0_149] : memref<1368x128xf32, #tpu.memory_space<vmem>>, vector<32x64xf32>
    %c1040 = arith.constant 1040 : index
    %c0_150 = arith.constant 0 : index
    %454 = vector.load %arg2[%c1040, %c0_150] : memref<1368x128xf32, #tpu.memory_space<vmem>>, vector<1x64xf32>
    %c1048 = arith.constant 1048 : index
    %c0_151 = arith.constant 0 : index
    %455 = vector.load %arg2[%c1048, %c0_151] : memref<1368x128xf32, #tpu.memory_space<vmem>>, vector<64x32xf32>
    %c1112 = arith.constant 1112 : index
    %c0_152 = arith.constant 0 : index
    %456 = vector.load %arg2[%c1112, %c0_152] : memref<1368x128xf32, #tpu.memory_space<vmem>>, vector<1x32xf32>
    %c776 = arith.constant 776 : index
    %c0_153 = arith.constant 0 : index
    %457 = vector.load %arg2[%c776, %c0_153] : memref<1368x128xf32, #tpu.memory_space<vmem>>, vector<4x32xf32>
    %cst_154 = arith.constant dense<0.000000e+00> : vector<4xf32>
    %458 = vector.multi_reduction <add>, %457, %cst_154 [1] : vector<4x32xf32> to vector<4xf32>
    %459 = vector.shape_cast %458 : vector<4xf32> to vector<4x1xf32>
    %cst_155 = arith.constant 3.200000e+01 : f32
    %460 = vector.broadcast %cst_155 : f32 to vector<4x1xf32>
    %461 = arith.divf %459, %460 : vector<4x1xf32>
    %462 = vector.broadcast %461 : vector<4x1xf32> to vector<4x32xf32>
    %463 = arith.subf %457, %462 : vector<4x32xf32>
    %464 = arith.mulf %463, %463 : vector<4x32xf32>
    %cst_156 = arith.constant dense<0.000000e+00> : vector<4xf32>
    %465 = vector.multi_reduction <add>, %464, %cst_156 [1] : vector<4x32xf32> to vector<4xf32>
    %466 = vector.shape_cast %465 : vector<4xf32> to vector<4x1xf32>
    %cst_157 = arith.constant 3.200000e+01 : f32
    %467 = vector.broadcast %cst_157 : f32 to vector<4x1xf32>
    %468 = arith.divf %466, %467 : vector<4x1xf32>
    %469 = vector.broadcast %461 : vector<4x1xf32> to vector<4x32xf32>
    %470 = arith.subf %457, %469 : vector<4x32xf32>
    %cst_158 = arith.constant 9.99999974E-6 : f32
    %471 = vector.broadcast %cst_158 : f32 to vector<4x1xf32>
    %472 = arith.addf %468, %471 : vector<4x1xf32>
    %473 = math.rsqrt %472 : vector<4x1xf32>
    %474 = vector.broadcast %473 : vector<4x1xf32> to vector<4x32xf32>
    %475 = arith.mulf %470, %474 : vector<4x32xf32>
    %476 = vector.broadcast %444 : vector<1x32xf32> to vector<4x32xf32>
    %477 = arith.mulf %475, %476 : vector<4x32xf32>
    %478 = vector.broadcast %445 : vector<1x32xf32> to vector<4x32xf32>
    %479 = arith.addf %477, %478 : vector<4x32xf32>
    %cst_159 = arith.constant dense<0.000000e+00> : vector<4x32xf32>
    %480 = tpu.matmul %479, %446, %cst_159 {dimension_numbers = #tpu.dot_dimension_numbers<[1], [0], [0], [1], [0, 0, 1, 1], [], []>} : vector<4x32xf32>, vector<32x32xf32>, vector<4x32xf32> -> vector<4x32xf32>
    %481 = tpu.transpose %480, [1, 0] : vector<4x32xf32> -> vector<32x4xf32>
    %cst_160 = arith.constant dense<0.000000e+00> : vector<16x4xf32>
    %482 = tpu.matmul %441, %481, %cst_160 {dimension_numbers = #tpu.dot_dimension_numbers<[1], [0], [0], [1], [0, 0, 1, 1], [], []>} : vector<16x32xf32>, vector<32x4xf32>, vector<16x4xf32> -> vector<16x4xf32>
    %cst_161 = arith.constant dense<0xFF800000> : vector<16xf32>
    %483 = vector.multi_reduction <maximumf>, %482, %cst_161 [1] : vector<16x4xf32> to vector<16xf32>
    %484 = vector.shape_cast %483 : vector<16xf32> to vector<16x1xf32>
    %485 = vector.broadcast %484 : vector<16x1xf32> to vector<16x4xf32>
    %486 = arith.subf %482, %485 : vector<16x4xf32>
    %487 = math.exp %486 : vector<16x4xf32>
    %cst_162 = arith.constant dense<0.000000e+00> : vector<16xf32>
    %488 = vector.multi_reduction <add>, %487, %cst_162 [1] : vector<16x4xf32> to vector<16xf32>
    %489 = vector.shape_cast %488 : vector<16xf32> to vector<16x1xf32>
    %490 = tpu.reciprocal %489 {approx = true} : vector<16x1xf32> -> vector<16x1xf32>
    %491 = vector.broadcast %490 : vector<16x1xf32> to vector<16x4xf32>
    %492 = arith.mulf %487, %491 : vector<16x4xf32>
    %cst_163 = arith.constant 9.99999993E-9 : f32
    %493 = vector.broadcast %cst_163 : f32 to vector<16x4xf32>
    %494 = arith.addf %492, %493 : vector<16x4xf32>
    %cst_164 = arith.constant dense<0.000000e+00> : vector<4xf32>
    %495 = vector.multi_reduction <add>, %494, %cst_164 [0] : vector<16x4xf32> to vector<4xf32>
    %496 = vector.shape_cast %495 : vector<4xf32> to vector<1x4xf32>
    %497 = tpu.reciprocal %496 {approx = true} : vector<1x4xf32> -> vector<1x4xf32>
    %498 = vector.broadcast %497 : vector<1x4xf32> to vector<16x4xf32>
    %499 = arith.mulf %494, %498 : vector<16x4xf32>
    %500 = tpu.transpose %499, [1, 0] : vector<16x4xf32> -> vector<4x16xf32>
    %cst_165 = arith.constant dense<0.000000e+00> : vector<4x32xf32>
    %501 = tpu.matmul %500, %443, %cst_165 {dimension_numbers = #tpu.dot_dimension_numbers<[1], [0], [0], [1], [0, 0, 1, 1], [], []>} : vector<4x16xf32>, vector<16x32xf32>, vector<4x32xf32> -> vector<4x32xf32>
    %cst_166 = arith.constant dense<0.000000e+00> : vector<4x96xf32>
    %502 = tpu.matmul %501, %447, %cst_166 {dimension_numbers = #tpu.dot_dimension_numbers<[1], [0], [0], [1], [0, 0, 1, 1], [], []>} : vector<4x32xf32>, vector<32x96xf32>, vector<4x96xf32> -> vector<4x96xf32>
    %503 = vector.broadcast %448 : vector<1x96xf32> to vector<4x96xf32>
    %504 = arith.addf %502, %503 : vector<4x96xf32>
    %cst_167 = arith.constant dense<0.000000e+00> : vector<4x96xf32>
    %505 = tpu.matmul %457, %449, %cst_167 {dimension_numbers = #tpu.dot_dimension_numbers<[1], [0], [0], [1], [0, 0, 1, 1], [], []>} : vector<4x32xf32>, vector<32x96xf32>, vector<4x96xf32> -> vector<4x96xf32>
    %506 = vector.broadcast %450 : vector<1x96xf32> to vector<4x96xf32>
    %507 = arith.addf %505, %506 : vector<4x96xf32>
    %508 = vector.extract_strided_slice %504 {offsets = [0, 0], sizes = [4, 32], strides = [1, 1]} : vector<4x96xf32> to vector<4x32xf32>
    %509 = vector.extract_strided_slice %507 {offsets = [0, 0], sizes = [4, 32], strides = [1, 1]} : vector<4x96xf32> to vector<4x32xf32>
    %510 = arith.addf %508, %509 : vector<4x32xf32>
    %511 = arith.negf %510 : vector<4x32xf32>
    %512 = math.exp %511 : vector<4x32xf32>
    %cst_168 = arith.constant 1.000000e+00 : f32
    %513 = vector.broadcast %cst_168 : f32 to vector<4x32xf32>
    %514 = arith.addf %513, %512 : vector<4x32xf32>
    %515 = arith.divf %513, %514 : vector<4x32xf32>
    %516 = vector.extract_strided_slice %504 {offsets = [0, 32], sizes = [4, 32], strides = [1, 1]} : vector<4x96xf32> to vector<4x32xf32>
    %517 = vector.extract_strided_slice %507 {offsets = [0, 32], sizes = [4, 32], strides = [1, 1]} : vector<4x96xf32> to vector<4x32xf32>
    %518 = arith.addf %516, %517 : vector<4x32xf32>
    %519 = arith.negf %518 : vector<4x32xf32>
    %520 = math.exp %519 : vector<4x32xf32>
    %cst_169 = arith.constant 1.000000e+00 : f32
    %521 = vector.broadcast %cst_169 : f32 to vector<4x32xf32>
    %522 = arith.addf %521, %520 : vector<4x32xf32>
    %523 = arith.divf %521, %522 : vector<4x32xf32>
    %524 = vector.extract_strided_slice %504 {offsets = [0, 64], sizes = [4, 32], strides = [1, 1]} : vector<4x96xf32> to vector<4x32xf32>
    %525 = vector.extract_strided_slice %507 {offsets = [0, 64], sizes = [4, 32], strides = [1, 1]} : vector<4x96xf32> to vector<4x32xf32>
    %526 = arith.mulf %515, %525 : vector<4x32xf32>
    %527 = arith.addf %524, %526 : vector<4x32xf32>
    %528 = math.tanh %527 : vector<4x32xf32>
    %cst_170 = arith.constant 1.000000e+00 : f32
    %529 = vector.broadcast %cst_170 : f32 to vector<4x32xf32>
    %530 = arith.subf %529, %523 : vector<4x32xf32>
    %531 = arith.mulf %530, %528 : vector<4x32xf32>
    %532 = arith.mulf %523, %457 : vector<4x32xf32>
    %533 = arith.addf %531, %532 : vector<4x32xf32>
    %cst_171 = arith.constant dense<0.000000e+00> : vector<4xf32>
    %534 = vector.multi_reduction <add>, %533, %cst_171 [1] : vector<4x32xf32> to vector<4xf32>
    %535 = vector.shape_cast %534 : vector<4xf32> to vector<4x1xf32>
    %cst_172 = arith.constant 3.200000e+01 : f32
    %536 = vector.broadcast %cst_172 : f32 to vector<4x1xf32>
    %537 = arith.divf %535, %536 : vector<4x1xf32>
    %538 = vector.broadcast %537 : vector<4x1xf32> to vector<4x32xf32>
    %539 = arith.subf %533, %538 : vector<4x32xf32>
    %540 = arith.mulf %539, %539 : vector<4x32xf32>
    %cst_173 = arith.constant dense<0.000000e+00> : vector<4xf32>
    %541 = vector.multi_reduction <add>, %540, %cst_173 [1] : vector<4x32xf32> to vector<4xf32>
    %542 = vector.shape_cast %541 : vector<4xf32> to vector<4x1xf32>
    %cst_174 = arith.constant 3.200000e+01 : f32
    %543 = vector.broadcast %cst_174 : f32 to vector<4x1xf32>
    %544 = arith.divf %542, %543 : vector<4x1xf32>
    %545 = vector.broadcast %537 : vector<4x1xf32> to vector<4x32xf32>
    %546 = arith.subf %533, %545 : vector<4x32xf32>
    %cst_175 = arith.constant 9.99999974E-6 : f32
    %547 = vector.broadcast %cst_175 : f32 to vector<4x1xf32>
    %548 = arith.addf %544, %547 : vector<4x1xf32>
    %549 = math.rsqrt %548 : vector<4x1xf32>
    %550 = vector.broadcast %549 : vector<4x1xf32> to vector<4x32xf32>
    %551 = arith.mulf %546, %550 : vector<4x32xf32>
    %552 = vector.broadcast %451 : vector<1x32xf32> to vector<4x32xf32>
    %553 = arith.mulf %551, %552 : vector<4x32xf32>
    %554 = vector.broadcast %452 : vector<1x32xf32> to vector<4x32xf32>
    %555 = arith.addf %553, %554 : vector<4x32xf32>
    %cst_176 = arith.constant dense<0.000000e+00> : vector<4x64xf32>
    %556 = tpu.matmul %555, %453, %cst_176 {dimension_numbers = #tpu.dot_dimension_numbers<[1], [0], [0], [1], [0, 0, 1, 1], [], []>} : vector<4x32xf32>, vector<32x64xf32>, vector<4x64xf32> -> vector<4x64xf32>
    %557 = vector.broadcast %454 : vector<1x64xf32> to vector<4x64xf32>
    %558 = arith.addf %556, %557 : vector<4x64xf32>
    %cst_177 = arith.constant 0.000000e+00 : f32
    %559 = vector.broadcast %cst_177 : f32 to vector<4x64xf32>
    %560 = arith.maximumf %558, %559 : vector<4x64xf32>
    %cst_178 = arith.constant dense<0.000000e+00> : vector<4x32xf32>
    %561 = tpu.matmul %560, %455, %cst_178 {dimension_numbers = #tpu.dot_dimension_numbers<[1], [0], [0], [1], [0, 0, 1, 1], [], []>} : vector<4x64xf32>, vector<64x32xf32>, vector<4x32xf32> -> vector<4x32xf32>
    %562 = arith.addf %533, %561 : vector<4x32xf32>
    %563 = vector.broadcast %456 : vector<1x32xf32> to vector<4x32xf32>
    %564 = arith.addf %562, %563 : vector<4x32xf32>
    %cst_179 = arith.constant dense<0.000000e+00> : vector<4xf32>
    %565 = vector.multi_reduction <add>, %564, %cst_179 [1] : vector<4x32xf32> to vector<4xf32>
    %566 = vector.shape_cast %565 : vector<4xf32> to vector<4x1xf32>
    %cst_180 = arith.constant 3.200000e+01 : f32
    %567 = vector.broadcast %cst_180 : f32 to vector<4x1xf32>
    %568 = arith.divf %566, %567 : vector<4x1xf32>
    %569 = vector.broadcast %568 : vector<4x1xf32> to vector<4x32xf32>
    %570 = arith.subf %564, %569 : vector<4x32xf32>
    %571 = arith.mulf %570, %570 : vector<4x32xf32>
    %cst_181 = arith.constant dense<0.000000e+00> : vector<4xf32>
    %572 = vector.multi_reduction <add>, %571, %cst_181 [1] : vector<4x32xf32> to vector<4xf32>
    %573 = vector.shape_cast %572 : vector<4xf32> to vector<4x1xf32>
    %cst_182 = arith.constant 3.200000e+01 : f32
    %574 = vector.broadcast %cst_182 : f32 to vector<4x1xf32>
    %575 = arith.divf %573, %574 : vector<4x1xf32>
    %576 = vector.broadcast %568 : vector<4x1xf32> to vector<4x32xf32>
    %577 = arith.subf %564, %576 : vector<4x32xf32>
    %cst_183 = arith.constant 9.99999974E-6 : f32
    %578 = vector.broadcast %cst_183 : f32 to vector<4x1xf32>
    %579 = arith.addf %575, %578 : vector<4x1xf32>
    %580 = math.rsqrt %579 : vector<4x1xf32>
    %581 = vector.broadcast %580 : vector<4x1xf32> to vector<4x32xf32>
    %582 = arith.mulf %577, %581 : vector<4x32xf32>
    %583 = vector.broadcast %444 : vector<1x32xf32> to vector<4x32xf32>
    %584 = arith.mulf %582, %583 : vector<4x32xf32>
    %585 = vector.broadcast %445 : vector<1x32xf32> to vector<4x32xf32>
    %586 = arith.addf %584, %585 : vector<4x32xf32>
    %cst_184 = arith.constant dense<0.000000e+00> : vector<4x32xf32>
    %587 = tpu.matmul %586, %446, %cst_184 {dimension_numbers = #tpu.dot_dimension_numbers<[1], [0], [0], [1], [0, 0, 1, 1], [], []>} : vector<4x32xf32>, vector<32x32xf32>, vector<4x32xf32> -> vector<4x32xf32>
    %588 = tpu.transpose %587, [1, 0] : vector<4x32xf32> -> vector<32x4xf32>
    %cst_185 = arith.constant dense<0.000000e+00> : vector<16x4xf32>
    %589 = tpu.matmul %441, %588, %cst_185 {dimension_numbers = #tpu.dot_dimension_numbers<[1], [0], [0], [1], [0, 0, 1, 1], [], []>} : vector<16x32xf32>, vector<32x4xf32>, vector<16x4xf32> -> vector<16x4xf32>
    %cst_186 = arith.constant dense<0xFF800000> : vector<16xf32>
    %590 = vector.multi_reduction <maximumf>, %589, %cst_186 [1] : vector<16x4xf32> to vector<16xf32>
    %591 = vector.shape_cast %590 : vector<16xf32> to vector<16x1xf32>
    %592 = vector.broadcast %591 : vector<16x1xf32> to vector<16x4xf32>
    %593 = arith.subf %589, %592 : vector<16x4xf32>
    %594 = math.exp %593 : vector<16x4xf32>
    %cst_187 = arith.constant dense<0.000000e+00> : vector<16xf32>
    %595 = vector.multi_reduction <add>, %594, %cst_187 [1] : vector<16x4xf32> to vector<16xf32>
    %596 = vector.shape_cast %595 : vector<16xf32> to vector<16x1xf32>
    %597 = tpu.reciprocal %596 {approx = true} : vector<16x1xf32> -> vector<16x1xf32>
    %598 = vector.broadcast %597 : vector<16x1xf32> to vector<16x4xf32>
    %599 = arith.mulf %594, %598 : vector<16x4xf32>
    %cst_188 = arith.constant 9.99999993E-9 : f32
    %600 = vector.broadcast %cst_188 : f32 to vector<16x4xf32>
    %601 = arith.addf %599, %600 : vector<16x4xf32>
    %cst_189 = arith.constant dense<0.000000e+00> : vector<4xf32>
    %602 = vector.multi_reduction <add>, %601, %cst_189 [0] : vector<16x4xf32> to vector<4xf32>
    %603 = vector.shape_cast %602 : vector<4xf32> to vector<1x4xf32>
    %604 = tpu.reciprocal %603 {approx = true} : vector<1x4xf32> -> vector<1x4xf32>
    %605 = vector.broadcast %604 : vector<1x4xf32> to vector<16x4xf32>
    %606 = arith.mulf %601, %605 : vector<16x4xf32>
    %607 = tpu.transpose %606, [1, 0] : vector<16x4xf32> -> vector<4x16xf32>
    %cst_190 = arith.constant dense<0.000000e+00> : vector<4x32xf32>
    %608 = tpu.matmul %607, %443, %cst_190 {dimension_numbers = #tpu.dot_dimension_numbers<[1], [0], [0], [1], [0, 0, 1, 1], [], []>} : vector<4x16xf32>, vector<16x32xf32>, vector<4x32xf32> -> vector<4x32xf32>
    %cst_191 = arith.constant dense<0.000000e+00> : vector<4x96xf32>
    %609 = tpu.matmul %608, %447, %cst_191 {dimension_numbers = #tpu.dot_dimension_numbers<[1], [0], [0], [1], [0, 0, 1, 1], [], []>} : vector<4x32xf32>, vector<32x96xf32>, vector<4x96xf32> -> vector<4x96xf32>
    %610 = vector.broadcast %448 : vector<1x96xf32> to vector<4x96xf32>
    %611 = arith.addf %609, %610 : vector<4x96xf32>
    %cst_192 = arith.constant dense<0.000000e+00> : vector<4x96xf32>
    %612 = tpu.matmul %564, %449, %cst_192 {dimension_numbers = #tpu.dot_dimension_numbers<[1], [0], [0], [1], [0, 0, 1, 1], [], []>} : vector<4x32xf32>, vector<32x96xf32>, vector<4x96xf32> -> vector<4x96xf32>
    %613 = vector.broadcast %450 : vector<1x96xf32> to vector<4x96xf32>
    %614 = arith.addf %612, %613 : vector<4x96xf32>
    %615 = vector.extract_strided_slice %611 {offsets = [0, 0], sizes = [4, 32], strides = [1, 1]} : vector<4x96xf32> to vector<4x32xf32>
    %616 = vector.extract_strided_slice %614 {offsets = [0, 0], sizes = [4, 32], strides = [1, 1]} : vector<4x96xf32> to vector<4x32xf32>
    %617 = arith.addf %615, %616 : vector<4x32xf32>
    %618 = arith.negf %617 : vector<4x32xf32>
    %619 = math.exp %618 : vector<4x32xf32>
    %cst_193 = arith.constant 1.000000e+00 : f32
    %620 = vector.broadcast %cst_193 : f32 to vector<4x32xf32>
    %621 = arith.addf %620, %619 : vector<4x32xf32>
    %622 = arith.divf %620, %621 : vector<4x32xf32>
    %623 = vector.extract_strided_slice %611 {offsets = [0, 32], sizes = [4, 32], strides = [1, 1]} : vector<4x96xf32> to vector<4x32xf32>
    %624 = vector.extract_strided_slice %614 {offsets = [0, 32], sizes = [4, 32], strides = [1, 1]} : vector<4x96xf32> to vector<4x32xf32>
    %625 = arith.addf %623, %624 : vector<4x32xf32>
    %626 = arith.negf %625 : vector<4x32xf32>
    %627 = math.exp %626 : vector<4x32xf32>
    %cst_194 = arith.constant 1.000000e+00 : f32
    %628 = vector.broadcast %cst_194 : f32 to vector<4x32xf32>
    %629 = arith.addf %628, %627 : vector<4x32xf32>
    %630 = arith.divf %628, %629 : vector<4x32xf32>
    %631 = vector.extract_strided_slice %611 {offsets = [0, 64], sizes = [4, 32], strides = [1, 1]} : vector<4x96xf32> to vector<4x32xf32>
    %632 = vector.extract_strided_slice %614 {offsets = [0, 64], sizes = [4, 32], strides = [1, 1]} : vector<4x96xf32> to vector<4x32xf32>
    %633 = arith.mulf %622, %632 : vector<4x32xf32>
    %634 = arith.addf %631, %633 : vector<4x32xf32>
    %635 = math.tanh %634 : vector<4x32xf32>
    %cst_195 = arith.constant 1.000000e+00 : f32
    %636 = vector.broadcast %cst_195 : f32 to vector<4x32xf32>
    %637 = arith.subf %636, %630 : vector<4x32xf32>
    %638 = arith.mulf %637, %635 : vector<4x32xf32>
    %639 = arith.mulf %630, %564 : vector<4x32xf32>
    %640 = arith.addf %638, %639 : vector<4x32xf32>
    %cst_196 = arith.constant dense<0.000000e+00> : vector<4xf32>
    %641 = vector.multi_reduction <add>, %640, %cst_196 [1] : vector<4x32xf32> to vector<4xf32>
    %642 = vector.shape_cast %641 : vector<4xf32> to vector<4x1xf32>
    %cst_197 = arith.constant 3.200000e+01 : f32
    %643 = vector.broadcast %cst_197 : f32 to vector<4x1xf32>
    %644 = arith.divf %642, %643 : vector<4x1xf32>
    %645 = vector.broadcast %644 : vector<4x1xf32> to vector<4x32xf32>
    %646 = arith.subf %640, %645 : vector<4x32xf32>
    %647 = arith.mulf %646, %646 : vector<4x32xf32>
    %cst_198 = arith.constant dense<0.000000e+00> : vector<4xf32>
    %648 = vector.multi_reduction <add>, %647, %cst_198 [1] : vector<4x32xf32> to vector<4xf32>
    %649 = vector.shape_cast %648 : vector<4xf32> to vector<4x1xf32>
    %cst_199 = arith.constant 3.200000e+01 : f32
    %650 = vector.broadcast %cst_199 : f32 to vector<4x1xf32>
    %651 = arith.divf %649, %650 : vector<4x1xf32>
    %652 = vector.broadcast %644 : vector<4x1xf32> to vector<4x32xf32>
    %653 = arith.subf %640, %652 : vector<4x32xf32>
    %cst_200 = arith.constant 9.99999974E-6 : f32
    %654 = vector.broadcast %cst_200 : f32 to vector<4x1xf32>
    %655 = arith.addf %651, %654 : vector<4x1xf32>
    %656 = math.rsqrt %655 : vector<4x1xf32>
    %657 = vector.broadcast %656 : vector<4x1xf32> to vector<4x32xf32>
    %658 = arith.mulf %653, %657 : vector<4x32xf32>
    %659 = vector.broadcast %451 : vector<1x32xf32> to vector<4x32xf32>
    %660 = arith.mulf %658, %659 : vector<4x32xf32>
    %661 = vector.broadcast %452 : vector<1x32xf32> to vector<4x32xf32>
    %662 = arith.addf %660, %661 : vector<4x32xf32>
    %cst_201 = arith.constant dense<0.000000e+00> : vector<4x64xf32>
    %663 = tpu.matmul %662, %453, %cst_201 {dimension_numbers = #tpu.dot_dimension_numbers<[1], [0], [0], [1], [0, 0, 1, 1], [], []>} : vector<4x32xf32>, vector<32x64xf32>, vector<4x64xf32> -> vector<4x64xf32>
    %664 = vector.broadcast %454 : vector<1x64xf32> to vector<4x64xf32>
    %665 = arith.addf %663, %664 : vector<4x64xf32>
    %cst_202 = arith.constant 0.000000e+00 : f32
    %666 = vector.broadcast %cst_202 : f32 to vector<4x64xf32>
    %667 = arith.maximumf %665, %666 : vector<4x64xf32>
    %cst_203 = arith.constant dense<0.000000e+00> : vector<4x32xf32>
    %668 = tpu.matmul %667, %455, %cst_203 {dimension_numbers = #tpu.dot_dimension_numbers<[1], [0], [0], [1], [0, 0, 1, 1], [], []>} : vector<4x64xf32>, vector<64x32xf32>, vector<4x32xf32> -> vector<4x32xf32>
    %669 = arith.addf %640, %668 : vector<4x32xf32>
    %670 = vector.broadcast %456 : vector<1x32xf32> to vector<4x32xf32>
    %671 = arith.addf %669, %670 : vector<4x32xf32>
    %c0_204 = arith.constant 0 : index
    %c0_205 = arith.constant 0 : index
    %c0_206 = arith.constant 0 : index
    %672 = vector.load %arg3[%c0_204, %c0_205, %c0_206] : memref<1x4x32xf32, #tpu.memory_space<vmem>>, vector<1x4x32xf32>
    %673 = vector.shape_cast %672 : vector<1x4x32xf32> to vector<4x32xf32>
    %674 = vector.shape_cast %671 : vector<4x32xf32> to vector<1x4x32xf32>
    tpu.vector_store %arg3[%c0_204, %c0_205, %c0_206], %674 {strides = array<i32>} : memref<1x4x32xf32, #tpu.memory_space<vmem>>, vector<1x4x32xf32>,
    %675 = tpu.transpose %599, [1, 0] : vector<16x4xf32> -> vector<4x16xf32>
    %c0_207 = arith.constant 0 : index
    %c0_208 = arith.constant 0 : index
    %c0_209 = arith.constant 0 : index
    %676 = vector.load %arg4[%c0_207, %c0_208, %c0_209] : memref<1x4x16xf32, #tpu.memory_space<vmem>>, vector<1x4x16xf32>
    %677 = vector.shape_cast %676 : vector<1x4x16xf32> to vector<4x16xf32>
    %678 = vector.shape_cast %675 : vector<4x16xf32> to vector<1x4x16xf32>
    tpu.vector_store %arg4[%c0_207, %c0_208, %c0_209], %678 {strides = array<i32>} : memref<1x4x16xf32, #tpu.memory_space<vmem>>, vector<1x4x16xf32>,
    %c0_210 = arith.constant 0 : index
    %c0_211 = arith.constant 0 : index
    %c0_212 = arith.constant 0 : index
    %679 = vector.load %arg5[%c0_210, %c0_211, %c0_212] : memref<1x16x4xf32, #tpu.memory_space<vmem>>, vector<1x16x4xf32>
    %680 = vector.shape_cast %679 : vector<1x16x4xf32> to vector<16x4xf32>
    %681 = vector.shape_cast %589 : vector<16x4xf32> to vector<1x16x4xf32>
    tpu.vector_store %arg5[%c0_210, %c0_211, %c0_212], %681 {strides = array<i32>} : memref<1x16x4xf32, #tpu.memory_space<vmem>>, vector<1x16x4xf32>,
    %c1120 = arith.constant 1120 : index
    %c0_213 = arith.constant 0 : index
    %682 = vector.load %arg2[%c1120, %c0_213] : memref<1368x128xf32, #tpu.memory_space<vmem>>, vector<32x32xf32>
    %cst_214 = arith.constant dense<0.000000e+00> : vector<4x32xf32>
    %683 = tpu.matmul %671, %682, %cst_214 {dimension_numbers = #tpu.dot_dimension_numbers<[1], [0], [0], [1], [0, 0, 1, 1], [], []>} : vector<4x32xf32>, vector<32x32xf32>, vector<4x32xf32> -> vector<4x32xf32>
    %c1152 = arith.constant 1152 : index
    %c0_215 = arith.constant 0 : index
    %684 = vector.load %arg2[%c1152, %c0_215] : memref<1368x128xf32, #tpu.memory_space<vmem>>, vector<1x32xf32>
    %c1160 = arith.constant 1160 : index
    %c0_216 = arith.constant 0 : index
    %685 = vector.load %arg2[%c1160, %c0_216] : memref<1368x128xf32, #tpu.memory_space<vmem>>, vector<1x32xf32>
    %cst_217 = arith.constant dense<0.000000e+00> : vector<4xf32>
    %686 = vector.multi_reduction <add>, %683, %cst_217 [1] : vector<4x32xf32> to vector<4xf32>
    %687 = vector.shape_cast %686 : vector<4xf32> to vector<4x1xf32>
    %cst_218 = arith.constant 3.200000e+01 : f32
    %688 = vector.broadcast %cst_218 : f32 to vector<4x1xf32>
    %689 = arith.divf %687, %688 : vector<4x1xf32>
    %690 = vector.broadcast %689 : vector<4x1xf32> to vector<4x32xf32>
    %691 = arith.subf %683, %690 : vector<4x32xf32>
    %692 = arith.mulf %691, %691 : vector<4x32xf32>
    %cst_219 = arith.constant dense<0.000000e+00> : vector<4xf32>
    %693 = vector.multi_reduction <add>, %692, %cst_219 [1] : vector<4x32xf32> to vector<4xf32>
    %694 = vector.shape_cast %693 : vector<4xf32> to vector<4x1xf32>
    %cst_220 = arith.constant 3.200000e+01 : f32
    %695 = vector.broadcast %cst_220 : f32 to vector<4x1xf32>
    %696 = arith.divf %694, %695 : vector<4x1xf32>
    %697 = vector.broadcast %689 : vector<4x1xf32> to vector<4x32xf32>
    %698 = arith.subf %683, %697 : vector<4x32xf32>
    %cst_221 = arith.constant 9.99999974E-6 : f32
    %699 = vector.broadcast %cst_221 : f32 to vector<4x1xf32>
    %700 = arith.addf %696, %699 : vector<4x1xf32>
    %701 = math.rsqrt %700 : vector<4x1xf32>
    %702 = vector.broadcast %701 : vector<4x1xf32> to vector<4x32xf32>
    %703 = arith.mulf %698, %702 : vector<4x32xf32>
    %704 = vector.broadcast %684 : vector<1x32xf32> to vector<4x32xf32>
    %705 = arith.mulf %703, %704 : vector<4x32xf32>
    %706 = vector.broadcast %685 : vector<1x32xf32> to vector<4x32xf32>
    %707 = arith.addf %705, %706 : vector<4x32xf32>
    %c1168 = arith.constant 1168 : index
    %c0_222 = arith.constant 0 : index
    %708 = vector.load %arg2[%c1168, %c0_222] : memref<1368x128xf32, #tpu.memory_space<vmem>>, vector<16x32xf32>
    %709 = vector.shape_cast %707 : vector<4x32xf32> to vector<4x1x32xf32>
    %710 = vector.shape_cast %708 : vector<16x32xf32> to vector<1x16x32xf32>
    %711 = vector.broadcast %709 : vector<4x1x32xf32> to vector<4x16x32xf32>
    %712 = vector.broadcast %710 : vector<1x16x32xf32> to vector<4x16x32xf32>
    %713 = arith.addf %711, %712 : vector<4x16x32xf32>
    %714 = vector.shape_cast %713 : vector<4x16x32xf32> to vector<64x32xf32>
    %c1184 = arith.constant 1184 : index
    %c0_223 = arith.constant 0 : index
    %715 = vector.load %arg2[%c1184, %c0_223] : memref<1368x128xf32, #tpu.memory_space<vmem>>, vector<32x64xf32>
    %cst_224 = arith.constant dense<0.000000e+00> : vector<64x64xf32>
    %716 = tpu.matmul %714, %715, %cst_224 {dimension_numbers = #tpu.dot_dimension_numbers<[1], [0], [0], [1], [0, 0, 1, 1], [], []>} : vector<64x32xf32>, vector<32x64xf32>, vector<64x64xf32> -> vector<64x64xf32>
    %c1216 = arith.constant 1216 : index
    %c0_225 = arith.constant 0 : index
    %717 = vector.load %arg2[%c1216, %c0_225] : memref<1368x128xf32, #tpu.memory_space<vmem>>, vector<1x64xf32>
    %718 = vector.broadcast %717 : vector<1x64xf32> to vector<64x64xf32>
    %719 = arith.addf %716, %718 : vector<64x64xf32>
    %cst_226 = arith.constant 0.000000e+00 : f32
    %720 = vector.broadcast %cst_226 : f32 to vector<64x64xf32>
    %721 = arith.maximumf %719, %720 : vector<64x64xf32>
    %c1224 = arith.constant 1224 : index
    %c0_227 = arith.constant 0 : index
    %722 = vector.load %arg2[%c1224, %c0_227] : memref<1368x128xf32, #tpu.memory_space<vmem>>, vector<64x64xf32>
    %cst_228 = arith.constant dense<0.000000e+00> : vector<64x64xf32>
    %723 = tpu.matmul %721, %722, %cst_228 {dimension_numbers = #tpu.dot_dimension_numbers<[1], [0], [0], [1], [0, 0, 1, 1], [], []>} : vector<64x64xf32>, vector<64x64xf32>, vector<64x64xf32> -> vector<64x64xf32>
    %c1288 = arith.constant 1288 : index
    %c0_229 = arith.constant 0 : index
    %724 = vector.load %arg2[%c1288, %c0_229] : memref<1368x128xf32, #tpu.memory_space<vmem>>, vector<1x64xf32>
    %725 = vector.broadcast %724 : vector<1x64xf32> to vector<64x64xf32>
    %726 = arith.addf %723, %725 : vector<64x64xf32>
    %cst_230 = arith.constant 0.000000e+00 : f32
    %727 = vector.broadcast %cst_230 : f32 to vector<64x64xf32>
    %728 = arith.maximumf %726, %727 : vector<64x64xf32>
    %c1296 = arith.constant 1296 : index
    %c0_231 = arith.constant 0 : index
    %729 = vector.load %arg2[%c1296, %c0_231] : memref<1368x128xf32, #tpu.memory_space<vmem>>, vector<64x33xf32>
    %cst_232 = arith.constant dense<0.000000e+00> : vector<64x33xf32>
    %730 = tpu.matmul %728, %729, %cst_232 {dimension_numbers = #tpu.dot_dimension_numbers<[1], [0], [0], [1], [0, 0, 1, 1], [], []>} : vector<64x64xf32>, vector<64x33xf32>, vector<64x33xf32> -> vector<64x33xf32>
    %c1360 = arith.constant 1360 : index
    %c0_233 = arith.constant 0 : index
    %731 = vector.load %arg2[%c1360, %c0_233] : memref<1368x128xf32, #tpu.memory_space<vmem>>, vector<1x33xf32>
    %732 = vector.broadcast %731 : vector<1x33xf32> to vector<64x33xf32>
    %733 = arith.addf %730, %732 : vector<64x33xf32>
    %734 = vector.shape_cast %733 : vector<64x33xf32> to vector<4x16x33xf32>
    %735 = vector.extract_strided_slice %734 {offsets = [0, 0, 0], sizes = [4, 16, 32], strides = [1, 1, 1]} : vector<4x16x33xf32> to vector<4x16x32xf32>
    %736 = vector.extract_strided_slice %734 {offsets = [0, 0, 32], sizes = [4, 16, 1], strides = [1, 1, 1]} : vector<4x16x33xf32> to vector<4x16x1xf32>
    %cst_234 = arith.constant dense<0xFF800000> : vector<16x1xf32>
    %737 = vector.multi_reduction <maximumf>, %736, %cst_234 [0] : vector<4x16x1xf32> to vector<16x1xf32>
    %738 = vector.shape_cast %737 : vector<16x1xf32> to vector<1x16x1xf32>
    %739 = vector.broadcast %738 : vector<1x16x1xf32> to vector<4x16x1xf32>
    %740 = arith.subf %736, %739 : vector<4x16x1xf32>
    %741 = math.exp %740 : vector<4x16x1xf32>
    %cst_235 = arith.constant dense<0.000000e+00> : vector<16x1xf32>
    %742 = vector.multi_reduction <add>, %741, %cst_235 [0] : vector<4x16x1xf32> to vector<16x1xf32>
    %743 = vector.shape_cast %742 : vector<16x1xf32> to vector<1x16x1xf32>
    %744 = tpu.reciprocal %743 {approx = true} : vector<1x16x1xf32> -> vector<1x16x1xf32>
    %745 = vector.broadcast %744 : vector<1x16x1xf32> to vector<4x16x1xf32>
    %746 = arith.mulf %741, %745 : vector<4x16x1xf32>
    %747 = vector.broadcast %746 : vector<4x16x1xf32> to vector<4x16x32xf32>
    %748 = arith.mulf %747, %735 : vector<4x16x32xf32>
    %cst_236 = arith.constant dense<0.000000e+00> : vector<16x32xf32>
    %749 = vector.multi_reduction <add>, %748, %cst_236 [0] : vector<4x16x32xf32> to vector<16x32xf32>
    %c0_237 = arith.constant 0 : index
    %c0_238 = arith.constant 0 : index
    %c0_239 = arith.constant 0 : index
    %750 = vector.load %arg6[%c0_237, %c0_238, %c0_239] : memref<1x16x32xf32, #tpu.memory_space<vmem>>, vector<1x16x32xf32>
    %751 = vector.shape_cast %750 : vector<1x16x32xf32> to vector<16x32xf32>
    %752 = vector.shape_cast %749 : vector<16x32xf32> to vector<1x16x32xf32>
    tpu.vector_store %arg6[%c0_237, %c0_238, %c0_239], %752 {strides = array<i32>} : memref<1x16x32xf32, #tpu.memory_space<vmem>>, vector<1x16x32xf32>,
    %c0_240 = arith.constant 0 : index
    %c0_241 = arith.constant 0 : index
    %c0_242 = arith.constant 0 : index
    %c0_243 = arith.constant 0 : index
    %753 = vector.load %arg7[%c0_240, %c0_241, %c0_242, %c0_243] : memref<1x4x16x1xf32, #tpu.memory_space<vmem>>, vector<1x4x16x1xf32>
    %754 = vector.shape_cast %753 : vector<1x4x16x1xf32> to vector<4x16x1xf32>
    %755 = vector.shape_cast %746 : vector<4x16x1xf32> to vector<1x4x16x1xf32>
    tpu.vector_store %arg7[%c0_240, %c0_241, %c0_242, %c0_243], %755 {strides = array<i32>} : memref<1x4x16x1xf32, #tpu.memory_space<vmem>>, vector<1x4x16x1xf32>,
    %756 = arith.subf %377, %749 : vector<16x32xf32>
    %757 = arith.mulf %756, %756 : vector<16x32xf32>
    %cst_244 = arith.constant dense<0.000000e+00> : vector<16xf32>
    %758 = vector.multi_reduction <add>, %757, %cst_244 [1] : vector<16x32xf32> to vector<16xf32>
    %759 = vector.shape_cast %758 : vector<16xf32> to vector<16x1xf32>
    %cst_245 = arith.constant dense<0.000000e+00> : vector<1xf32>
    %760 = vector.multi_reduction <add>, %759, %cst_245 [0] : vector<16x1xf32> to vector<1xf32>
    %761 = vector.shape_cast %760 : vector<1xf32> to vector<1x1xf32>
    %c0_246 = arith.constant 0 : index
    %c0_247 = arith.constant 0 : index
    %c0_248 = arith.constant 0 : index
    %762 = vector.load %arg8[%c0_246, %c0_247, %c0_248] : memref<1x1x1xf32, #tpu.memory_space<vmem>>, vector<1x1x1xf32>
    %763 = vector.shape_cast %762 : vector<1x1x1xf32> to vector<1x1xf32>
    %764 = vector.shape_cast %761 : vector<1x1xf32> to vector<1x1x1xf32>
    tpu.vector_store %arg8[%c0_246, %c0_247, %c0_248], %764 {strides = array<i32>} : memref<1x1x1xf32, #tpu.memory_space<vmem>>, vector<1x1x1xf32>,
    return
  }
  func.func @transform_0(%arg0: i32) -> (i32, i32, i32) {
    %c0_i32 = arith.constant 0 : i32
    %c0_i32_0 = arith.constant 0 : i32
    %c0_i32_1 = arith.constant 0 : i32
    return %arg0, %c0_i32, %c0_i32_0 : i32, i32, i32
  }
  func.func @transform_1(%arg0: i32) -> (i32, i32) {
    %c0_i32 = arith.constant 0 : i32
    %c0_i32_0 = arith.constant 0 : i32
    %c0_i32_1 = arith.constant 0 : i32
    return %c0_i32, %c0_i32_0 : i32, i32
  }
  func.func @transform_2(%arg0: i32) -> (i32, i32, i32) {
    %c0_i32 = arith.constant 0 : i32
    %c0_i32_0 = arith.constant 0 : i32
    %c0_i32_1 = arith.constant 0 : i32
    return %arg0, %c0_i32, %c0_i32_0 : i32, i32, i32
  }
  func.func @transform_3(%arg0: i32) -> (i32, i32, i32) {
    %c0_i32 = arith.constant 0 : i32
    %c0_i32_0 = arith.constant 0 : i32
    %c0_i32_1 = arith.constant 0 : i32
    return %arg0, %c0_i32, %c0_i32_0 : i32, i32, i32
  }
  func.func @transform_4(%arg0: i32) -> (i32, i32, i32) {
    %c0_i32 = arith.constant 0 : i32
    %c0_i32_0 = arith.constant 0 : i32
    %c0_i32_1 = arith.constant 0 : i32
    return %arg0, %c0_i32, %c0_i32_0 : i32, i32, i32
  }
  func.func @transform_5(%arg0: i32) -> (i32, i32, i32) {
    %c0_i32 = arith.constant 0 : i32
    %c0_i32_0 = arith.constant 0 : i32
    %c0_i32_1 = arith.constant 0 : i32
    return %arg0, %c0_i32, %c0_i32_0 : i32, i32, i32
  }
  func.func @transform_6(%arg0: i32) -> (i32, i32, i32, i32) {
    %c0_i32 = arith.constant 0 : i32
    %c0_i32_0 = arith.constant 0 : i32
    %c0_i32_1 = arith.constant 0 : i32
    %c0_i32_2 = arith.constant 0 : i32
    return %arg0, %c0_i32, %c0_i32_0, %c0_i32_1 : i32, i32, i32, i32
  }
  func.func @transform_7(%arg0: i32) -> (i32, i32, i32) {
    %c0_i32 = arith.constant 0 : i32
    %c0_i32_0 = arith.constant 0 : i32
    %c0_i32_1 = arith.constant 0 : i32
    return %arg0, %c0_i32, %c0_i32_0 : i32, i32, i32
  }
}

</mosaic_0001>

<bundles_post_ra>
// kernel: spot_forward.1
= control target key start
LH: loop header
LB: loop body
LE: loop exit
PB: predicated region body
PF: predicated region fallthrough
CT: control target
= control target key end

     0   :  { %s6873_s0 = inlined_call_operand.vmem [shape: f32[2,16,48], index: 0, kind: input, shape index: {}]   ;;  %s6874_s1 = inlined_call_operand.vmem [shape: f32[1368,128], index: 1, kind: input, shape index: {}]   ;;  %s6875_s2 = inlined_call_operand.hbm [shape: f32[2,4,32], index: 2, kind: output, shape index: {0}]   ;;  %s6876_s3 = inlined_call_operand.vmem [shape: f32[2,4,16], index: 3, kind: output, shape index: {1}]   ;;  %s6877_s4 = inlined_call_operand.vmem [shape: f32[2,16,4], index: 4, kind: output, shape index: {2}]   ;;  %s6878_s5 = inlined_call_operand.hbm [shape: f32[2,16,32], index: 5, kind: output, shape index: {3}]   ;;  %s6879_s6 = inlined_call_operand.vmem [shape: f32[2,4,16,1], index: 6, kind: output, shape index: {4}]   ;;  %s6880_s7 = inlined_call_operand.vmem [shape: f32[2,1,1], index: 7, kind: output, shape index: {5}]  }
   0x1   :  { %6882 = sst [smem:[#allocation9_spill]] %s6873_s0 }
   0x2   :  { %6883 = sst [smem:[#allocation10_spill]] %s6874_s1 }
   0x3   :  { %6884 = sst [smem:[#allocation11_spill]] %s6877_s4 }
   0x4   :  { %6885 = sst [smem:[#allocation12_spill]] %s6879_s6 }
   0x5   :  { %13 = vsyncpa [#allocation3], 0 }
   0x6   :  { %15 = vsyncpa [#allocation3 + $0x1], 0 }
   0x7   :  { %16 = vsyncpa [#allocation5], 0 }
   0x8   :  { %18 = vsyncpa [#allocation5 + $0x1], 0  ;;  %s5175_s24 = smov 0   ;;  %s5177_s25 = smov 0  }
   0x9   :  { %s5179_s26 = smov 0   ;;  %s5181_s27 = smov 0  }
   0xa LB: > { %s5196_s28 = sadd.s32 4294967295, %s5123_s27   ;;  %s4474_s29 = sadd.s32 4294967294, %s5123_s27   ;;  %s5123_s27 = sphi %s5181_s27, %s6898_s27   ;;  %s5119_s26 = sphi %s5179_s26, %s6897_s26   ;;  %s5115_s25 = sphi %s5177_s25, %s6896_s25   ;;  %s5111_s24 = sphi %s5175_s24, %s6895_s24  }
   0xb   : > { %s5200_s30 = sadd.s32 1, %s5123_s27   ;;  %s78_s8 = sadd.s32 1, %s5119_s26 }
   0xc   : > { %s75_s9 = ssub.s32 %s5123_s27, %s5200_s30  ;;  %p88_p0 = scmp.ne.s32.totalorder %s5119_s26, %s5115_s25 }
   0xd   : > { %p76_p1 = scmp.eq.s32.totalorder %s75_s9, 0  ;;  %p89_p2 = scmp.eq.s32.totalorder %s5196_s28, 1 }
   0xe   : > { %p94_p3 = scmp.ne.s32.totalorder %s5115_s25, %s5111_s24  ;;  %p95_p4 = scmp.eq.s32.totalorder %s4474_s29, 1 }
   0xf   : > { %s5211_s10 = scalar_select %p76_p1, %s5119_s26, %s78_s8  }
  0x10   : > { %p5213_p5 = por %p89_p2, %p88_p0  ;;  %p5217_p6 = por %p95_p4, %p94_p3 }
  0x11   : > { %6886 = sst [smem:[#allocation8_spill]] %s5211_s10  ;;  %p4477_p7 = scmp.ge.s32.totalorder %s5123_s27, 1 }
  0x12   : > { %p254_p8 = scmp.lt.s32.totalorder %s5123_s27, 3 }
  0x14   : > { %p255_p9 = pnand %p4477_p7, %p254_p8 }
  0x15   : > { %s6889_s1 = sld [smem:[#allocation10_spill]] (!%p255_p9)  ;;  %p308_p10 = scmp.lt.s32.totalorder (!%p255_p9), %s5196_s28, 1 }
  0x16   : > { %258 = sbr.rel (%p255_p9) target bundleno = 11649 (0x2d81), region = 28  ;;  %s6890_s0 = sld [smem:[#allocation9_spill]] (!%p255_p9) }
  0x17   : > { %s5126_s16 = smov (!%p255_p9), 120   ;;  %s5127_s17 = smov (!%p255_p9), 112  }
  0x18   : > { %s5128_s18 = smov (!%p255_p9), 104   ;;  %s5129_s20 = smov (!%p255_p9), 96  }
  0x19   : > { %s5130_s21 = smov (!%p255_p9), 64   ;;  %s5131_s29 = smov (!%p255_p9), 32  }
  0x1a   : > { %s6892_s4 = sld [smem:[#allocation11_spill]] (!%p255_p9) }
  0x1b   : > { %v337_v0 = vld [vmem:[%s6889_s1 + $0x28] sm:$0xff]  ;;  %v336_v1 = vld [vmem:[%s6889_s1 + $0x20] sm:$0xff]  ;;  %v335_v2 = vld [vmem:[%s6889_s1 + $0x18] sm:$0xff]  ;;  %s5234_s19 = scalar_select %p308_p10, %s5196_s28, 1  ;;  %vm340_vm0 = vcmask 392192   ;;  %vm373_vm1 = vcmask 1040384  }
  0x1c   : > { %357 = vmatpush.msra.mxu0 %v337_v0  ;;  %v334_v3 = vld [vmem:[%s6889_s1 + $0x10] sm:$0xff]  ;;  %v333_v4 = vld [vmem:[%s6889_s1 + $0x8] sm:$0xff]  ;;  %v332_v5 = vld [vmem:[%s6889_s1] sm:$0xff]  ;;  %vm389_vm2 = vcmask 261120   ;;  %vm396_vm3 = vcmask 253952   ;;  %v5125_v27 = vmov 32.0  }
  0x1d   : > { %s6881_s22 = sshll.u32 %s5234_s19, 4  ;;  %v4767_v8 = vld [vmem:[%s6889_s1 + $0x30] ss:$0 sm:$0xff]  ;;  %v370_v11 = vld [vmem:[%s6889_s1 + $0x38] sm:$0x1]  ;;  %v381_v13 = vld [vmem:[%s6889_s1 + $0x40] sm:$0xff]  ;;  %4805 = vrcp.f32 %v5125_v27 }
  0x1e   : > { %358 = vmatpush.msra.mxu0 %v336_v1  ;;  %s312_s8 = scalar_lea.vmem %s6890_s0, %s6881_s22  ;;  %v383_v19 = vld [vmem:[%s6889_s1 + $0x50] sm:$0x1]  ;;  %v382_v21 = vld [vmem:[%s6889_s1 + $0x48] sm:$0xff]  ;;  %v475_v49 = vld [vmem:[%s6889_s1 + $0x80] sm:$0xff]  ;;  %vm540_vm14 = vcmask 64512   ;;  %vm723_vm15 = vcmask 138240  }
  0x1f   : > { %v330_v6 = vld [vmem:[%s312_s8] sm:$0xff]  ;;  %v331_v7 = vld [vmem:[%s312_s8 + $0x8] sm:$0xff]  ;;  %499 = vmatpush.msra.mxu3 %v475_v49  ;;  %v474_v50 = vld [vmem:[%s6889_s1 + $0x78] sm:$0xff]  ;;  %s6891_s23 = sshll.u32 %s5234_s19, 4  ;;  %s4667_s13 = sshll.u32 %s5234_s19, 6 }
  0x20   : > { %359 = vmatpush.msra.mxu0 %v335_v2  ;;  %v473_v51 = vld [vmem:[%s6889_s1 + $0x70] sm:$0xff]  ;;  %v472_v52 = vld [vmem:[%s6889_s1 + $0x68] sm:$0xff]  ;;  %s6893_s6 = sld [smem:[#allocation12_spill]] }
  0x21   : > { %500 = vmatpush.msra.mxu3 %v474_v50 }
  0x22   : > { %360 = vmatpush.msra.mxu0 %v334_v3 }
  0x23   : > { %v4806_v28 = vpop.eup %4805  ;;  %501 = vmatpush.msra.mxu3 %v473_v51 }
  0x24   : > { %361 = vmatpush.msra.mxu0 %v333_v4  ;;  %v401_v29 = vmul.f32 32.0, %v4806_v28  ;;  %vm405_vm4 = vweird.f32 %v4806_v28 }
  0x25   : > { %502 = vmatpush.msra.mxu3 %v472_v52 }
  0x26   : > { %362 = vmatpush.msra.mxu0 %v332_v5  ;;  %v402_v30 = vsub.f32 1.0, %v401_v29  ;;  %s6760_s15 = scalar_lea.vmem %s6893_s6, %s4667_s13 }
  0x27   : > { %4487 = vmatmul.msk.f32.vlgmr.msra.gmra.mxu0 %vm340_vm0, %v330_v6  ;;  %v4768_v6 = vld [vmem:[%s6889_s1 + $0x58] ss:$0 sm:$0xff] }
  0x28   : > { %v403_v31 = vmul.f32 %v4806_v28, %v402_v30 }
  0x2a   : > { %v404_v32 = vadd.f32 %v4806_v28, %v403_v31 }
  0x2c   : > { %v5280_v33 = vsel %vm405_vm4, %v4806_v28, %v404_v32 }
  0x2f   : > { %4488 = vmatmul.msk.f32.gmra.mxu0 %vm340_vm0, %v331_v7  ;;  %vm730_vm0 = vcmask 131072  }
  0xa4   : > { %v364_v9 = vpop.f32.mrf.mxu0 }
  0xa5   : > { %v365_v10 = vadd.f32 %v4767_v8, %v364_v9 }
  0xa7   : > { %v374_v12 = vrot.slane %v365_v10, 7  ;;  %v4769_v10 = vld [vmem:[%s6889_s1 + $0x60] ss:$0 sm:$0xff] }
  0xa9   : > { %v380_v14 = vsel %vm373_vm1, %v370_v11, %v374_v12 }
  0xaa   : > { %v5261_v15 = vadd.f32 %v381_v13, %v380_v14 }
  0xac   : > { %v367_v16 = vpop.f32.mrf.mxu0  ;;  %v390_v17 = vsel %vm389_vm2, %v5261_v15, 0.0 }
  0xad   : > { %v368_v18 = vadd.f32 %v4767_v8, %v367_v16  ;;  %391 = vadd.xlane.f32.xlu0 %v390_v17 }
  0xaf   : > { %v375_v20 = vrot.slane %v368_v18, 7 }
  0xb1   : > { %v5271_v22 = vadd.f32 %v383_v19, %v375_v20  ;;  %v376_v23 = vsel %vm373_vm1, %v374_v12, %v375_v20 }
  0xb2   : > { %v5274_v24 = vadd.f32 %v382_v21, %v376_v23 }
  0xb3   : > { %v397_v25 = vsel %vm396_vm3, %v5271_v22, 0.0 }
  0xb4   : > { %398 = vadd.xlane.f32.xlu1 %v397_v25  ;;  %v393_v26 = vsel %vm389_vm2, %v5274_v24, 0.0 }
  0xb5   : > { %394 = vadd.xlane.f32.xlu0 %v393_v26 }
 0x120   : > { %v392_v34 = vpop.xlane.xlu0 %391 }
 0x121   : > { %v407_v35 = vmul.f32 %v5280_v33, %v392_v34  ;;  %v4770_v34 = vld [vmem:[%s6889_s1 + $0x88] ss:$0 sm:$0xff] }
 0x123   : > { %v410_v36 = vsub.f32 %v5261_v15, %v407_v35 }
 0x125   : > { %v413_v37 = vmul.f32 %v410_v36, %v410_v36 }
 0x127   : > { %v416_v38 = vsel %vm389_vm2, %v413_v37, 0.0  ;;  %v399_v39 = vpop.xlane.xlu1 %398 }
 0x128   : > { %417 = vadd.xlane.f32.xlu1 %v416_v38  ;;  %v395_v40 = vpop.xlane.xlu0 %394  ;;  %v409_v42 = vmul.f32 %v5280_v33, %v399_v39 }
 0x129   : > { %v408_v41 = vmul.f32 %v5280_v33, %v395_v40 }
 0x12a   : > { %v5289_v45 = vsub.f32 %v5271_v22, %v409_v42 }
 0x12b   : > { %v411_v43 = vsub.f32 %v5274_v24, %v408_v41 }
 0x12c   : > { %v415_v47 = vmul.f32 %v5289_v45, %v5289_v45 }
 0x12d   : > { %v414_v44 = vmul.f32 %v411_v43, %v411_v43 }
 0x12e   : > { %v422_v48 = vsel %vm396_vm3, %v415_v47, 0.0 }
 0x12f   : > { %v419_v46 = vsel %vm389_vm2, %v414_v44, 0.0 }
 0x130   : > { %420 = vadd.xlane.f32.xlu2 %v419_v46 }
 0x138   : > { %423 = vadd.xlane.f32.xlu2 %v422_v48 }
 0x19b   : > { %v418_v53 = vpop.xlane.xlu1 %417 }
 0x19c   : > { %v425_v54 = vmul.f32 %v418_v53, %v5280_v33 }
 0x19e   : > { %v428_v55 = vadd.f32 1e-05, %v425_v54 }
 0x1a0   : > { %4807 = vrsqrt.f32 %v428_v55  ;;  %vm437_vm6 = vweird.f32 %v428_v55 }
 0x1a3   : > { %v421_v56 = vpop.xlane.xlu2 %420 }
 0x1a4   : > { %v426_v57 = vmul.f32 %v421_v56, %v5280_v33 }
 0x1a6   : > { %v4808_v58 = vpop.eup %4807  ;;  %v429_v59 = vadd.f32 1e-05, %v426_v57 }
 0x1a7   : > { %v432_v60 = vmul.f32 %v4808_v58, %v428_v55  ;;  %vm438_vm5 = vweird.f32 %v4808_v58 }
 0x1a8   : > { %4809 = vrsqrt.f32 %v429_v59  ;;  %vm439_vm7 = vmor %vm437_vm6, %vm438_vm5  ;;  %vm447_vm9 = vweird.f32 %v429_v59 }
 0x1a9   : > { %v433_v61 = vmul.f32 %v4808_v58, %v432_v60 }
 0x1ab   : > { %v434_v62 = vmul.f32 0.5, %v433_v61  ;;  %v424_v63 = vpop.xlane.xlu2 %423 }
 0x1ac   : > { %v427_v0 = vmul.f32 %v424_v63, %v5280_v33 }
 0x1ad   : > { %v435_v1 = vsub.f32 1.5, %v434_v62 }
 0x1ae   : > { %v4810_v2 = vpop.eup %4809  ;;  %v430_v3 = vadd.f32 1e-05, %v427_v0 }
 0x1af   : > { %v436_v4 = vmul.f32 %v4808_v58, %v435_v1  ;;  %v442_v5 = vmul.f32 %v4810_v2, %v429_v59  ;;  %vm448_vm8 = vweird.f32 %v4810_v2 }
 0x1b0   : > { %4811 = vrsqrt.f32 %v430_v3  ;;  %vm449_vm10 = vmor %vm447_vm9, %vm448_vm8  ;;  %vm457_vm12 = vweird.f32 %v430_v3 }
 0x1b1   : > { %v443_v7 = vmul.f32 %v4810_v2, %v442_v5  ;;  %v440_v8 = vsel %vm439_vm7, %v4808_v58, %v436_v4 }
 0x1b2   : > { %v461_v9 = vmul.f32 %v440_v8, %v410_v36 }
 0x1b3   : > { %v444_v11 = vmul.f32 0.5, %v443_v7 }
 0x1b4   : > { %v465_v12 = vmul.f32 %v4768_v6, %v461_v9 }
 0x1b5   : > { %v445_v13 = vsub.f32 1.5, %v444_v11 }
 0x1b6   : > { %v4812_v14 = vpop.eup %4811  ;;  %v469_v16 = vadd.f32 %v4769_v10, %v465_v12 }
 0x1b7   : > { %v446_v17 = vmul.f32 %v4810_v2, %v445_v13  ;;  %v452_v18 = vmul.f32 %v4812_v14, %v430_v3  ;;  %vm458_vm11 = vweird.f32 %v4812_v14 }
 0x1b8   : > { %4489 = vmatmul.msk.f32.vlgmr.msra.gmra.mxu3 %vm389_vm2, %v469_v16  ;;  %vm459_vm13 = vmor %vm457_vm12, %vm458_vm11 }
 0x1b9   : > { %v453_v19 = vmul.f32 %v4812_v14, %v452_v18  ;;  %v450_v20 = vsel %vm449_vm10, %v4810_v2, %v446_v17 }
 0x1ba   : > { %v462_v21 = vmul.f32 %v450_v20, %v411_v43 }
 0x1bb   : > { %v454_v23 = vmul.f32 0.5, %v453_v19 }
 0x1bc   : > { %v466_v25 = vmul.f32 %v4768_v6, %v462_v21 }
 0x1bd   : > { %v455_v26 = vsub.f32 1.5, %v454_v23 }
 0x1be   : > { %v470_v27 = vadd.f32 %v4769_v10, %v466_v25 }
 0x1bf   : > { %v456_v28 = vmul.f32 %v4812_v14, %v455_v26 }
 0x1c0   : > { %4490 = vmatmul.msk.f32.gmra.mxu3 %vm389_vm2, %v470_v27 }
 0x1c1   : > { %v460_v29 = vsel %vm459_vm13, %v4812_v14, %v456_v28 }
 0x1c2   : > { %v463_v30 = vmul.f32 %v460_v29, %v5289_v45 }
 0x1c4   : > { %v467_v31 = vmul.f32 %v4768_v6, %v463_v30 }
 0x1c6   : > { %v471_v32 = vadd.f32 %v4769_v10, %v467_v31 }
 0x1c8   : > { %4491 = vmatmul.msk.f32.gmra.mxu3 %vm389_vm2, %v471_v32 }
 0x23b   : > { %v504_v35 = vpop.f32.mrf.mxu3 }
 0x23c   : > { %v5323_v36 = vadd.f32 %v4770_v34, %v504_v35 }
 0x23e   : > { %516 = vrot.lane.b32.xlu2 %v5323_v36, %s5126_s16 }
 0x243   : > { %v507_v37 = vpop.f32.mrf.mxu3 }
 0x244   : > { %v5327_v38 = vadd.f32 %v4770_v34, %v507_v37 }
 0x246   : > { %524 = vrot.lane.b32.xlu2 %v5327_v38, %s5127_s17  ;;  %518 = vrot.lane.b32.xlu1 %v5327_v38, %s5126_s16 }
 0x24b   : > { %v510_v39 = vpop.f32.mrf.mxu3 }
 0x24c   : > { %v5333_v40 = vadd.f32 %v4770_v34, %v510_v39 }
 0x24e   : > { %530 = vrot.lane.b32.xlu2 %v5327_v38, %s5128_s18  ;;  %522 = vrot.lane.b32.xlu1 %v5323_v36, %s5127_s17 }
 0x24f   : > { %520 = vrot.lane.b32.xlu0 %v5333_v40, %s5126_s16 }
 0x257   : > { %526 = vrot.lane.b32.xlu0 %v5333_v40, %s5127_s17 }
 0x25f   : > { %532 = vrot.lane.b32.xlu0 %v5333_v40, %s5128_s18 }
 0x267   : > { %528 = vrot.lane.b32.xlu0 %v5323_v36, %s5128_s18 }
 0x26f   : > { %538 = vrot.lane.b32.xlu0 %v5333_v40, %s5129_s20 }
 0x298   : > { %v517_v42 = vpop.permute.xlu2 %516 }
 0x299   : > { %v4729_v51 = vpack.i.bf16 %v517_v42, %v5323_v36 }
 0x2a0   : > { %v5353_v44 = vpop.permute.xlu2 %524 }
 0x2a8   : > { %v5362_v46 = vpop.permute.xlu2 %530 }
 0x2b8   : > { %v519_v41 = vpop.permute.xlu1 %518 }
 0x2b9   : > { %581 = vrot.lane.b32.xlu2 %v519_v41, %s5129_s20  ;;  %v4724_v48 = vpack.i.bf16 %v519_v41, %v5327_v38 }
 0x2c0   : > { %v5373_v49 = vpop.permute.xlu1 %522 }
 0x2c1   : > { %v521_v43 = vpop.permute.xlu0 %520  ;;  %536 = vrot.lane.b32.xlu2 %v5327_v38, %s5129_s20 }
 0x2c2   : > { %583 = vrot.lane.b32.xlu1 %v521_v43, %s5129_s20 }
 0x2c9   : > { %v5355_v45 = vpop.permute.xlu0 %526  ;;  %625 = vrot.lane.b32.xlu2 %v5353_v44, %s5129_s20 }
 0x2ca   : > { %627 = vrot.lane.b32.xlu0 %v5355_v45, %s5129_s20  ;;  %579 = vrot.lane.b32.xlu1 %v517_v42, %s5129_s20 }
 0x2d1   : > { %v5364_v47 = vpop.permute.xlu0 %532  ;;  %669 = vrot.lane.b32.xlu2 %v5362_v46, %s5129_s20 }
 0x2d2   : > { %671 = vrot.lane.b32.xlu0 %v5364_v47, %s5129_s20  ;;  %534 = vrot.lane.b32.xlu1 %v5323_v36, %s5129_s20 }
 0x2d9   : > { %v5375_v50 = vpop.permute.xlu0 %528  ;;  %4725 = vrot.lane.b32.xlu2 %v4724_v48, %s5130_s21 }
 0x2da   : > { %906 = vrot.lane.b32.xlu0 %v521_v43, %s5130_s21  ;;  %623 = vrot.lane.b32.xlu1 %v5373_v49, %s5129_s20 }
 0x2e1   : > { %v539_v52 = vpop.permute.xlu0 %538  ;;  %4730 = vrot.lane.b32.xlu2 %v4729_v51, %s5130_s21 }
 0x2e2   : > { %4492 = vmatpush.xpose.msk.msra.mxu2 %vm540_vm14, %v539_v52  ;;  %667 = vrot.lane.b32.xlu1 %v5375_v50, %s5129_s20 }
 0x2ea   : > { %861 = vrot.lane.b32.xlu1 %v5333_v40, %s5130_s21 }
 0x313   : > { %v582_v53 = vpop.permute.xlu2 %581 }
 0x31b   : > { %v537_v54 = vpop.permute.xlu2 %536 }
 0x31c   : > { %4493 = vmatpush.xpose.msk.msra.mxu2 %vm540_vm14, %v537_v54 }
 0x323   : > { %v626_v55 = vpop.permute.xlu2 %625 }
 0x32b   : > { %v670_v57 = vpop.permute.xlu2 %669 }
 0x333   : > { %v4726_v60 = vpop.permute.xlu2 %4725 }
 0x334   : > { %v584_v56 = vpop.permute.xlu1 %583  ;;  %v4728_v2 = vunpack.i.h.bf16 %v4726_v60  ;;  %v4727_v6 = vunpack.i.l.bf16 %v4726_v60 }
 0x335   : > { %4498 = vmatpush.xpose.msk.msrb.mxu3 %vm540_vm14, %v584_v56 }
 0x339   : > { %4499 = vmatpush.xpose.msk.msrb.mxu3 %vm540_vm14, %v582_v53 }
 0x33b   : > { %v4731_v1 = vpop.permute.xlu2 %4730 }
 0x33c   : > { %v628_v58 = vpop.permute.xlu0 %627  ;;  %v580_v59 = vpop.permute.xlu1 %579  ;;  %v4733_v3 = vunpack.i.h.bf16 %v4731_v1  ;;  %v4732_v7 = vunpack.i.l.bf16 %v4731_v1 }
 0x33d   : > { %4500 = vmatpush.xpose.msk.msrb.mxu3 %vm540_vm14, %v580_v59 }
 0x340   : > { %4501 = vmatmul.msk.f32.vlgmr.msrb.gmra.mxu3 %vm540_vm14, %v517_v42 }
 0x341   : > { %4504 = vmatpush.xpose.msk.msra.mxu3 %vm540_vm14, %v628_v58 }
 0x344   : > { %v672_v61 = vpop.permute.xlu0 %671  ;;  %v535_v62 = vpop.permute.xlu1 %534 }
 0x345   : > { %4505 = vmatpush.xpose.msk.msra.mxu3 %vm540_vm14, %v626_v55  ;;  %4494 = vmatpush.xpose.msk.msra.mxu2 %vm540_vm14, %v535_v62 }
 0x346   : > { %4510 = vmatpush.xpose.msk.msra.mxu1 %vm540_vm14, %v672_v61 }
 0x348   : > { %4495 = vmatmul.msk.f32.vlgmr.msra.gmra.mxu2 %vm540_vm14, %v5323_v36  ;;  %4502 = vmatmul.msk.f32.gmra.mxu3 %vm540_vm14, %v519_v41 }
 0x34a   : > { %4511 = vmatpush.xpose.msk.msra.mxu1 %vm540_vm14, %v670_v57 }
 0x34c   : > { %v907_v63 = vpop.permute.xlu0 %906  ;;  %v624_v0 = vpop.permute.xlu1 %623 }
 0x34d   : > { %4506 = vmatpush.xpose.msk.msra.mxu3 %vm540_vm14, %v624_v0 }
 0x350   : > { %4496 = vmatmul.msk.f32.gmra.mxu2 %vm540_vm14, %v5327_v38  ;;  %4503 = vmatmul.msk.f32.gmra.mxu3 %vm540_vm14, %v521_v43 }
 0x351   : > { %4520 = vmatpush.msk.msrb.mxu3 %vm373_vm1, %v907_v63 }
 0x353   : > { %935 = vmatpush.msrb.mxu3 %v4728_v2 }
 0x354   : > { %v668_v4 = vpop.permute.xlu1 %667 }
 0x355   : > { %936 = vmatpush.msrb.mxu3 %v4733_v3  ;;  %4512 = vmatpush.xpose.msk.msra.mxu1 %vm540_vm14, %v668_v4 }
 0x358   : > { %4497 = vmatmul.msk.f32.gmra.mxu2 %vm540_vm14, %v5333_v40  ;;  %4507 = vmatmul.msk.f32.vlgmr.msra.gmra.mxu3 %vm540_vm14, %v5373_v49 }
 0x359   : > { %4513 = vmatmul.msk.f32.vlgmr.msra.gmra.mxu1 %vm540_vm14, %v5375_v50 }
 0x35c   : > { %v862_v5 = vpop.permute.xlu1 %861 }
 0x35d   : > { %4516 = vmatpush.msk.msrb.mxu2 %vm373_vm1, %v862_v5 }
 0x35f   : > { %890 = vmatpush.msrb.mxu2 %v4727_v6 }
 0x360   : > { %4508 = vmatmul.msk.f32.gmra.mxu3 %vm540_vm14, %v5353_v44 }
 0x361   : > { %4514 = vmatmul.msk.f32.gmra.mxu1 %vm540_vm14, %v5362_v46  ;;  %891 = vmatpush.msrb.mxu2 %v4732_v7 }
 0x368   : > { %4509 = vmatmul.msk.f32.gmra.mxu3 %vm540_vm14, %v5355_v45 }
 0x369   : > { %4515 = vmatmul.msk.f32.gmra.mxu1 %vm540_vm14, %v5364_v47 }
 0x3c3   : > { %v614_v8 = vpop.f32.mrf.mxu3 }
 0x3c4   : > { %v714_v26 = vmul.f32 0.35355338, %v614_v8 }
 0x3c6   : > { %v734_v30 = vsel %vm723_vm15, %v714_v26, -inf }
 0x3cb   : > { %v570_v9 = vpop.f32.mrf.mxu2  ;;  %v617_v10 = vpop.f32.mrf.mxu3 }
 0x3cc   : > { %v711_v11 = vmul.f32 0.35355338, %v570_v9  ;;  %v715_v34 = vmul.f32 0.35355338, %v617_v10 }
 0x3ce   : > { %v724_v12 = vsel %vm723_vm15, %v711_v11, -inf  ;;  %v737_v39 = vsel %vm723_vm15, %v715_v34, -inf }
 0x3cf   : > { %725 = vmax.xlane.f32.xlu0 %v724_v12 }
 0x3d3   : > { %v573_v13 = vpop.f32.mrf.mxu2  ;;  %v620_v14 = vpop.f32.mrf.mxu3 }
 0x3d4   : > { %v712_v16 = vmul.f32 0.35355338, %v573_v13  ;;  %v5454_v61 = vmul.f32 0.35355338, %v620_v14 }
 0x3d6   : > { %v702_v17 = vpop.f32.mrf.mxu1  ;;  %v727_v18 = vsel %vm723_vm15, %v712_v16, -inf  ;;  %v740_v2 = vsel %vm730_vm0, %v5454_v61, -inf }
 0x3d7   : > { %v5424_v19 = vmul.f32 0.35355338, %v702_v17  ;;  %728 = vmax.xlane.f32.xlu1 %v727_v18 }
 0x3d9   : > { %v752_v20 = vsel %vm723_vm15, %v5424_v19, -inf }
 0x3da   : > { %753 = vmax.xlane.f32.xlu2 %v752_v20 }
 0x3db   : > { %v576_v21 = vpop.f32.mrf.mxu2  ;;  %v658_v23 = vpop.f32.mrf.mxu3 }
 0x3dc   : > { %v713_v25 = vmul.f32 0.35355338, %v576_v21  ;;  %v717_v35 = vmul.f32 0.35355338, %v658_v23 }
 0x3de   : > { %v705_v27 = vpop.f32.mrf.mxu1  ;;  %v731_v28 = vsel %vm730_vm0, %v713_v25, -inf  ;;  %v743_v38 = vsel %vm723_vm15, %v717_v35, -inf }
 0x3df   : > { %v5429_v29 = vmul.f32 0.35355338, %v705_v27  ;;  %732 = vmax.xlane.f32.xlu1 %v731_v28 }
 0x3e1   : > { %v755_v31 = vsel %vm723_vm15, %v5429_v29, -inf }
 0x3e2   : > { %735 = vmax.xlane.f32.xlu2 %v734_v30  ;;  %756 = vmax.xlane.f32.xlu0 %v755_v31 }
 0x3e3   : > { %v661_v32 = vpop.f32.mrf.mxu3 }
 0x3e4   : > { %v5442_v43 = vmul.f32 0.35355338, %v661_v32  ;;  %v4734_v32 = vpack.i.bf16 %v5373_v49, %v5353_v44 }
 0x3e6   : > { %v708_v36 = vpop.f32.mrf.mxu1  ;;  %v746_v51 = vsel %vm723_vm15, %v5442_v43, -inf }
 0x3e7   : > { %v5434_v37 = vmul.f32 0.35355338, %v708_v36 }
 0x3e9   : > { %v758_v40 = vsel %vm730_vm0, %v5434_v37, -inf }
 0x3ea   : > { %744 = vmax.xlane.f32.xlu2 %v743_v38  ;;  %738 = vmax.xlane.f32.xlu0 %v737_v39 }
 0x3eb   : > { %759 = vmax.xlane.f32.xlu1 %v758_v40  ;;  %v664_v41 = vpop.f32.mrf.mxu3 }
 0x3ec   : > { %v5440_v42 = vmul.f32 0.35355338, %v664_v41 }
 0x3ee   : > { %v749_v48 = vsel %vm730_vm0, %v5440_v42, -inf }
 0x3f2   : > { %750 = vmax.xlane.f32.xlu2 %v749_v48 }
 0x3f3   : > { %747 = vmax.xlane.f32.xlu1 %v746_v51 }
 0x40c   : > { %951 = vrot.lane.b32.xlu1 %v5355_v45, %s5130_s21 }
 0x442   : > { %v726_v52 = vpop.xlane.xlu0 %725 }
 0x443   : > { %v761_v53 = vsub.f32 %v711_v11, %v726_v52 }
 0x445   : > { %v773_v54 = vmul.f32 1.442695, %v761_v53 }
 0x447   : > { %4813 = vpow2.f32 %v773_v54 }
 0x44a   : > { %v729_v55 = vpop.xlane.xlu1 %728 }
 0x44b   : > { %v762_v57 = vsub.f32 %v712_v16, %v729_v55 }
 0x44d   : > { %v5450_v56 = vpop.eup %4813  ;;  %v754_v58 = vpop.xlane.xlu2 %753  ;;  %v775_v60 = vmul.f32 1.442695, %v762_v57 }
 0x44e   : > { %v797_v59 = vsel %vm723_vm15, %v5450_v56, 0.0  ;;  %v770_v6 = vsub.f32 %v5424_v19, %v754_v58 }
 0x44f   : > { %798 = vadd.xlane.f32.xlu0 %v797_v59  ;;  %4815 = vpow2.f32 %v775_v60 }
 0x450   : > { %v791_v16 = vmul.f32 1.442695, %v770_v6 }
 0x452   : > { %v733_v62 = vpop.xlane.xlu1 %732 }
 0x453   : > { %v763_v63 = vsub.f32 %v713_v25, %v733_v62 }
 0x455   : > { %v757_v45 = vpop.xlane.xlu0 %756  ;;  %v736_v0 = vpop.xlane.xlu2 %735  ;;  %v777_v4 = vmul.f32 1.442695, %v763_v63 }
 0x456   : > { %v764_v1 = vsub.f32 %v714_v26, %v736_v0  ;;  %v5458_v5 = vpop.eup %4815 }
 0x457   : > { %741 = vmax.xlane.f32.xlu0 %v740_v2  ;;  %v800_v11 = vsel %vm723_vm15, %v5458_v5, 0.0 }
 0x458   : > { %v779_v3 = vmul.f32 1.442695, %v764_v1 }
 0x45a   : > { %4817 = vpow2.f32 %v779_v3 }
 0x45b   : > { %4819 = vpow2.f32 %v777_v4 }
 0x45d   : > { %v739_v7 = vpop.xlane.xlu0 %738  ;;  %v745_v8 = vpop.xlane.xlu2 %744 }
 0x45e   : > { %v765_v9 = vsub.f32 %v715_v34, %v739_v7  ;;  %v767_v10 = vsub.f32 %v717_v35, %v745_v8  ;;  %v760_v27 = vpop.xlane.xlu1 %759  ;;  %v4739_v34 = vpack.i.bf16 %v5375_v50, %v5362_v46  ;;  %v771_v35 = vsub.f32 %v5429_v29, %v757_v45 }
 0x45f   : > { %801 = vadd.xlane.f32.xlu0 %v800_v11  ;;  %v772_v57 = vsub.f32 %v5434_v37, %v760_v27  ;;  %v1037_v27 = vld [vmem:[%s6889_s1 + $0x90] sm:$0xff] }
 0x460   : > { %v781_v12 = vmul.f32 1.442695, %v765_v9  ;;  %v785_v13 = vmul.f32 1.442695, %v767_v10  ;;  %v5463_v14 = vpop.eup %4817  ;;  %v793_v36 = vmul.f32 1.442695, %v771_v35  ;;  %1100 = vmatpush.msra.mxu3 %v1037_v27 }
 0x461   : > { %v806_v17 = vsel %vm723_vm15, %v5463_v14, 0.0  ;;  %v5467_v18 = vpop.eup %4819  ;;  %v795_v60 = vmul.f32 1.442695, %v772_v57 }
 0x462   : > { %4821 = vpow2.f32 %v781_v12  ;;  %807 = vadd.xlane.f32.xlu2 %v806_v17  ;;  %v803_v19 = vsel %vm730_vm0, %v5467_v18, 0.0 }
 0x463   : > { %4823 = vpow2.f32 %v785_v13 }
 0x464   : > { %4825 = vpow2.f32 %v791_v16 }
 0x465   : > { %v751_v38 = vpop.xlane.xlu2 %750  ;;  %4827 = vpow2.f32 %v793_v36 }
 0x466   : > { %v748_v30 = vpop.xlane.xlu1 %747  ;;  %v769_v39 = vsub.f32 %v5440_v42, %v751_v38 }
 0x467   : > { %804 = vadd.xlane.f32.xlu0 %v803_v19  ;;  %v768_v51 = vsub.f32 %v5442_v43, %v748_v30  ;;  %v1039_v30 = vld [vmem:[%s6889_s1 + $0xa0] sm:$0xff] }
 0x468   : > { %v5471_v20 = vpop.eup %4821  ;;  %v789_v40 = vmul.f32 1.442695, %v769_v39 }
 0x469   : > { %v809_v21 = vsel %vm723_vm15, %v5471_v20, 0.0  ;;  %v5475_v23 = vpop.eup %4823  ;;  %v787_v53 = vmul.f32 1.442695, %v768_v51 }
 0x46a   : > { %810 = vadd.xlane.f32.xlu1 %v809_v21  ;;  %v5477_v25 = vpop.eup %4825  ;;  %v815_v26 = vsel %vm723_vm15, %v5475_v23, 0.0  ;;  %4829 = vpow2.f32 %v789_v40 }
 0x46b   : > { %816 = vadd.xlane.f32.xlu2 %v815_v26  ;;  %v824_v28 = vsel %vm723_vm15, %v5477_v25, 0.0  ;;  %v5494_v41 = vpop.eup %4827 }
 0x46c   : > { %v827_v44 = vsel %vm723_vm15, %v5494_v41, 0.0 }
 0x46f   : > { %825 = vadd.xlane.f32.xlu0 %v824_v28  ;;  %v1038_v28 = vld [vmem:[%s6889_s1 + $0x98] sm:$0xff] }
 0x470   : > { %1065 = vmatpush.msra.mxu2 %v1038_v28 }
 0x47e   : > { %v952_v31 = vpop.permute.xlu1 %951 }
 0x47f   : > { %4524 = vmatpush.msk.msrb.mxu0 %vm373_vm1, %v952_v31 }
 0x483   : > { %996 = vrot.lane.b32.xlu0 %v5364_v47, %s5130_s21  ;;  %4735 = vrot.lane.b32.xlu2 %v4734_v32, %s5130_s21  ;;  %v5498_v47 = vpop.eup %4829 }
 0x484   : > { %v821_v46 = vsel %vm730_vm0, %v5498_v47, 0.0 }
 0x48b   : > { %4740 = vrot.lane.b32.xlu0 %v4739_v34, %s5130_s21 }
 0x4ac   : > { %828 = vadd.xlane.f32.xlu2 %v827_v44  ;;  %v1040_v44 = vld [vmem:[%s6889_s1 + $0xa8] sm:$0xff] }
 0x4b5   : > { %822 = vadd.xlane.f32.xlu0 %v821_v46 }
 0x4c2   : > { %v799_v49 = vpop.xlane.xlu0 %798 }
 0x4c3   : > { %4831 = vrcp.f32 %v799_v49 }
 0x4c9   : > { %v4832_v50 = vpop.eup %4831 }
 0x4ca   : > { %v742_v29 = vpop.xlane.xlu0 %741  ;;  %v845_v42 = vmul.f32 %v4832_v50, %v5450_v56 }
 0x4cb   : > { %v766_v48 = vsub.f32 %v5454_v61, %v742_v29 }
 0x4cc   : > { %4517 = vmatmul.msk.f32.vlgmr.msrb.gmra.mxu2 %vm723_vm15, %v845_v42 }
 0x4cd   : > { %v783_v52 = vmul.f32 1.442695, %v766_v48 }
 0x4cf   : > { %4833 = vpow2.f32 %v783_v52 }
 0x4d2   : > { %v802_v54 = vpop.xlane.xlu0 %801 }
 0x4d3   : > { %4835 = vrcp.f32 %v802_v54 }
 0x4d4   : > { %4837 = vpow2.f32 %v787_v53 }
 0x4d5   : > { %v5506_v55 = vpop.eup %4833  ;;  %v808_v58 = vpop.xlane.xlu2 %807 }
 0x4d6   : > { %v812_v56 = vsel %vm730_vm0, %v5506_v55, 0.0  ;;  %4839 = vrcp.f32 %v808_v58 }
 0x4d7   : > { %813 = vadd.xlane.f32.xlu1 %v812_v56 }
 0x4d9   : > { %v4836_v59 = vpop.eup %4835 }
 0x4da   : > { %v805_v61 = vpop.xlane.xlu0 %804  ;;  %v846_v43 = vmul.f32 %v4836_v59, %v5458_v5  ;;  %v5512_v62 = vpop.eup %4837 }
 0x4db   : > { %4841 = vrcp.f32 %v805_v61  ;;  %v818_v0 = vsel %vm723_vm15, %v5512_v62, 0.0 }
 0x4dc   : > { %4518 = vmatmul.msk.f32.gmra.mxu2 %vm723_vm15, %v846_v43  ;;  %v4840_v63 = vpop.eup %4839  ;;  %4843 = vpow2.f32 %v795_v60 }
 0x4dd   : > { %v811_v37 = vpop.xlane.xlu1 %810  ;;  %v848_v45 = vmul.f32 %v4840_v63, %v5463_v14 }
 0x4de   : > { %4845 = vrcp.f32 %v811_v37  ;;  %v817_v1 = vpop.xlane.xlu2 %816  ;;  %v4771_v37 = vld [vmem:[%s6889_s1 + $0xb0] ss:$0 sm:$0xff] }
 0x4df   : > { %819 = vadd.xlane.f32.xlu1 %v818_v0  ;;  %4521 = vmatmul.msk.f32.vlgmr.msrb.gmra.mxu3 %vm723_vm15, %v848_v45  ;;  %4847 = vrcp.f32 %v817_v1 }
 0x4e1   : > { %v4842_v2 = vpop.eup %4841 }
 0x4e2   : > { %v847_v3 = vmul.f32 %v4842_v2, %v5467_v18  ;;  %v4844_v4 = vpop.eup %4843  ;;  %v826_v13 = vpop.xlane.xlu0 %825 }
 0x4e3   : > { %v830_v7 = vsel %vm730_vm0, %v4844_v4, 0.0  ;;  %4849 = vrcp.f32 %v826_v13 }
 0x4e4   : > { %v4846_v5 = vpop.eup %4845  ;;  %4519 = vmatmul.msk.f32.gmra.mxu2 %vm723_vm15, %v847_v3 }
 0x4e5   : > { %v849_v6 = vmul.f32 %v4846_v5, %v5471_v20  ;;  %v4848_v9 = vpop.eup %4847 }
 0x4e6   : > { %v4736_v8 = vpop.permute.xlu2 %4735  ;;  %v851_v12 = vmul.f32 %v4848_v9, %v5475_v23 }
 0x4e7   : > { %831 = vadd.xlane.f32.xlu1 %v830_v7  ;;  %4522 = vmatmul.msk.f32.gmra.mxu3 %vm723_vm15, %v849_v6  ;;  %v4737_v10 = vunpack.i.l.bf16 %v4736_v8  ;;  %v4738_v11 = vunpack.i.h.bf16 %v4736_v8 }
 0x4e9   : > { %980 = vmatpush.msrb.mxu0 %v4737_v10  ;;  %v4850_v17 = vpop.eup %4849 }
 0x4ea   : > { %v854_v20 = vmul.f32 %v4850_v17, %v5477_v25 }
 0x4eb   : > { %981 = vmatpush.msrb.mxu0 %v4738_v11 }
 0x4ec   : > { %4525 = vmatmul.msk.f32.vlgmr.msrb.gmra.mxu0 %vm723_vm15, %v851_v12 }
 0x4ed   : > { %1135 = vmatpush.msra.mxu0 %v1039_v30 }
 0x4f5   : > { %v997_v14 = vpop.permute.xlu0 %996 }
 0x4f6   : > { %4528 = vmatpush.msk.msrb.mxu1 %vm373_vm1, %v997_v14 }
 0x4fd   : > { %v4741_v16 = vpop.permute.xlu0 %4740 }
 0x4fe   : > { %v4742_v18 = vunpack.i.l.bf16 %v4741_v16  ;;  %v4743_v19 = vunpack.i.h.bf16 %v4741_v16 }
 0x500   : > { %1025 = vmatpush.msrb.mxu1 %v4742_v18 }
 0x502   : > { %1026 = vmatpush.msrb.mxu1 %v4743_v19 }
 0x503   : > { %4529 = vmatmul.msk.f32.vlgmr.msrb.gmra.mxu1 %vm723_vm15, %v854_v20 }
 0x504   : > { %1173 = vmatpush.msra.mxu1 %v1040_v44  ;;  %v1272_v44 = vld [vmem:[%s6889_s1 + $0xd0] sm:$0xff] }
 0x51f   : > { %v829_v21 = vpop.xlane.xlu2 %828 }
 0x520   : > { %4851 = vrcp.f32 %v829_v21 }
 0x526   : > { %v4852_v23 = vpop.eup %4851 }
 0x527   : > { %v855_v26 = vmul.f32 %v4852_v23, %v5494_v41 }
 0x528   : > { %v823_v35 = vpop.xlane.xlu0 %822 }
 0x529   : > { %4530 = vmatmul.msk.f32.gmra.mxu1 %vm723_vm15, %v855_v26 }
 0x54a   : > { %v814_v25 = vpop.xlane.xlu1 %813 }
 0x54b   : > { %4853 = vrcp.f32 %v814_v25 }
 0x54f   : > { %v893_v38 = vpop.f32.mrf.mxu2 }
 0x551   : > { %v4854_v31 = vpop.eup %4853 }
 0x552   : > { %v820_v32 = vpop.xlane.xlu1 %819  ;;  %v850_v34 = vmul.f32 %v4854_v31, %v5506_v55 }
 0x553   : > { %4855 = vrcp.f32 %v820_v32 }
 0x554   : > { %4523 = vmatmul.msk.f32.gmra.mxu3 %vm723_vm15, %v850_v34  ;;  %4857 = vrcp.f32 %v823_v35 }
 0x559   : > { %v4856_v36 = vpop.eup %4855 }
 0x55a   : > { %v832_v39 = vpop.xlane.xlu1 %831  ;;  %v852_v40 = vmul.f32 %v4856_v36, %v5512_v62  ;;  %v4858_v41 = vpop.eup %4857 }
 0x55b   : > { %4859 = vrcp.f32 %v832_v39  ;;  %v853_v50 = vmul.f32 %v4858_v41, %v5498_v47  ;;  %v1273_v41 = vld [vmem:[%s6889_s1 + $0xd8] sm:$0xff] }
 0x55c   : > { %4526 = vmatmul.msk.f32.gmra.mxu0 %vm723_vm15, %v852_v40  ;;  %4535 = vmatmul.msk.f32.vlgmr.msra.gmra.mxu3 %vm540_vm14, %v893_v38  ;;  %v1274_v40 = vld [vmem:[%s6889_s1 + $0xe0] sm:$0xff] }
 0x55d   : > { %1298 = vmatpush.msrb.mxu2 %v1274_v40  ;;  %v1439_v40 = vld [vmem:[%s6889_s1 + $0x128] sm:$0xff] }
 0x55f   : > { %v896_v49 = vpop.f32.mrf.mxu2  ;;  %1299 = vmatpush.msrb.mxu2 %v1273_v41  ;;  %v1438_v41 = vld [vmem:[%s6889_s1 + $0x120] sm:$0xff] }
 0x561   : > { %v4860_v46 = vpop.eup %4859  ;;  %1300 = vmatpush.msrb.mxu2 %v1272_v44  ;;  %v1437_v44 = vld [vmem:[%s6889_s1 + $0x118] sm:$0xff] }
 0x562   : > { %v856_v29 = vmul.f32 %v4860_v46, %v4844_v4  ;;  %v938_v42 = vpop.f32.mrf.mxu3  ;;  %v1271_v46 = vld [vmem:[%s6889_s1 + $0xc8] sm:$0xff] }
 0x563   : > { %4532 = vmatmul.msk.f32.vlgmr.msra.gmra.mxu2 %vm540_vm14, %v938_v42 }
 0x564   : > { %4527 = vmatmul.msk.f32.gmra.mxu0 %vm723_vm15, %v853_v50  ;;  %4531 = vmatmul.msk.f32.gmra.mxu1 %vm723_vm15, %v856_v29 }
 0x565   : > { %4536 = vmatmul.msk.f32.gmra.mxu3 %vm540_vm14, %v896_v49  ;;  %1301 = vmatpush.msrb.mxu2 %v1271_v46 }
 0x567   : > { %v899_v52 = vpop.f32.mrf.mxu2 }
 0x569   : > { %v983_v48 = vpop.f32.mrf.mxu0 }
 0x56a   : > { %v941_v51 = vpop.f32.mrf.mxu3 }
 0x56b   : > { %4533 = vmatmul.msk.f32.gmra.mxu2 %vm540_vm14, %v941_v51 }
 0x56c   : > { %4538 = vmatmul.msk.f32.vlgmr.msra.gmra.mxu0 %vm540_vm14, %v983_v48 }
 0x56d   : > { %4537 = vmatmul.msk.f32.gmra.mxu3 %vm540_vm14, %v899_v52 }
 0x580   : > { %v1028_v47 = vpop.f32.mrf.mxu1 }
 0x581   : > { %4541 = vmatmul.msk.f32.vlgmr.msra.gmra.mxu1 %vm540_vm14, %v1028_v47 }
 0x5a6   : > { %v1031_v53 = vpop.f32.mrf.mxu1 }
 0x5a7   : > { %4542 = vmatmul.msk.f32.gmra.mxu1 %vm540_vm14, %v1031_v53 }
 0x5d7   : > { %v944_v54 = vpop.f32.mrf.mxu3 }
 0x5d8   : > { %4534 = vmatmul.msk.f32.gmra.mxu2 %vm540_vm14, %v944_v54  ;;  %v4772_v54 = vld [vmem:[%s6889_s1 + $0xb8] ss:$0 sm:$0xff] }
 0x5d9   : > { %v986_v55 = vpop.f32.mrf.mxu0 }
 0x5da   : > { %4539 = vmatmul.msk.f32.gmra.mxu0 %vm540_vm14, %v986_v55 }
 0x5df   : > { %v1102_v59 = vpop.f32.mrf.mxu3 }
 0x5e1   : > { %v989_v57 = vpop.f32.mrf.mxu0  ;;  %v1034_v58 = vpop.f32.mrf.mxu1 }
 0x5e2   : > { %4540 = vmatmul.msk.f32.gmra.mxu0 %vm540_vm14, %v989_v57  ;;  %4543 = vmatmul.msk.f32.gmra.mxu1 %vm540_vm14, %v1034_v58  ;;  %v4773_v58 = vld [vmem:[%s6889_s1 + $0xc0] ss:$0 sm:$0xff] }
 0x5e6   : > { %v1067_v56 = vpop.f32.mrf.mxu2 }
 0x5e7   : > { %v1103_v61 = vadd.f32 %v1102_v59, %v1067_v56 }
 0x5e8   : > { %v1105_v2 = vpop.f32.mrf.mxu3 }
 0x5e9   : > { %v1137_v60 = vpop.f32.mrf.mxu0 }
 0x5ea   : > { %v1146_v43 = vadd.f32 %v1137_v60, %v1103_v61 }
 0x5ee   : > { %v1070_v3 = vpop.f32.mrf.mxu2 }
 0x5ef   : > { %v1106_v4 = vadd.f32 %v1105_v2, %v1070_v3 }
 0x5f0   : > { %v1108_v11 = vpop.f32.mrf.mxu3 }
 0x5fe   : > { %v1175_v62 = vpop.f32.mrf.mxu1 }
 0x5ff   : > { %v1184_v63 = vadd.f32 %v1175_v62, %v1146_v43 }
 0x601   : > { %v1187_v45 = vadd.f32 %v1184_v63, %v5261_v15 }
 0x603   : > { %v5566_v0 = vadd.f32 %v4771_v37, %v1187_v45 }
 0x605   : > { %v1197_v1 = vsel %vm389_vm2, %v5566_v0, 0.0 }
 0x606   : > { %1198 = vadd.xlane.f32.xlu2 %v1197_v1 }
 0x624   : > { %v1178_v7 = vpop.f32.mrf.mxu1 }
 0x657   : > { %v1140_v5 = vpop.f32.mrf.mxu0 }
 0x658   : > { %v1147_v6 = vadd.f32 %v1140_v5, %v1106_v4 }
 0x65a   : > { %v1185_v8 = vadd.f32 %v1178_v7, %v1147_v6 }
 0x65b   : > { %v1073_v9 = vpop.f32.mrf.mxu2 }
 0x65c   : > { %v1188_v10 = vadd.f32 %v1185_v8, %v5274_v24  ;;  %v1109_v12 = vadd.f32 %v1108_v11, %v1073_v9 }
 0x65e   : > { %v5571_v13 = vadd.f32 %v4771_v37, %v1188_v10 }
 0x65f   : > { %v1143_v15 = vpop.f32.mrf.mxu0  ;;  %v1181_v17 = vpop.f32.mrf.mxu1 }
 0x660   : > { %v1148_v14 = vadd.f32 %v1143_v15, %v1109_v12  ;;  %v1200_v16 = vsel %vm389_vm2, %v5571_v13, 0.0 }
 0x661   : > { %1201 = vadd.xlane.f32.xlu1 %v1200_v16 }
 0x662   : > { %v1186_v18 = vadd.f32 %v1181_v17, %v1148_v14 }
 0x664   : > { %v1189_v19 = vadd.f32 %v1186_v18, %v5271_v22 }
 0x666   : > { %v5576_v20 = vadd.f32 %v4771_v37, %v1189_v19 }
 0x668   : > { %v1203_v21 = vsel %vm396_vm3, %v5576_v20, 0.0 }
 0x669   : > { %1204 = vadd.xlane.f32.xlu0 %v1203_v21 }
 0x679   : > { %v1199_v24 = vpop.xlane.xlu2 %1198 }
 0x67a   : > { %v1206_v23 = vmul.f32 %v1199_v24, %v5280_v33  ;;  %v1447_v24 = vld [vmem:[%s6889_s1 + $0x168] sm:$0xff] }
 0x67b   : > { %1448 = vmatpush.msrb.mxu3 %v1447_v24 }
 0x67c   : > { %v1209_v26 = vsub.f32 %v5566_v0, %v1206_v23  ;;  %v5624_v23 = vld [vmem:[%s6889_s1 + $0xe8] ss:$0 sm:$0xff] }
 0x67e   : > { %v1212_v27 = vmul.f32 %v1209_v26, %v1209_v26 }
 0x680   : > { %v1215_v28 = vsel %vm389_vm2, %v1212_v27, 0.0 }
 0x681   : > { %1216 = vadd.xlane.f32.xlu2 %v1215_v28  ;;  %v1445_v28 = vld [vmem:[%s6889_s1 + $0x158] sm:$0xff] }
 0x6d4   : > { %v1202_v25 = vpop.xlane.xlu1 %1201 }
 0x6d5   : > { %v1207_v30 = vmul.f32 %v1202_v25, %v5280_v33 }
 0x6d7   : > { %v1210_v22 = vsub.f32 %v5571_v13, %v1207_v30  ;;  %v1444_v30 = vld [vmem:[%s6889_s1 + $0x150] sm:$0xff] }
 0x6d9   : > { %v1213_v31 = vmul.f32 %v1210_v22, %v1210_v22 }
 0x6db   : > { %v1218_v32 = vsel %vm389_vm2, %v1213_v31, 0.0  ;;  %v1443_v31 = vld [vmem:[%s6889_s1 + $0x148] sm:$0xff] }
 0x6dc   : > { %1219 = vadd.xlane.f32.xlu1 %v1218_v32  ;;  %v1205_v34 = vpop.xlane.xlu0 %1204 }
 0x6dd   : > { %v1208_v35 = vmul.f32 %v1205_v34, %v5280_v33  ;;  %v1442_v34 = vld [vmem:[%s6889_s1 + $0x140] sm:$0xff] }
 0x6df   : > { %v5588_v36 = vsub.f32 %v5576_v20, %v1208_v35 }
 0x6e1   : > { %v1214_v38 = vmul.f32 %v5588_v36, %v5588_v36 }
 0x6e3   : > { %v1221_v39 = vsel %vm396_vm3, %v1214_v38, 0.0 }
 0x6e4   : > { %1222 = vadd.xlane.f32.xlu0 %v1221_v39  ;;  %v1440_v39 = vld [vmem:[%s6889_s1 + $0x130] sm:$0xff] }
 0x6f4   : > { %v1217_v49 = vpop.xlane.xlu2 %1216 }
 0x6f5   : > { %v1224_v50 = vmul.f32 %v1217_v49, %v5280_v33 }
 0x6f7   : > { %v1227_v29 = vadd.f32 1e-05, %v1224_v50  ;;  %v1436_v50 = vld [vmem:[%s6889_s1 + $0x110] sm:$0xff] }
 0x6f9   : > { %4861 = vrsqrt.f32 %v1227_v29  ;;  %vm1236_vm5 = vweird.f32 %v1227_v29 }
 0x6ff   : > { %v4862_v42 = vpop.eup %4861 }
 0x700   : > { %v1231_v48 = vmul.f32 %v4862_v42, %v1227_v29  ;;  %vm1237_vm4 = vweird.f32 %v4862_v42 }
 0x701   : > { %vm1238_vm6 = vmor %vm1236_vm5, %vm1237_vm4 }
 0x702   : > { %v1232_v51 = vmul.f32 %v4862_v42, %v1231_v48 }
 0x704   : > { %v1233_v52 = vmul.f32 0.5, %v1232_v51 }
 0x706   : > { %v1234_v47 = vsub.f32 1.5, %v1233_v52 }
 0x708   : > { %v1235_v53 = vmul.f32 %v4862_v42, %v1234_v47  ;;  %v1434_v47 = vld [vmem:[%s6889_s1 + $0x100] sm:$0xff] }
 0x70a   : > { %v1239_v55 = vsel %vm1238_vm6, %v4862_v42, %v1235_v53  ;;  %v1435_v42 = vld [vmem:[%s6889_s1 + $0x108] sm:$0xff]  ;;  %v1433_v53 = vld [vmem:[%s6889_s1 + $0xf8] sm:$0xff] }
 0x70b   : > { %v1260_v57 = vmul.f32 %v1239_v55, %v1209_v26  ;;  %v1446_v26 = vld [vmem:[%s6889_s1 + $0x160] sm:$0xff]  ;;  %v1432_v55 = vld [vmem:[%s6889_s1 + $0xf0] sm:$0xff] }
 0x70c   : > { %1449 = vmatpush.msrb.mxu3 %v1446_v26 }
 0x70d   : > { %v1264_v56 = vmul.f32 %v4772_v54, %v1260_v57 }
 0x70e   : > { %1450 = vmatpush.msrb.mxu3 %v1445_v28 }
 0x70f   : > { %v1268_v59 = vadd.f32 %v4773_v58, %v1264_v56 }
 0x710   : > { %1451 = vmatpush.msrb.mxu3 %v1444_v30 }
 0x711   : > { %4544 = vmatmul.msk.f32.vlgmr.msrb.gmra.mxu2 %vm389_vm2, %v1268_v59 }
 0x712   : > { %1452 = vmatpush.msrb.mxu3 %v1443_v31 }
 0x714   : > { %1453 = vmatpush.msrb.mxu3 %v1442_v34 }
 0x74f   : > { %v1220_v60 = vpop.xlane.xlu1 %1219 }
 0x750   : > { %v1225_v61 = vmul.f32 %v1220_v60, %v5280_v33 }
 0x752   : > { %v1228_v43 = vadd.f32 1e-05, %v1225_v61 }
 0x754   : > { %4863 = vrsqrt.f32 %v1228_v43  ;;  %vm1246_vm8 = vweird.f32 %v1228_v43 }
 0x757   : > { %v1223_v62 = vpop.xlane.xlu0 %1222 }
 0x758   : > { %v1226_v63 = vmul.f32 %v1223_v62, %v5280_v33 }
 0x75a   : > { %v4864_v37 = vpop.eup %4863  ;;  %v1229_v45 = vadd.f32 1e-05, %v1226_v63 }
 0x75b   : > { %v1241_v1 = vmul.f32 %v4864_v37, %v1228_v43  ;;  %vm1247_vm7 = vweird.f32 %v4864_v37 }
 0x75c   : > { %4865 = vrsqrt.f32 %v1229_v45  ;;  %vm1248_vm9 = vmor %vm1246_vm8, %vm1247_vm7  ;;  %vm1256_vm11 = vweird.f32 %v1229_v45 }
 0x75d   : > { %v1242_v2 = vmul.f32 %v4864_v37, %v1241_v1 }
 0x75f   : > { %v1243_v3 = vmul.f32 0.5, %v1242_v2 }
 0x761   : > { %v1244_v4 = vsub.f32 1.5, %v1243_v3 }
 0x762   : > { %v4866_v5 = vpop.eup %4865 }
 0x763   : > { %v1245_v6 = vmul.f32 %v4864_v37, %v1244_v4  ;;  %v1251_v7 = vmul.f32 %v4866_v5, %v1229_v45  ;;  %vm1257_vm10 = vweird.f32 %v4866_v5 }
 0x764   : > { %vm1258_vm12 = vmor %vm1256_vm11, %vm1257_vm10 }
 0x765   : > { %v1249_v8 = vsel %vm1248_vm9, %v4864_v37, %v1245_v6  ;;  %v1252_v9 = vmul.f32 %v4866_v5, %v1251_v7 }
 0x766   : > { %v1261_v10 = vmul.f32 %v1249_v8, %v1210_v22 }
 0x767   : > { %v1253_v11 = vmul.f32 0.5, %v1252_v9 }
 0x768   : > { %v1265_v12 = vmul.f32 %v4772_v54, %v1261_v10 }
 0x769   : > { %v1254_v15 = vsub.f32 1.5, %v1253_v11 }
 0x76a   : > { %v1269_v14 = vadd.f32 %v4773_v58, %v1265_v12 }
 0x76b   : > { %v1255_v16 = vmul.f32 %v4866_v5, %v1254_v15 }
 0x76c   : > { %4545 = vmatmul.msk.f32.gmra.mxu2 %vm389_vm2, %v1269_v14 }
 0x76d   : > { %v1259_v17 = vsel %vm1258_vm12, %v4866_v5, %v1255_v16 }
 0x76e   : > { %v1262_v18 = vmul.f32 %v1259_v17, %v5588_v36  ;;  %v1441_v36 = vld [vmem:[%s6889_s1 + $0x138] sm:$0xff] }
 0x76f   : > { %1454 = vmatpush.msrb.mxu3 %v1441_v36 }
 0x770   : > { %v1266_v19 = vmul.f32 %v4772_v54, %v1262_v18 }
 0x771   : > { %1455 = vmatpush.msrb.mxu3 %v1440_v39 }
 0x772   : > { %v1270_v21 = vadd.f32 %v4773_v58, %v1266_v19 }
 0x773   : > { %1456 = vmatpush.msrb.mxu3 %v1439_v40 }
 0x774   : > { %4546 = vmatmul.msk.f32.gmra.mxu2 %vm389_vm2, %v1270_v21 }
 0x775   : > { %1457 = vmatpush.msrb.mxu3 %v1438_v41 }
 0x777   : > { %1458 = vmatpush.msrb.mxu3 %v1437_v44 }
 0x779   : > { %1459 = vmatpush.msrb.mxu3 %v1436_v50 }
 0x77b   : > { %1460 = vmatpush.msrb.mxu3 %v1435_v42 }
 0x77d   : > { %1461 = vmatpush.msrb.mxu3 %v1434_v47 }
 0x77f   : > { %1462 = vmatpush.msrb.mxu3 %v1433_v53 }
 0x781   : > { %1463 = vmatpush.msrb.mxu3 %v1432_v55 }
 0x794   : > { %v1303_v27 = vpop.f32.mrf.mxu2 }
 0x795   : > { %v5633_v25 = vadd.f32 %v5624_v23, %v1303_v27 }
 0x797   : > { %v5639_v22 = vmul.f32 0.70710677, %v5633_v25  ;;  %v1312_v10 = vmul.f32 0.5, %v5633_v25 }
 0x799   : > { %v1318_v32 = vand.u32 2147483647, %v5639_v22  ;;  %vm1417_vm7 = vcmp.ge.f32.partialorder %v5639_v22, 0.0 }
 0x79b   : > { %v1321_v35 = vmul.f32 0.3275911, %v1318_v32  ;;  %v1399_v59 = vsub.f32 0.0, %v1318_v32 }
 0x79d   : > { %v1324_v38 = vadd.f32 1.0, %v1321_v35  ;;  %v1402_v43 = vmul.f32 %v1399_v59, %v1318_v32 }
 0x79f   : > { %4867 = vrcp.f32 %v1324_v38  ;;  %v1338_v48 = vand.u32 2147483648, %v1324_v38  ;;  %v1336_v52 = vand.u32 2147483647, %v1324_v38  ;;  %vm1332_vm4 = vweird.f32 %v1324_v38 }
 0x7a0   : > { %v1405_v37 = vmul.f32 1.442695, %v1402_v43 }
 0x7a1   : > { %v1339_v57 = vor.u32 1.1754944e-38, %v1338_v48  ;;  %vm1337_vm6 = vcmp.eq.f32.partialorder %v1336_v52, 8.507059e+37 }
 0x7a2   : > { %4869 = vpow2.f32 %v1405_v37 }
 0x7a5   : > { %v4868_v46 = vpop.eup %4867 }
 0x7a6   : > { %v1328_v49 = vmul.f32 %v4868_v46, %v1324_v38  ;;  %vm1333_vm13 = vweird.f32 %v4868_v46 }
 0x7a7   : > { %vm1334_vm5 = vmor %vm1332_vm4, %vm1333_vm13 }
 0x7a8   : > { %v1329_v29 = vsub.f32 1.0, %v1328_v49  ;;  %v4870_v5 = vpop.eup %4869 }
 0x7aa   : > { %v1330_v51 = vmul.f32 %v4868_v46, %v1329_v29 }
 0x7ac   : > { %v1331_v54 = vadd.f32 %v4868_v46, %v1330_v51 }
 0x7ae   : > { %v1335_v58 = vsel %vm1334_vm5, %v4868_v46, %v1331_v54 }
 0x7af   : > { %v1340_v56 = vsel %vm1337_vm6, %v1339_v57, %v1335_v58 }
 0x7b0   : > { %v1372_v60 = vmul.f32 1.0614054, %v1340_v56 }
 0x7b2   : > { %v1375_v61 = vadd.f32 -1.4531521, %v1372_v60 }
 0x7b4   : > { %v1378_v62 = vmul.f32 %v1375_v61, %v1340_v56 }
 0x7b6   : > { %v1381_v63 = vadd.f32 1.4214138, %v1378_v62 }
 0x7b8   : > { %v1384_v45 = vmul.f32 %v1381_v63, %v1340_v56 }
 0x7ba   : > { %v1387_v1 = vadd.f32 -0.28449672, %v1384_v45 }
 0x7bc   : > { %v1390_v2 = vmul.f32 %v1387_v1, %v1340_v56 }
 0x7be   : > { %v1393_v3 = vadd.f32 0.2548296, %v1390_v2 }
 0x7c0   : > { %v1396_v4 = vmul.f32 %v1393_v3, %v1340_v56 }
 0x7c2   : > { %v1411_v6 = vmul.f32 %v4870_v5, %v1396_v4 }
 0x7c4   : > { %v1414_v7 = vsub.f32 1.0, %v1411_v6 }
 0x7c6   : > { %v1420_v8 = vsub.f32 0.0, %v1414_v7 }
 0x7c8   : > { %v1423_v9 = vsel %vm1417_vm7, %v1414_v7, %v1420_v8 }
 0x7c9   : > { %v1426_v11 = vadd.f32 1.0, %v1423_v9 }
 0x7cb   : > { %v1429_v12 = vmul.f32 %v1426_v11, %v1312_v10 }
 0x7cd   : > { %1464 = vmatmul.f32.vlgmr.msrb.gmra.mxu3 %v1429_v12 }
 0x7ef   : > { %v1306_v15 = vpop.f32.mrf.mxu2 }
 0x7f0   : > { %v5681_v14 = vadd.f32 %v5624_v23, %v1306_v15 }
 0x7f2   : > { %v5684_v16 = vmul.f32 0.70710677, %v5681_v14 }
 0x7f4   : > { %v1319_v17 = vand.u32 2147483647, %v5684_v16  ;;  %vm1418_vm6 = vcmp.ge.f32.partialorder %v5684_v16, 0.0  ;;  %v4775_v16 = vld [vmem:[%s6889_s1 + $0x170] ss:$0 sm:$0xff] }
 0x7f6   : > { %v1322_v18 = vmul.f32 0.3275911, %v1319_v17  ;;  %v1400_v41 = vsub.f32 0.0, %v1319_v17 }
 0x7f7   : > { %v1309_v19 = vpop.f32.mrf.mxu2 }
 0x7f8   : > { %v1325_v21 = vadd.f32 1.0, %v1322_v18  ;;  %v5688_v24 = vadd.f32 %v5624_v23, %v1309_v19  ;;  %v1403_v51 = vmul.f32 %v1400_v41, %v1319_v17  ;;  %v1313_v18 = vmul.f32 0.5, %v5681_v14 }
 0x7fa   : > { %4871 = vrcp.f32 %v1325_v21  ;;  %v5691_v26 = vmul.f32 0.70710677, %v5688_v24  ;;  %v1353_v32 = vand.u32 2147483648, %v1325_v21  ;;  %v1351_v35 = vand.u32 2147483647, %v1325_v21 }
 0x7fb   : > { %vm1347_vm9 = vweird.f32 %v1325_v21  ;;  %v1407_v57 = vmul.f32 1.442695, %v1403_v51 }
 0x7fc   : > { %v1320_v27 = vand.u32 2147483647, %v5691_v26  ;;  %v1354_v38 = vor.u32 1.1754944e-38, %v1353_v32  ;;  %vm1352_vm11 = vcmp.eq.f32.partialorder %v1351_v35, 8.507059e+37  ;;  %vm1419_vm7 = vcmp.ge.f32.partialorder %v5691_v26, 0.0 }
 0x7fe   : > { %v1323_v28 = vmul.f32 0.3275911, %v1320_v27  ;;  %v1401_v58 = vsub.f32 0.0, %v1320_v27 }
 0x800   : > { %v4872_v25 = vpop.eup %4871  ;;  %v1326_v30 = vadd.f32 1.0, %v1323_v28  ;;  %v1404_v62 = vmul.f32 %v1401_v58, %v1320_v27  ;;  %v1560_v58 = vld [vmem:[%s6889_s1 + $0x198] sm:$0xff] }
 0x801   : > { %v1343_v22 = vmul.f32 %v4872_v25, %v1325_v21  ;;  %vm1348_vm8 = vweird.f32 %v4872_v25 }
 0x802   : > { %4873 = vrcp.f32 %v1326_v30  ;;  %vm1349_vm10 = vmor %vm1347_vm9, %vm1348_vm8  ;;  %v1368_v50 = vand.u32 2147483648, %v1326_v30  ;;  %v1366_v48 = vand.u32 2147483647, %v1326_v30  ;;  %vm1362_vm13 = vweird.f32 %v1326_v30 }
 0x803   : > { %v1344_v31 = vsub.f32 1.0, %v1343_v22  ;;  %4875 = vpow2.f32 %v1407_v57  ;;  %v1409_v2 = vmul.f32 1.442695, %v1404_v62  ;;  %v1314_v22 = vmul.f32 0.5, %v5688_v24  ;;  %v1561_v57 = vld [vmem:[%s6889_s1 + $0x1a0] sm:$0xff] }
 0x804   : > { %v1369_v53 = vor.u32 1.1754944e-38, %v1368_v50  ;;  %vm1367_vm5 = vcmp.eq.f32.partialorder %v1366_v48, 8.507059e+37  ;;  %1585 = vmatpush.msrb.mxu0 %v1561_v57 }
 0x805   : > { %v1345_v34 = vmul.f32 %v4872_v25, %v1344_v31  ;;  %4877 = vpow2.f32 %v1409_v2 }
 0x806   : > { %1586 = vmatpush.msrb.mxu0 %v1560_v58 }
 0x807   : > { %v1346_v36 = vadd.f32 %v4872_v25, %v1345_v34 }
 0x808   : > { %v4874_v23 = vpop.eup %4873 }
 0x809   : > { %v1358_v39 = vmul.f32 %v4874_v23, %v1326_v30  ;;  %v1350_v40 = vsel %vm1349_vm10, %v4872_v25, %v1346_v36  ;;  %vm1363_vm12 = vweird.f32 %v4874_v23  ;;  %v4876_v5 = vpop.eup %4875 }
 0x80a   : > { %v1355_v44 = vsel %vm1352_vm11, %v1354_v38, %v1350_v40  ;;  %vm1364_vm4 = vmor %vm1362_vm13, %vm1363_vm12 }
 0x80b   : > { %v1359_v46 = vsub.f32 1.0, %v1358_v39  ;;  %v1373_v49 = vmul.f32 1.0614054, %v1355_v44  ;;  %v4878_v17 = vpop.eup %4877 }
 0x80d   : > { %v1376_v29 = vadd.f32 -1.4531521, %v1373_v49  ;;  %v1360_v42 = vmul.f32 %v4874_v23, %v1359_v46 }
 0x80f   : > { %v1379_v52 = vmul.f32 %v1376_v29, %v1355_v44  ;;  %v1361_v47 = vadd.f32 %v4874_v23, %v1360_v42 }
 0x811   : > { %v1382_v54 = vadd.f32 1.4214138, %v1379_v52  ;;  %v1365_v55 = vsel %vm1364_vm4, %v4874_v23, %v1361_v47 }
 0x812   : > { %v1370_v56 = vsel %vm1367_vm5, %v1369_v53, %v1365_v55 }
 0x813   : > { %v1385_v59 = vmul.f32 %v1382_v54, %v1355_v44  ;;  %v1374_v60 = vmul.f32 1.0614054, %v1370_v56 }
 0x815   : > { %v1388_v61 = vadd.f32 -0.28449672, %v1385_v59  ;;  %v1377_v43 = vadd.f32 -1.4531521, %v1374_v60  ;;  %v1558_v59 = vld [vmem:[%s6889_s1 + $0x188] sm:$0xff] }
 0x817   : > { %v1391_v63 = vmul.f32 %v1388_v61, %v1355_v44  ;;  %v1380_v37 = vmul.f32 %v1377_v43, %v1370_v56 }
 0x819   : > { %v1394_v45 = vadd.f32 0.2548296, %v1391_v63  ;;  %v1383_v1 = vadd.f32 1.4214138, %v1380_v37 }
 0x81b   : > { %v1397_v3 = vmul.f32 %v1394_v45, %v1355_v44  ;;  %v1386_v4 = vmul.f32 %v1383_v1, %v1370_v56 }
 0x81d   : > { %v1412_v6 = vmul.f32 %v4876_v5, %v1397_v3  ;;  %v1389_v7 = vadd.f32 -0.28449672, %v1386_v4  ;;  %v4776_v3 = vld [vmem:[%s6889_s1 + $0x178] ss:$0 sm:$0xff] }
 0x81f   : > { %v1415_v8 = vsub.f32 1.0, %v1412_v6  ;;  %v1392_v9 = vmul.f32 %v1389_v7, %v1370_v56  ;;  %v4777_v6 = vld [vmem:[%s6889_s1 + $0x180] ss:$0 sm:$0xff] }
 0x821   : > { %v1421_v10 = vsub.f32 0.0, %v1415_v8  ;;  %v1395_v11 = vadd.f32 0.2548296, %v1392_v9 }
 0x823   : > { %v1424_v12 = vsel %vm1418_vm6, %v1415_v8, %v1421_v10  ;;  %v1398_v15 = vmul.f32 %v1395_v11, %v1370_v56  ;;  %v1559_v56 = vld [vmem:[%s6889_s1 + $0x190] sm:$0xff] }
 0x824   : > { %v1427_v19 = vadd.f32 1.0, %v1424_v12  ;;  %1587 = vmatpush.msrb.mxu0 %v1559_v56 }
 0x825   : > { %v1413_v21 = vmul.f32 %v4878_v17, %v1398_v15 }
 0x826   : > { %v1430_v27 = vmul.f32 %v1427_v19, %v1313_v18  ;;  %1588 = vmatpush.msrb.mxu0 %v1558_v59 }
 0x827   : > { %v1416_v28 = vsub.f32 1.0, %v1413_v21 }
 0x828   : > { %1467 = vmatmul.f32.gmra.mxu3 %v1430_v27 }
 0x829   : > { %v1422_v25 = vsub.f32 0.0, %v1416_v28 }
 0x82b   : > { %v1425_v30 = vsel %vm1419_vm7, %v1416_v28, %v1422_v25 }
 0x82c   : > { %v1428_v31 = vadd.f32 1.0, %v1425_v30 }
 0x82e   : > { %v1431_v32 = vmul.f32 %v1428_v31, %v1314_v22 }
 0x830   : > { %1470 = vmatmul.f32.gmra.mxu3 %v1431_v32 }
 0x850   : > { %v1465_v34 = vpop.f32.mrf.mxu3 }
 0x851   : > { %v1474_v14 = vadd.f32 %v1465_v34, %v5566_v0 }
 0x853   : > { %v5702_v35 = vadd.f32 %v4775_v16, %v1474_v14 }
 0x855   : > { %v1484_v36 = vsel %vm389_vm2, %v5702_v35, 0.0 }
 0x856   : > { %1485 = vadd.xlane.f32.xlu2 %v1484_v36 }
 0x8ab   : > { %v1468_v26 = vpop.f32.mrf.mxu3 }
 0x8ac   : > { %v1475_v23 = vadd.f32 %v1468_v26, %v5571_v13 }
 0x8ae   : > { %v5707_v24 = vadd.f32 %v4775_v16, %v1475_v23 }
 0x8b0   : > { %v1487_v38 = vsel %vm389_vm2, %v5707_v24, 0.0 }
 0x8b1   : > { %1488 = vadd.xlane.f32.xlu1 %v1487_v38 }
 0x8b3   : > { %v1471_v39 = vpop.f32.mrf.mxu3 }
 0x8b4   : > { %v1476_v40 = vadd.f32 %v1471_v39, %v5576_v20 }
 0x8b6   : > { %v5712_v41 = vadd.f32 %v4775_v16, %v1476_v40 }
 0x8b8   : > { %v1490_v0 = vsel %vm396_vm3, %v5712_v41, 0.0 }
 0x8b9   : > { %1491 = vadd.xlane.f32.xlu0 %v1490_v0 }
 0x8c9   : > { %v1486_v44 = vpop.xlane.xlu2 %1485 }
 0x8ca   : > { %v1493_v46 = vmul.f32 %v1486_v44, %v5280_v33 }
 0x8cc   : > { %v1496_v13 = vsub.f32 %v5702_v35, %v1493_v46  ;;  %v4778_v46 = vld [vmem:[%s6889_s1 + $0x1a8] ss:$0 sm:$0xff] }
 0x8ce   : > { %v1499_v49 = vmul.f32 %v1496_v13, %v1496_v13 }
 0x8d0   : > { %v1502_v50 = vsel %vm389_vm2, %v1499_v49, 0.0 }
 0x8d1   : > { %1503 = vadd.xlane.f32.xlu2 %v1502_v50 }
 0x924   : > { %v1489_v29 = vpop.xlane.xlu1 %1488 }
 0x925   : > { %v1494_v42 = vmul.f32 %v1489_v29, %v5280_v33 }
 0x927   : > { %v1497_v20 = vsub.f32 %v5707_v24, %v1494_v42 }
 0x929   : > { %v1500_v48 = vmul.f32 %v1497_v20, %v1497_v20 }
 0x92b   : > { %v1505_v51 = vsel %vm389_vm2, %v1500_v48, 0.0 }
 0x92c   : > { %1506 = vadd.xlane.f32.xlu1 %v1505_v51  ;;  %v1492_v52 = vpop.xlane.xlu0 %1491 }
 0x92d   : > { %v1495_v47 = vmul.f32 %v1492_v52, %v5280_v33 }
 0x92f   : > { %v5724_v53 = vsub.f32 %v5712_v41, %v1495_v47 }
 0x931   : > { %v1501_v54 = vmul.f32 %v5724_v53, %v5724_v53 }
 0x933   : > { %v1508_v55 = vsel %vm396_vm3, %v1501_v54, 0.0 }
 0x934   : > { %1509 = vadd.xlane.f32.xlu0 %v1508_v55 }
 0x944   : > { %v1504_v60 = vpop.xlane.xlu2 %1503 }
 0x945   : > { %v1511_v61 = vmul.f32 %v1504_v60, %v5280_v33 }
 0x947   : > { %v1514_v43 = vadd.f32 1e-05, %v1511_v61 }
 0x949   : > { %4879 = vrsqrt.f32 %v1514_v43  ;;  %vm1523_vm9 = vweird.f32 %v1514_v43 }
 0x94f   : > { %v4880_v62 = vpop.eup %4879 }
 0x950   : > { %v1518_v63 = vmul.f32 %v4880_v62, %v1514_v43  ;;  %vm1524_vm8 = vweird.f32 %v4880_v62 }
 0x951   : > { %vm1525_vm10 = vmor %vm1523_vm9, %vm1524_vm8 }
 0x952   : > { %v1519_v37 = vmul.f32 %v4880_v62, %v1518_v63 }
 0x954   : > { %v1520_v45 = vmul.f32 0.5, %v1519_v37 }
 0x956   : > { %v1521_v1 = vsub.f32 1.5, %v1520_v45 }
 0x958   : > { %v1522_v2 = vmul.f32 %v4880_v62, %v1521_v1 }
 0x95a   : > { %v1526_v4 = vsel %vm1525_vm10, %v4880_v62, %v1522_v2 }
 0x95b   : > { %v1547_v5 = vmul.f32 %v1526_v4, %v1496_v13 }
 0x95d   : > { %v1551_v7 = vmul.f32 %v4776_v3, %v1547_v5 }
 0x95f   : > { %v1555_v8 = vadd.f32 %v4777_v6, %v1551_v7 }
 0x961   : > { %4547 = vmatmul.msk.f32.vlgmr.msrb.gmra.mxu0 %vm389_vm2, %v1555_v8 }
 0x99f   : > { %v1507_v9 = vpop.xlane.xlu1 %1506 }
 0x9a0   : > { %v1512_v10 = vmul.f32 %v1507_v9, %v5280_v33 }
 0x9a2   : > { %v1515_v11 = vadd.f32 1e-05, %v1512_v10 }
 0x9a4   : > { %4881 = vrsqrt.f32 %v1515_v11  ;;  %vm1533_vm12 = vweird.f32 %v1515_v11 }
 0x9a7   : > { %v1510_v12 = vpop.xlane.xlu0 %1509 }
 0x9a8   : > { %v1513_v15 = vmul.f32 %v1510_v12, %v5280_v33 }
 0x9aa   : > { %v4882_v17 = vpop.eup %4881  ;;  %v1516_v18 = vadd.f32 1e-05, %v1513_v15 }
 0x9ab   : > { %v1528_v19 = vmul.f32 %v4882_v17, %v1515_v11  ;;  %vm1534_vm11 = vweird.f32 %v4882_v17 }
 0x9ac   : > { %4883 = vrsqrt.f32 %v1516_v18  ;;  %vm1535_vm13 = vmor %vm1533_vm12, %vm1534_vm11  ;;  %vm1543_vm5 = vweird.f32 %v1516_v18 }
 0x9ad   : > { %v1529_v21 = vmul.f32 %v4882_v17, %v1528_v19 }
 0x9af   : > { %v1530_v27 = vmul.f32 0.5, %v1529_v21 }
 0x9b1   : > { %v1531_v28 = vsub.f32 1.5, %v1530_v27 }
 0x9b2   : > { %v4884_v25 = vpop.eup %4883 }
 0x9b3   : > { %v1532_v30 = vmul.f32 %v4882_v17, %v1531_v28  ;;  %v1538_v22 = vmul.f32 %v4884_v25, %v1516_v18  ;;  %vm1544_vm4 = vweird.f32 %v4884_v25 }
 0x9b4   : > { %vm1545_vm6 = vmor %vm1543_vm5, %vm1544_vm4 }
 0x9b5   : > { %v1536_v31 = vsel %vm1535_vm13, %v4882_v17, %v1532_v30  ;;  %v1539_v32 = vmul.f32 %v4884_v25, %v1538_v22 }
 0x9b6   : > { %v1548_v16 = vmul.f32 %v1536_v31, %v1497_v20 }
 0x9b7   : > { %v1540_v34 = vmul.f32 0.5, %v1539_v32 }
 0x9b8   : > { %v1552_v14 = vmul.f32 %v4776_v3, %v1548_v16 }
 0x9b9   : > { %v1541_v36 = vsub.f32 1.5, %v1540_v34 }
 0x9ba   : > { %v1556_v26 = vadd.f32 %v4777_v6, %v1552_v14 }
 0x9bb   : > { %v1542_v23 = vmul.f32 %v4884_v25, %v1541_v36 }
 0x9bc   : > { %4548 = vmatmul.msk.f32.gmra.mxu0 %vm389_vm2, %v1556_v26 }
 0x9bd   : > { %v1546_v38 = vsel %vm1545_vm6, %v4884_v25, %v1542_v23 }
 0x9be   : > { %v1549_v39 = vmul.f32 %v1546_v38, %v5724_v53 }
 0x9c0   : > { %v1553_v40 = vmul.f32 %v4776_v3, %v1549_v39 }
 0x9c2   : > { %v1557_v0 = vadd.f32 %v4777_v6, %v1553_v40 }
 0x9c4   : > { %4549 = vmatmul.msk.f32.gmra.mxu0 %vm389_vm2, %v1557_v0 }
 0x9de   : > { %v1590_v44 = vpop.f32.mrf.mxu0 }
 0x9df   : > { %v5761_v29 = vadd.f32 %v4778_v46, %v1590_v44 }
 0xa39   : > { %v1593_v13 = vpop.f32.mrf.mxu0 }
 0xa3a   : > { %v5757_v49 = vadd.f32 %v4778_v46, %v1593_v13 }
 0xa3c   : > { %1610 = vrot.lane.b32.xlu0 %v5757_v49, %s5127_s17 }
 0xa41   : > { %v1596_v50 = vpop.f32.mrf.mxu0 }
 0xa42   : > { %v5763_v42 = vadd.f32 %v4778_v46, %v1596_v50 }
 0xa44   : > { %1608 = vrot.lane.b32.xlu0 %v5761_v29, %s5127_s17  ;;  %1606 = vrot.lane.b32.xlu1 %v5763_v42, %s5126_s16 }
 0xa45   : > { %1612 = vrot.lane.b32.xlu2 %v5763_v42, %s5127_s17 }
 0xa4c   : > { %1616 = vrot.lane.b32.xlu0 %v5757_v49, %s5128_s18  ;;  %1602 = vrot.lane.b32.xlu1 %v5761_v29, %s5126_s16 }
 0xa4d   : > { %1604 = vrot.lane.b32.xlu2 %v5757_v49, %s5126_s16 }
 0xa54   : > { %1614 = vrot.lane.b32.xlu1 %v5761_v29, %s5128_s18 }
 0xa55   : > { %1618 = vrot.lane.b32.xlu2 %v5763_v42, %s5128_s18  ;;  %s321_s18 = scalar_lea.vmem %s6892_s4, %s6891_s23 }
 0xa9f   : > { %v1613_v20 = vpop.permute.xlu2 %1612 }
 0xaa0   : > { %1712 = vrot.lane.b32.xlu2 %v1613_v20, %s5129_s20 }
 0xaa7   : > { %v5782_v48 = vpop.permute.xlu2 %1604 }
 0xaa8   : > { %1666 = vrot.lane.b32.xlu2 %v5782_v48, %s5129_s20 }
 0xaae   : > { %v1611_v51 = vpop.permute.xlu0 %1610 }
 0xaaf   : > { %1710 = vrot.lane.b32.xlu1 %v1611_v51, %s5129_s20  ;;  %v5797_v54 = vpop.permute.xlu2 %1618 }
 0xab6   : > { %v1607_v52 = vpop.permute.xlu1 %1606  ;;  %v1609_v53 = vpop.permute.xlu0 %1608 }
 0xab7   : > { %1668 = vrot.lane.b32.xlu0 %v1607_v52, %s5129_s20  ;;  %1624 = vrot.lane.b32.xlu1 %v5763_v42, %s5129_s20  ;;  %v4744_v58 = vpack.i.bf16 %v1609_v53, %v1611_v51 }
 0xabe   : > { %v5790_v47 = vpop.permute.xlu1 %1602  ;;  %v5807_v57 = vpop.permute.xlu0 %1616 }
 0xabf   : > { %1664 = vrot.lane.b32.xlu2 %v5790_v47, %s5129_s20  ;;  %1620 = vrot.lane.b32.xlu1 %v5761_v29, %s5129_s20 }
 0xac0   : > { %1708 = vrot.lane.b32.xlu0 %v1609_v53, %s5129_s20 }
 0xac6   : > { %v5799_v55 = vpop.permute.xlu1 %1614 }
 0xac7   : > { %1756 = vrot.lane.b32.xlu2 %v5797_v54, %s5129_s20  ;;  %1752 = vrot.lane.b32.xlu1 %v5799_v55, %s5129_s20 }
 0xac8   : > { %1622 = vrot.lane.b32.xlu0 %v5757_v49, %s5129_s20 }
 0xacf   : > { %2034 = vrot.lane.b32.xlu2 %v1613_v20, %s5130_s21  ;;  %1944 = vrot.lane.b32.xlu1 %v5763_v42, %s5130_s21 }
 0xad0   : > { %1754 = vrot.lane.b32.xlu0 %v5807_v57, %s5129_s20 }
 0xad8   : > { %4745 = vrot.lane.b32.xlu0 %v4744_v58, %s5130_s21  ;;  %v4754_v58 = vpack.i.bf16 %v5790_v47, %v5761_v29 }
 0xae0   : > { %1989 = vrot.lane.b32.xlu0 %v1607_v52, %s5130_s21 }
 0xafa   : > { %v1713_v56 = vpop.permute.xlu2 %1712 }
 0xafb   : > { %4562 = vmatpush.xpose.msk.msra.mxu3 %vm540_vm14, %v1713_v56 }
 0xb02   : > { %v1667_v59 = vpop.permute.xlu2 %1666 }
 0xb19   : > { %v1665_v60 = vpop.permute.xlu2 %1664 }
 0xb21   : > { %v1757_v61 = vpop.permute.xlu2 %1756  ;;  %v1711_v43 = vpop.permute.xlu1 %1710 }
 0xb22   : > { %4563 = vmatpush.xpose.msk.msra.mxu3 %vm540_vm14, %v1711_v43  ;;  %4568 = vmatpush.xpose.msk.msra.mxu0 %vm540_vm14, %v1757_v61 }
 0xb29   : > { %v1625_v62 = vpop.permute.xlu1 %1624  ;;  %v1669_v63 = vpop.permute.xlu0 %1668 }
 0xb2a   : > { %4550 = vmatpush.xpose.msk.msrb.mxu1 %vm540_vm14, %v1625_v62  ;;  %4556 = vmatpush.xpose.msk.msra.mxu2 %vm540_vm14, %v1669_v63  ;;  %v2035_v1 = vpop.permute.xlu2 %2034 }
 0xb2e   : > { %4557 = vmatpush.xpose.msk.msra.mxu2 %vm540_vm14, %v1667_v59 }
 0xb31   : > { %v1621_v37 = vpop.permute.xlu1 %1620 }
 0xb32   : > { %v1709_v45 = vpop.permute.xlu0 %1708  ;;  %4558 = vmatpush.xpose.msk.msra.mxu2 %vm540_vm14, %v1665_v60 }
 0xb33   : > { %4564 = vmatpush.xpose.msk.msra.mxu3 %vm540_vm14, %v1709_v45 }
 0xb35   : > { %4559 = vmatmul.msk.f32.vlgmr.msra.gmra.mxu2 %vm540_vm14, %v5790_v47 }
 0xb36   : > { %4565 = vmatmul.msk.f32.vlgmr.msra.gmra.mxu3 %vm540_vm14, %v1609_v53  ;;  %v4749_v53 = vpack.i.bf16 %v5782_v48, %v5757_v49 }
 0xb37   : > { %4582 = vmatpush.msk.msrb.mxu3 %vm373_vm1, %v2035_v1 }
 0xb39   : > { %v1753_v2 = vpop.permute.xlu1 %1752 }
 0xb3a   : > { %v1623_v3 = vpop.permute.xlu0 %1622 }
 0xb3b   : > { %4551 = vmatpush.xpose.msk.msrb.mxu1 %vm540_vm14, %v1623_v3 }
 0xb3d   : > { %4560 = vmatmul.msk.f32.gmra.mxu2 %vm540_vm14, %v5782_v48 }
 0xb3e   : > { %4566 = vmatmul.msk.f32.gmra.mxu3 %vm540_vm14, %v1611_v51 }
 0xb3f   : > { %4552 = vmatpush.xpose.msk.msrb.mxu1 %vm540_vm14, %v1621_v37 }
 0xb41   : > { %v1945_v4 = vpop.permute.xlu1 %1944 }
 0xb42   : > { %4553 = vmatmul.msk.f32.vlgmr.msrb.gmra.mxu1 %vm540_vm14, %v5761_v29  ;;  %v1755_v5 = vpop.permute.xlu0 %1754 }
 0xb43   : > { %4569 = vmatpush.xpose.msk.msra.mxu0 %vm540_vm14, %v1755_v5  ;;  %4574 = vmatpush.msk.msra.mxu1 %vm373_vm1, %v1945_v4 }
 0xb45   : > { %4561 = vmatmul.msk.f32.gmra.mxu2 %vm540_vm14, %v1607_v52 }
 0xb46   : > { %4567 = vmatmul.msk.f32.gmra.mxu3 %vm540_vm14, %v1613_v20 }
 0xb47   : > { %4570 = vmatpush.xpose.msk.msra.mxu0 %vm540_vm14, %v1753_v2 }
 0xb4a   : > { %4554 = vmatmul.msk.f32.gmra.mxu1 %vm540_vm14, %v5757_v49  ;;  %4571 = vmatmul.msk.f32.vlgmr.msra.gmra.mxu0 %vm540_vm14, %v5799_v55  ;;  %v4746_v6 = vpop.permute.xlu0 %4745 }
 0xb4b   : > { %v4747_v7 = vunpack.i.l.bf16 %v4746_v6  ;;  %v4748_v8 = vunpack.i.h.bf16 %v4746_v6 }
 0xb4d   : > { %2063 = vmatpush.msrb.mxu3 %v4747_v7 }
 0xb4f   : > { %2064 = vmatpush.msrb.mxu3 %v4748_v8 }
 0xb52   : > { %4555 = vmatmul.msk.f32.gmra.mxu1 %vm540_vm14, %v5763_v42  ;;  %4572 = vmatmul.msk.f32.gmra.mxu0 %vm540_vm14, %v5807_v57  ;;  %v1990_v9 = vpop.permute.xlu0 %1989 }
 0xb53   : > { %4578 = vmatpush.msk.msrb.mxu2 %vm373_vm1, %v1990_v9 }
 0xb5a   : > { %4573 = vmatmul.msk.f32.gmra.mxu0 %vm540_vm14, %v5797_v54 }
 0xbb8   : > { %v1699_v15 = vpop.f32.mrf.mxu2 }
 0xbb9   : > { %v1743_v27 = vpop.f32.mrf.mxu3  ;;  %v1799_v38 = vmul.f32 0.35355338, %v1699_v15 }
 0xbba   : > { %v1802_v30 = vmul.f32 0.35355338, %v1743_v27 }
 0xbbb   : > { %v1817_v40 = vsel %vm723_vm15, %v1799_v38, -inf }
 0xbbc   : > { %v1826_v36 = vsel %vm723_vm15, %v1802_v30, -inf }
 0xbbf   : > { %v1655_v10 = vpop.f32.mrf.mxu1 }
 0xbc0   : > { %v1796_v11 = vmul.f32 0.35355338, %v1655_v10  ;;  %v1702_v34 = vpop.f32.mrf.mxu2 }
 0xbc1   : > { %v1746_v23 = vpop.f32.mrf.mxu3  ;;  %v5862_v46 = vmul.f32 0.35355338, %v1702_v34 }
 0xbc2   : > { %v1808_v12 = vsel %vm723_vm15, %v1796_v11, -inf  ;;  %v1803_v39 = vmul.f32 0.35355338, %v1746_v23 }
 0xbc3   : > { %1809 = vmax.xlane.f32.xlu0 %v1808_v12  ;;  %v1820_v50 = vsel %vm723_vm15, %v5862_v46, -inf }
 0xbc4   : > { %v1829_v0 = vsel %vm723_vm15, %v1803_v39, -inf }
 0xbc7   : > { %v1658_v17 = vpop.f32.mrf.mxu1  ;;  %v1787_v18 = vpop.f32.mrf.mxu0 }
 0xbc8   : > { %v1797_v19 = vmul.f32 0.35355338, %v1658_v17  ;;  %v1805_v21 = vmul.f32 0.35355338, %v1787_v18  ;;  %v1705_v44 = vpop.f32.mrf.mxu2 }
 0xbc9   : > { %v5864_v13 = vmul.f32 0.35355338, %v1705_v44  ;;  %v1749_v48 = vpop.f32.mrf.mxu3 }
 0xbca   : > { %v1811_v28 = vsel %vm723_vm15, %v1797_v19, -inf  ;;  %v1835_v25 = vsel %vm723_vm15, %v1805_v21, -inf  ;;  %v5884_v47 = vmul.f32 0.35355338, %v1749_v48 }
 0xbcb   : > { %1812 = vmax.xlane.f32.xlu0 %v1811_v28  ;;  %1836 = vmax.xlane.f32.xlu2 %v1835_v25  ;;  %v1823_v42 = vsel %vm730_vm0, %v5864_v13, -inf }
 0xbcc   : > { %v1832_v8 = vsel %vm730_vm0, %v5884_v47, -inf }
 0xbcf   : > { %v1661_v22 = vpop.f32.mrf.mxu1  ;;  %v1790_v31 = vpop.f32.mrf.mxu0 }
 0xbd0   : > { %v1798_v32 = vmul.f32 0.35355338, %v1661_v22  ;;  %v5854_v16 = vmul.f32 0.35355338, %v1790_v31 }
 0xbd2   : > { %v1814_v14 = vsel %vm730_vm0, %v1798_v32, -inf  ;;  %v1838_v26 = vsel %vm723_vm15, %v5854_v16, -inf }
 0xbd3   : > { %1815 = vmax.xlane.f32.xlu1 %v1814_v14  ;;  %1827 = vmax.xlane.f32.xlu2 %v1826_v36 }
 0xbd4   : > { %1839 = vmax.xlane.f32.xlu0 %v1838_v26 }
 0xbd7   : > { %v1793_v20 = vpop.f32.mrf.mxu0 }
 0xbd8   : > { %v5870_v51 = vmul.f32 0.35355338, %v1793_v20 }
 0xbda   : > { %v1841_v52 = vsel %vm730_vm0, %v5870_v51, -inf }
 0xbdb   : > { %1818 = vmax.xlane.f32.xlu1 %v1817_v40  ;;  %1830 = vmax.xlane.f32.xlu2 %v1829_v0 }
 0xbe3   : > { %1821 = vmax.xlane.f32.xlu1 %v1820_v50  ;;  %1824 = vmax.xlane.f32.xlu2 %v1823_v42 }
 0xbeb   : > { %1842 = vmax.xlane.f32.xlu1 %v1841_v52  ;;  %v4759_v52 = vpack.i.bf16 %v5799_v55, %v5807_v57 }
 0xbfb   : > { %4750 = vrot.lane.b32.xlu2 %v4749_v53, %s5130_s21 }
 0xc04   : > { %4755 = vrot.lane.b32.xlu1 %v4754_v58, %s5130_s21 }
 0xc36   : > { %v1810_v56 = vpop.xlane.xlu0 %1809 }
 0xc37   : > { %v1844_v59 = vsub.f32 %v1796_v11, %v1810_v56 }
 0xc39   : > { %v1856_v60 = vmul.f32 1.442695, %v1844_v59 }
 0xc3b   : > { %4885 = vpow2.f32 %v1856_v60 }
 0xc3e   : > { %v1837_v61 = vpop.xlane.xlu2 %1836  ;;  %v1813_v43 = vpop.xlane.xlu0 %1812 }
 0xc3f   : > { %v1853_v62 = vsub.f32 %v1805_v21, %v1837_v61  ;;  %v1845_v45 = vsub.f32 %v1797_v19, %v1813_v43 }
 0xc41   : > { %v5880_v63 = vpop.eup %4885  ;;  %v1874_v37 = vmul.f32 1.442695, %v1853_v62  ;;  %v1858_v29 = vmul.f32 1.442695, %v1845_v45 }
 0xc42   : > { %v1880_v49 = vsel %vm723_vm15, %v5880_v63, 0.0 }
 0xc43   : > { %4887 = vpow2.f32 %v1874_v37  ;;  %1881 = vadd.xlane.f32.xlu0 %v1880_v49 }
 0xc44   : > { %4889 = vpow2.f32 %v1858_v29 }
 0xc46   : > { %v1816_v1 = vpop.xlane.xlu1 %1815  ;;  %v1828_v2 = vpop.xlane.xlu2 %1827 }
 0xc47   : > { %v1846_v3 = vsub.f32 %v1798_v32, %v1816_v1  ;;  %v1850_v6 = vsub.f32 %v1802_v30, %v1828_v2  ;;  %v1840_v53 = vpop.xlane.xlu0 %1839 }
 0xc48   : > { %v1854_v58 = vsub.f32 %v5854_v16, %v1840_v53 }
 0xc49   : > { %v5886_v4 = vpop.eup %4887  ;;  %v1860_v5 = vmul.f32 1.442695, %v1846_v3  ;;  %v1868_v9 = vmul.f32 1.442695, %v1850_v6 }
 0xc4a   : > { %v1907_v7 = vsel %vm723_vm15, %v5886_v4, 0.0  ;;  %v5892_v12 = vpop.eup %4889  ;;  %v1876_v56 = vmul.f32 1.442695, %v1854_v58 }
 0xc4b   : > { %4891 = vpow2.f32 %v1860_v5  ;;  %1908 = vadd.xlane.f32.xlu1 %v1907_v7  ;;  %1833 = vmax.xlane.f32.xlu0 %v1832_v8  ;;  %v1883_v27 = vsel %vm723_vm15, %v5892_v12, 0.0 }
 0xc4c   : > { %4893 = vpow2.f32 %v1868_v9 }
 0xc4e   : > { %v1819_v10 = vpop.xlane.xlu1 %1818  ;;  %v1831_v11 = vpop.xlane.xlu2 %1830 }
 0xc4f   : > { %v1847_v15 = vsub.f32 %v1799_v38, %v1819_v10  ;;  %v1851_v19 = vsub.f32 %v1803_v39, %v1831_v11 }
 0xc51   : > { %v5894_v17 = vpop.eup %4891  ;;  %v1862_v18 = vmul.f32 1.442695, %v1847_v15  ;;  %v1870_v28 = vmul.f32 1.442695, %v1851_v19 }
 0xc52   : > { %v1886_v21 = vsel %vm730_vm0, %v5894_v17, 0.0  ;;  %v5900_v22 = vpop.eup %4893 }
 0xc53   : > { %4895 = vpow2.f32 %v1862_v18  ;;  %1887 = vadd.xlane.f32.xlu2 %v1886_v21  ;;  %1884 = vadd.xlane.f32.xlu0 %v1883_v27  ;;  %v1898_v14 = vsel %vm723_vm15, %v5900_v22, 0.0 }
 0xc54   : > { %4897 = vpow2.f32 %v1870_v28 }
 0xc56   : > { %v1822_v25 = vpop.xlane.xlu1 %1821  ;;  %v1825_v30 = vpop.xlane.xlu2 %1824 }
 0xc57   : > { %v1848_v31 = vsub.f32 %v5862_v46, %v1822_v25  ;;  %v1849_v57 = vsub.f32 %v5864_v13, %v1825_v30 }
 0xc59   : > { %v5903_v32 = vpop.eup %4895  ;;  %v1864_v34 = vmul.f32 1.442695, %v1848_v31  ;;  %v1866_v37 = vmul.f32 1.442695, %v1849_v57 }
 0xc5a   : > { %v1889_v36 = vsel %vm723_vm15, %v5903_v32, 0.0  ;;  %v5909_v23 = vpop.eup %4897 }
 0xc5b   : > { %4899 = vpow2.f32 %v1864_v34  ;;  %1899 = vadd.xlane.f32.xlu2 %v1898_v14  ;;  %1890 = vadd.xlane.f32.xlu1 %v1889_v36  ;;  %v1901_v44 = vsel %vm723_vm15, %v5909_v23, 0.0 }
 0xc5c   : > { %4901 = vpow2.f32 %v1876_v56 }
 0xc5e   : > { %v4751_v26 = vpop.permute.xlu2 %4750  ;;  %v1843_v46 = vpop.xlane.xlu1 %1842 }
 0xc5f   : > { %v4753_v38 = vunpack.i.h.bf16 %v4751_v26  ;;  %v4752_v39 = vunpack.i.l.bf16 %v4751_v26  ;;  %v1855_v1 = vsub.f32 %v5870_v51, %v1843_v46 }
 0xc61   : > { %v5911_v40 = vpop.eup %4899  ;;  %1973 = vmatpush.msra.mxu1 %v4752_v39  ;;  %2018 = vmatpush.msrb.mxu2 %v4753_v38  ;;  %v2120_v38 = vld [vmem:[%s6889_s1 + $0x1b0] sm:$0xff]  ;;  %v2121_v39 = vld [vmem:[%s6889_s1 + $0x1b8] sm:$0xff] }
 0xc62   : > { %v1892_v0 = vsel %vm723_vm15, %v5911_v40, 0.0  ;;  %v5923_v59 = vpop.eup %4901 }
 0xc63   : > { %1893 = vadd.xlane.f32.xlu2 %v1892_v0  ;;  %1902 = vadd.xlane.f32.xlu1 %v1901_v44 }
 0xc67   : > { %2079 = vrot.lane.b32.xlu0 %v5797_v54, %s5130_s21  ;;  %v1910_v54 = vsel %vm723_vm15, %v5923_v59, 0.0 }
 0xc76   : > { %v4756_v50 = vpop.permute.xlu1 %4755 }
 0xc77   : > { %v4758_v42 = vunpack.i.h.bf16 %v4756_v50  ;;  %v4757_v20 = vunpack.i.l.bf16 %v4756_v50 }
 0xc79   : > { %1974 = vmatpush.msra.mxu1 %v4757_v20  ;;  %2019 = vmatpush.msrb.mxu2 %v4758_v42 }
 0xc7b   : > { %2183 = vmatpush.msra.mxu2 %v2120_v38  ;;  %2148 = vmatpush.msrb.mxu1 %v2121_v39 }
 0xc7c   : > { %4760 = vrot.lane.b32.xlu1 %v4759_v52, %s5130_s21  ;;  %v2123_v52 = vld [vmem:[%s6889_s1 + $0x1c8] sm:$0xff] }
 0xc91   : > { %1911 = vadd.xlane.f32.xlu0 %v1910_v54 }
 0xcb6   : > { %v1882_v60 = vpop.xlane.xlu0 %1881 }
 0xcb7   : > { %4903 = vrcp.f32 %v1882_v60 }
 0xcbd   : > { %v4904_v61 = vpop.eup %4903 }
 0xcbe   : > { %v1928_v43 = vmul.f32 %v4904_v61, %v5880_v63  ;;  %v1834_v62 = vpop.xlane.xlu0 %1833  ;;  %v1909_v45 = vpop.xlane.xlu1 %1908 }
 0xcbf   : > { %v1852_v55 = vsub.f32 %v5884_v47, %v1834_v62  ;;  %v1878_v47 = vmul.f32 1.442695, %v1855_v1 }
 0xcc0   : > { %4575 = vmatmul.msk.f32.vlgmr.msra.gmra.mxu1 %vm723_vm15, %v1928_v43 }
 0xcc1   : > { %v1872_v16 = vmul.f32 1.442695, %v1852_v55 }
 0xcc3   : > { %4905 = vpow2.f32 %v1872_v16 }
 0xcc6   : > { %v1888_v49 = vpop.xlane.xlu2 %1887  ;;  %v1885_v48 = vpop.xlane.xlu0 %1884 }
 0xcc7   : > { %4907 = vrcp.f32 %v1885_v48 }
 0xcc8   : > { %4909 = vpow2.f32 %v1866_v37 }
 0xcc9   : > { %v5931_v29 = vpop.eup %4905  ;;  %4911 = vrcp.f32 %v1888_v49 }
 0xcca   : > { %v1904_v63 = vsel %vm730_vm0, %v5931_v29, 0.0 }
 0xccb   : > { %1905 = vadd.xlane.f32.xlu2 %v1904_v63 }
 0xccd   : > { %v4908_v2 = vpop.eup %4907 }
 0xcce   : > { %v1900_v13 = vpop.xlane.xlu2 %1899  ;;  %v1891_v3 = vpop.xlane.xlu1 %1890  ;;  %v1929_v6 = vmul.f32 %v4908_v2, %v5892_v12 }
 0xccf   : > { %v4910_v5 = vpop.eup %4909  ;;  %4913 = vrcp.f32 %v1900_v13  ;;  %v4779_v13 = vld [vmem:[%s6889_s1 + $0x1d0] ss:$0 sm:$0xff] }
 0xcd0   : > { %4915 = vrcp.f32 %v1891_v3  ;;  %4576 = vmatmul.msk.f32.gmra.mxu1 %vm723_vm15, %v1929_v6  ;;  %v1895_v7 = vsel %vm730_vm0, %v4910_v5, 0.0  ;;  %v4912_v51 = vpop.eup %4911 }
 0xcd1   : > { %4917 = vpow2.f32 %v1878_v47  ;;  %v1930_v12 = vmul.f32 %v4912_v51, %v5894_v17 }
 0xcd3   : > { %1896 = vadd.xlane.f32.xlu2 %v1895_v7 }
 0xcd5   : > { %v4914_v8 = vpop.eup %4913 }
 0xcd6   : > { %v4916_v9 = vpop.eup %4915  ;;  %v1934_v10 = vmul.f32 %v4914_v8, %v5900_v22  ;;  %v1894_v11 = vpop.xlane.xlu2 %1893 }
 0xcd7   : > { %v1903_v15 = vpop.xlane.xlu1 %1902  ;;  %v4918_v18 = vpop.eup %4917  ;;  %v1931_v19 = vmul.f32 %v4916_v9, %v5903_v32  ;;  %4919 = vrcp.f32 %v1894_v11 }
 0xcd8   : > { %4921 = vrcp.f32 %v1903_v15  ;;  %4583 = vmatmul.msk.f32.vlgmr.msrb.gmra.mxu3 %vm723_vm15, %v1934_v10  ;;  %4577 = vmatmul.msk.f32.gmra.mxu1 %vm723_vm15, %v1930_v12  ;;  %v1913_v27 = vsel %vm730_vm0, %v4918_v18, 0.0 }
 0xcd9   : > { %4579 = vmatmul.msk.f32.vlgmr.msrb.gmra.mxu2 %vm723_vm15, %v1931_v19  ;;  %v2080_v21 = vpop.permute.xlu0 %2079  ;;  %4923 = vrcp.f32 %v1909_v45 }
 0xcda   : > { %4586 = vmatpush.msk.msrb.mxu0 %vm373_vm1, %v2080_v21 }
 0xcdb   : > { %1914 = vadd.xlane.f32.xlu2 %v1913_v27 }
 0xcdd   : > { %v4920_v28 = vpop.eup %4919 }
 0xcde   : > { %v4922_v25 = vpop.eup %4921  ;;  %v1932_v30 = vmul.f32 %v4920_v28, %v5911_v40 }
 0xcdf   : > { %v1935_v22 = vmul.f32 %v4922_v25, %v5909_v23  ;;  %v4924_v31 = vpop.eup %4923 }
 0xce0   : > { %v1937_v14 = vmul.f32 %v4924_v31, %v5886_v4  ;;  %v2122_v4 = vld [vmem:[%s6889_s1 + $0x1c0] sm:$0xff] }
 0xce1   : > { %4580 = vmatmul.msk.f32.gmra.mxu2 %vm723_vm15, %v1932_v30  ;;  %4584 = vmatmul.msk.f32.gmra.mxu3 %vm723_vm15, %v1935_v22 }
 0xce2   : > { %2218 = vmatpush.msra.mxu3 %v2122_v4 }
 0xcee   : > { %v4761_v17 = vpop.permute.xlu1 %4760 }
 0xcef   : > { %v4762_v32 = vunpack.i.l.bf16 %v4761_v17  ;;  %v4763_v34 = vunpack.i.h.bf16 %v4761_v17 }
 0xcf1   : > { %2108 = vmatpush.msrb.mxu0 %v4762_v32 }
 0xcf3   : > { %2109 = vmatpush.msrb.mxu0 %v4763_v34 }
 0xcf4   : > { %4587 = vmatmul.msk.f32.vlgmr.msrb.gmra.mxu0 %vm723_vm15, %v1937_v14 }
 0xcf5   : > { %2256 = vmatpush.msra.mxu0 %v2123_v52  ;;  %v2355_v52 = vld [vmem:[%s6889_s1 + $0x1f0] sm:$0xff] }
 0xd04   : > { %v1912_v36 = vpop.xlane.xlu0 %1911 }
 0xd05   : > { %4925 = vrcp.f32 %v1912_v36 }
 0xd0b   : > { %v4926_v26 = vpop.eup %4925 }
 0xd0c   : > { %v1938_v23 = vmul.f32 %v4926_v26, %v5923_v59 }
 0xd0e   : > { %4588 = vmatmul.msk.f32.gmra.mxu0 %vm723_vm15, %v1938_v23 }
 0xd3d   : > { %v1976_v58 = vpop.f32.mrf.mxu1 }
 0xd3e   : > { %v1906_v40 = vpop.xlane.xlu2 %1905 }
 0xd3f   : > { %4927 = vrcp.f32 %v1906_v40 }
 0xd45   : > { %v4928_v0 = vpop.eup %4927 }
 0xd46   : > { %v1897_v44 = vpop.xlane.xlu2 %1896  ;;  %v1936_v46 = vmul.f32 %v4928_v0, %v5931_v29 }
 0xd47   : > { %4929 = vrcp.f32 %v1897_v44 }
 0xd48   : > { %4585 = vmatmul.msk.f32.gmra.mxu3 %vm723_vm15, %v1936_v46 }
 0xd4d   : > { %v4930_v50 = vpop.eup %4929  ;;  %v1979_v60 = vpop.f32.mrf.mxu1 }
 0xd4e   : > { %v1915_v42 = vpop.xlane.xlu2 %1914  ;;  %v1933_v20 = vmul.f32 %v4930_v50, %v4910_v5 }
 0xd4f   : > { %4931 = vrcp.f32 %v1915_v42  ;;  %v2357_v42 = vld [vmem:[%s6889_s1 + $0x200] sm:$0xff] }
 0xd50   : > { %4581 = vmatmul.msk.f32.gmra.mxu2 %vm723_vm15, %v1933_v20  ;;  %2381 = vmatpush.msra.mxu1 %v2357_v42  ;;  %v2356_v20 = vld [vmem:[%s6889_s1 + $0x1f8] sm:$0xff]  ;;  %v2522_v42 = vld [vmem:[%s6889_s1 + $0x248] sm:$0xff] }
 0xd52   : > { %2382 = vmatpush.msra.mxu1 %v2356_v20  ;;  %v2521_v20 = vld [vmem:[%s6889_s1 + $0x240] sm:$0xff] }
 0xd54   : > { %2383 = vmatpush.msra.mxu1 %v2355_v52  ;;  %v2520_v52 = vld [vmem:[%s6889_s1 + $0x238] sm:$0xff] }
 0xd55   : > { %v4932_v53 = vpop.eup %4931  ;;  %v1982_v62 = vpop.f32.mrf.mxu1 }
 0xd56   : > { %v1939_v56 = vmul.f32 %v4932_v53, %v4918_v18  ;;  %v2354_v53 = vld [vmem:[%s6889_s1 + $0x1e8] sm:$0xff] }
 0xd57   : > { %2384 = vmatpush.msra.mxu1 %v2354_v53 }
 0xd58   : > { %4589 = vmatmul.msk.f32.gmra.mxu0 %vm723_vm15, %v1939_v56  ;;  %4593 = vmatmul.msk.f32.vlgmr.msra.gmra.mxu2 %vm540_vm14, %v1976_v58 }
 0xd5b   : > { %v2066_v59 = vpop.f32.mrf.mxu3 }
 0xd5c   : > { %v2021_v54 = vpop.f32.mrf.mxu2  ;;  %4596 = vmatmul.msk.f32.vlgmr.msra.gmra.mxu3 %vm540_vm14, %v2066_v59 }
 0xd5d   : > { %4590 = vmatmul.msk.f32.vlgmr.msrb.gmra.mxu1 %vm540_vm14, %v2021_v54 }
 0xd60   : > { %4594 = vmatmul.msk.f32.gmra.mxu2 %vm540_vm14, %v1979_v60 }
 0xd64   : > { %v2024_v61 = vpop.f32.mrf.mxu2  ;;  %v2069_v43 = vpop.f32.mrf.mxu3 }
 0xd65   : > { %4591 = vmatmul.msk.f32.gmra.mxu1 %vm540_vm14, %v2024_v61  ;;  %4597 = vmatmul.msk.f32.gmra.mxu3 %vm540_vm14, %v2069_v43 }
 0xd68   : > { %4595 = vmatmul.msk.f32.gmra.mxu2 %vm540_vm14, %v1982_v62 }
 0xd71   : > { %v2111_v55 = vpop.f32.mrf.mxu0 }
 0xd72   : > { %4599 = vmatmul.msk.f32.vlgmr.msra.gmra.mxu0 %vm540_vm14, %v2111_v55 }
 0xd8b   : > { %v2114_v57 = vpop.f32.mrf.mxu0 }
 0xd8c   : > { %4600 = vmatmul.msk.f32.gmra.mxu0 %vm540_vm14, %v2114_v57  ;;  %v4780_v57 = vld [vmem:[%s6889_s1 + $0x1d8] ss:$0 sm:$0xff] }
 0xdcb   : > { %v2072_v16 = vpop.f32.mrf.mxu3 }
 0xdcc   : > { %4598 = vmatmul.msk.f32.gmra.mxu3 %vm540_vm14, %v2072_v16 }
 0xdd3   : > { %v2027_v37 = vpop.f32.mrf.mxu2 }
 0xdd4   : > { %4592 = vmatmul.msk.f32.gmra.mxu1 %vm540_vm14, %v2027_v37 }
 0xdd5   : > { %v2117_v45 = vpop.f32.mrf.mxu0 }
 0xdd6   : > { %4601 = vmatmul.msk.f32.gmra.mxu0 %vm540_vm14, %v2117_v45  ;;  %v4781_v45 = vld [vmem:[%s6889_s1 + $0x1e0] ss:$0 sm:$0xff] }
 0xdda   : > { %v2150_v48 = vpop.f32.mrf.mxu1 }
 0xddb   : > { %v2185_v49 = vpop.f32.mrf.mxu2 }
 0xddc   : > { %v2186_v1 = vadd.f32 %v2185_v49, %v2150_v48 }
 0xddf   : > { %v2220_v29 = vpop.f32.mrf.mxu3 }
 0xde0   : > { %v2229_v63 = vadd.f32 %v2220_v29, %v2186_v1 }
 0xde2   : > { %v2153_v51 = vpop.f32.mrf.mxu1 }
 0xde3   : > { %v2188_v7 = vpop.f32.mrf.mxu2 }
 0xde4   : > { %v2189_v9 = vadd.f32 %v2188_v7, %v2153_v51 }
 0xde8   : > { %v2223_v8 = vpop.f32.mrf.mxu3 }
 0xde9   : > { %v2230_v10 = vadd.f32 %v2223_v8, %v2189_v9 }
 0xdeb   : > { %v2191_v12 = vpop.f32.mrf.mxu2 }
 0xdef   : > { %v2258_v47 = vpop.f32.mrf.mxu0 }
 0xdf0   : > { %v2267_v2 = vadd.f32 %v2258_v47, %v2229_v63 }
 0xdf2   : > { %v2270_v3 = vadd.f32 %v2267_v2, %v5702_v35 }
 0xdf4   : > { %v5987_v5 = vadd.f32 %v4779_v13, %v2270_v3 }
 0xdf6   : > { %v2280_v6 = vsel %vm389_vm2, %v5987_v5, 0.0 }
 0xdf7   : > { %2281 = vadd.xlane.f32.xlu2 %v2280_v6 }
 0xe09   : > { %v2261_v11 = vpop.f32.mrf.mxu0 }
 0xe0a   : > { %v2268_v15 = vadd.f32 %v2261_v11, %v2230_v10 }
 0xe0c   : > { %v2271_v18 = vadd.f32 %v2268_v15, %v5707_v24 }
 0xe0e   : > { %v5992_v19 = vadd.f32 %v4779_v13, %v2271_v18 }
 0xe10   : > { %v2283_v35 = vsel %vm389_vm2, %v5992_v19, 0.0 }
 0xe11   : > { %2284 = vadd.xlane.f32.xlu2 %v2283_v35 }
 0xe4f   : > { %v2226_v28 = vpop.f32.mrf.mxu3 }
 0xe51   : > { %v2156_v21 = vpop.f32.mrf.mxu1 }
 0xe52   : > { %v2192_v27 = vadd.f32 %v2191_v12, %v2156_v21 }
 0xe53   : > { %v2264_v30 = vpop.f32.mrf.mxu0 }
 0xe54   : > { %v2231_v25 = vadd.f32 %v2226_v28, %v2192_v27 }
 0xe56   : > { %v2269_v22 = vadd.f32 %v2264_v30, %v2231_v25 }
 0xe58   : > { %v2272_v17 = vadd.f32 %v2269_v22, %v5712_v41 }
 0xe5a   : > { %v5997_v31 = vadd.f32 %v4779_v13, %v2272_v17 }
 0xe5c   : > { %v2286_v24 = vsel %vm396_vm3, %v5997_v31, 0.0 }
 0xe5d   : > { %2287 = vadd.xlane.f32.xlu1 %v2286_v24 }
 0xe6a   : > { %v2282_v32 = vpop.xlane.xlu2 %2281 }
 0xe6b   : > { %v2289_v34 = vmul.f32 %v2282_v32, %v5280_v33  ;;  %v2530_v32 = vld [vmem:[%s6889_s1 + $0x288] sm:$0xff] }
 0xe6c   : > { %2531 = vmatpush.msrb.mxu2 %v2530_v32 }
 0xe6d   : > { %v2292_v14 = vsub.f32 %v5987_v5, %v2289_v34  ;;  %v6045_v34 = vld [vmem:[%s6889_s1 + $0x208] ss:$0 sm:$0xff] }
 0xe6f   : > { %v2295_v36 = vmul.f32 %v2292_v14, %v2292_v14 }
 0xe71   : > { %v2298_v26 = vsel %vm389_vm2, %v2295_v36, 0.0  ;;  %v2528_v36 = vld [vmem:[%s6889_s1 + $0x278] sm:$0xff] }
 0xe72   : > { %2299 = vadd.xlane.f32.xlu2 %v2298_v26 }
 0xe84   : > { %v2285_v23 = vpop.xlane.xlu2 %2284 }
 0xe85   : > { %v2290_v38 = vmul.f32 %v2285_v23, %v5280_v33 }
 0xe87   : > { %v2293_v41 = vsub.f32 %v5992_v19, %v2290_v38  ;;  %v2527_v38 = vld [vmem:[%s6889_s1 + $0x270] sm:$0xff] }
 0xe89   : > { %v2296_v39 = vmul.f32 %v2293_v41, %v2293_v41 }
 0xe8b   : > { %v2301_v4 = vsel %vm389_vm2, %v2296_v39, 0.0  ;;  %v2526_v39 = vld [vmem:[%s6889_s1 + $0x268] sm:$0xff] }
 0xe8c   : > { %2302 = vadd.xlane.f32.xlu2 %v2301_v4 }
 0xed0   : > { %v2288_v40 = vpop.xlane.xlu1 %2287 }
 0xed1   : > { %v2291_v0 = vmul.f32 %v2288_v40, %v5280_v33  ;;  %v2525_v40 = vld [vmem:[%s6889_s1 + $0x260] sm:$0xff] }
 0xed3   : > { %v6009_v44 = vsub.f32 %v5997_v31, %v2291_v0 }
 0xed5   : > { %v2297_v46 = vmul.f32 %v6009_v44, %v6009_v44 }
 0xed7   : > { %v2304_v50 = vsel %vm396_vm3, %v2297_v46, 0.0 }
 0xed8   : > { %2305 = vadd.xlane.f32.xlu0 %v2304_v50  ;;  %v2523_v50 = vld [vmem:[%s6889_s1 + $0x250] sm:$0xff] }
 0xee5   : > { %v2300_v58 = vpop.xlane.xlu2 %2299 }
 0xee6   : > { %v2307_v56 = vmul.f32 %v2300_v58, %v5280_v33  ;;  %v2519_v58 = vld [vmem:[%s6889_s1 + $0x230] sm:$0xff] }
 0xee8   : > { %v2310_v59 = vadd.f32 1e-05, %v2307_v56 }
 0xeea   : > { %4933 = vrsqrt.f32 %v2310_v59  ;;  %vm2319_vm15 = vweird.f32 %v2310_v59 }
 0xef0   : > { %v4934_v54 = vpop.eup %4933 }
 0xef1   : > { %v2314_v60 = vmul.f32 %v4934_v54, %v2310_v59  ;;  %vm2320_vm14 = vweird.f32 %v4934_v54  ;;  %v2518_v59 = vld [vmem:[%s6889_s1 + $0x228] sm:$0xff] }
 0xef2   : > { %vm2321_vm0 = vmor %vm2319_vm15, %vm2320_vm14 }
 0xef3   : > { %v2315_v61 = vmul.f32 %v4934_v54, %v2314_v60 }
 0xef5   : > { %v2316_v43 = vmul.f32 0.5, %v2315_v61  ;;  %v2517_v61 = vld [vmem:[%s6889_s1 + $0x220] sm:$0xff] }
 0xef7   : > { %v2317_v62 = vsub.f32 1.5, %v2316_v43 }
 0xef9   : > { %v2318_v55 = vmul.f32 %v4934_v54, %v2317_v62 }
 0xefb   : > { %v2322_v16 = vsel %vm2321_vm0, %v4934_v54, %v2318_v55  ;;  %v2516_v55 = vld [vmem:[%s6889_s1 + $0x218] sm:$0xff] }
 0xefc   : > { %v2343_v37 = vmul.f32 %v2322_v16, %v2292_v14  ;;  %v2529_v14 = vld [vmem:[%s6889_s1 + $0x280] sm:$0xff] }
 0xefd   : > { %2532 = vmatpush.msrb.mxu2 %v2529_v14 }
 0xefe   : > { %v2347_v49 = vmul.f32 %v4780_v57, %v2343_v37 }
 0xeff   : > { %v2303_v48 = vpop.xlane.xlu2 %2302  ;;  %2533 = vmatpush.msrb.mxu2 %v2528_v36 }
 0xf00   : > { %v2308_v29 = vmul.f32 %v2303_v48, %v5280_v33  ;;  %v2351_v1 = vadd.f32 %v4781_v45, %v2347_v49 }
 0xf01   : > { %2534 = vmatpush.msrb.mxu2 %v2527_v38 }
 0xf02   : > { %v2311_v63 = vadd.f32 1e-05, %v2308_v29  ;;  %4602 = vmatmul.msk.f32.vlgmr.msra.gmra.mxu1 %vm389_vm2, %v2351_v1 }
 0xf03   : > { %2535 = vmatpush.msrb.mxu2 %v2526_v39 }
 0xf04   : > { %4935 = vrsqrt.f32 %v2311_v63  ;;  %vm2329_vm8 = vweird.f32 %v2311_v63 }
 0xf05   : > { %2536 = vmatpush.msrb.mxu2 %v2525_v40 }
 0xf0a   : > { %v4936_v47 = vpop.eup %4935 }
 0xf0b   : > { %v2324_v2 = vmul.f32 %v4936_v47, %v2311_v63  ;;  %vm2330_vm7 = vweird.f32 %v4936_v47 }
 0xf0c   : > { %vm2331_vm9 = vmor %vm2329_vm8, %vm2330_vm7 }
 0xf0d   : > { %v2325_v13 = vmul.f32 %v4936_v47, %v2324_v2 }
 0xf0f   : > { %v2326_v3 = vmul.f32 0.5, %v2325_v13 }
 0xf11   : > { %v2327_v6 = vsub.f32 1.5, %v2326_v3 }
 0xf13   : > { %v2328_v7 = vmul.f32 %v4936_v47, %v2327_v6 }
 0xf15   : > { %v2332_v51 = vsel %vm2331_vm9, %v4936_v47, %v2328_v7 }
 0xf16   : > { %v2344_v8 = vmul.f32 %v2332_v51, %v2293_v41 }
 0xf18   : > { %v2348_v9 = vmul.f32 %v4780_v57, %v2344_v8 }
 0xf1a   : > { %v2352_v10 = vadd.f32 %v4781_v45, %v2348_v9 }
 0xf1c   : > { %4603 = vmatmul.msk.f32.gmra.mxu1 %vm389_vm2, %v2352_v10 }
 0xf4b   : > { %v2306_v11 = vpop.xlane.xlu0 %2305 }
 0xf4c   : > { %v2309_v15 = vmul.f32 %v2306_v11, %v5280_v33 }
 0xf4e   : > { %v2312_v18 = vadd.f32 1e-05, %v2309_v15 }
 0xf50   : > { %4937 = vrsqrt.f32 %v2312_v18  ;;  %vm2339_vm11 = vweird.f32 %v2312_v18 }
 0xf56   : > { %v4938_v35 = vpop.eup %4937 }
 0xf57   : > { %v2334_v12 = vmul.f32 %v4938_v35, %v2312_v18  ;;  %vm2340_vm10 = vweird.f32 %v4938_v35 }
 0xf58   : > { %vm2341_vm12 = vmor %vm2339_vm11, %vm2340_vm10 }
 0xf59   : > { %v2335_v21 = vmul.f32 %v4938_v35, %v2334_v12 }
 0xf5b   : > { %v2336_v27 = vmul.f32 0.5, %v2335_v21 }
 0xf5d   : > { %v2337_v28 = vsub.f32 1.5, %v2336_v27 }
 0xf5f   : > { %v2338_v25 = vmul.f32 %v4938_v35, %v2337_v28 }
 0xf61   : > { %v2342_v30 = vsel %vm2341_vm12, %v4938_v35, %v2338_v25 }
 0xf62   : > { %v2345_v22 = vmul.f32 %v2342_v30, %v6009_v44  ;;  %v2524_v44 = vld [vmem:[%s6889_s1 + $0x258] sm:$0xff] }
 0xf63   : > { %2537 = vmatpush.msrb.mxu2 %v2524_v44 }
 0xf64   : > { %v2349_v17 = vmul.f32 %v4780_v57, %v2345_v22  ;;  %v2515_v57 = vld [vmem:[%s6889_s1 + $0x210] sm:$0xff] }
 0xf65   : > { %2538 = vmatpush.msrb.mxu2 %v2523_v50 }
 0xf66   : > { %v2353_v24 = vadd.f32 %v4781_v45, %v2349_v17 }
 0xf67   : > { %2539 = vmatpush.msrb.mxu2 %v2522_v42 }
 0xf68   : > { %4604 = vmatmul.msk.f32.gmra.mxu1 %vm389_vm2, %v2353_v24 }
 0xf69   : > { %2540 = vmatpush.msrb.mxu2 %v2521_v20 }
 0xf6b   : > { %2541 = vmatpush.msrb.mxu2 %v2520_v52 }
 0xf6d   : > { %2542 = vmatpush.msrb.mxu2 %v2519_v58 }
 0xf6f   : > { %2543 = vmatpush.msrb.mxu2 %v2518_v59 }
 0xf71   : > { %2544 = vmatpush.msrb.mxu2 %v2517_v61 }
 0xf73   : > { %2545 = vmatpush.msrb.mxu2 %v2516_v55 }
 0xf75   : > { %2546 = vmatpush.msrb.mxu2 %v2515_v57 }
 0xf7f   : > { %v2386_v26 = vpop.f32.mrf.mxu1 }
 0xf80   : > { %v6054_v23 = vadd.f32 %v6045_v34, %v2386_v26 }
 0xf82   : > { %v6060_v41 = vmul.f32 0.70710677, %v6054_v23  ;;  %v2395_v39 = vmul.f32 0.5, %v6054_v23 }
 0xf84   : > { %v2401_v4 = vand.u32 2147483647, %v6060_v41  ;;  %vm2500_vm0 = vcmp.ge.f32.partialorder %v6060_v41, 0.0 }
 0xf86   : > { %v2404_v0 = vmul.f32 0.3275911, %v2401_v4  ;;  %v2482_v29 = vsub.f32 0.0, %v2401_v4 }
 0xf88   : > { %v2407_v46 = vadd.f32 1.0, %v2404_v0  ;;  %v2485_v13 = vmul.f32 %v2482_v29, %v2401_v4 }
 0xf8a   : > { %4939 = vrcp.f32 %v2407_v46  ;;  %v2421_v60 = vand.u32 2147483648, %v2407_v46  ;;  %v2419_v62 = vand.u32 2147483647, %v2407_v46  ;;  %vm2415_vm4 = vweird.f32 %v2407_v46 }
 0xf8b   : > { %v2488_v8 = vmul.f32 1.442695, %v2485_v13 }
 0xf8c   : > { %v2422_v37 = vor.u32 1.1754944e-38, %v2421_v60  ;;  %vm2420_vm6 = vcmp.eq.f32.partialorder %v2419_v62, 8.507059e+37 }
 0xf90   : > { %v4940_v53 = vpop.eup %4939 }
 0xf91   : > { %v2411_v56 = vmul.f32 %v4940_v53, %v2407_v46  ;;  %vm2416_vm13 = vweird.f32 %v4940_v53 }
 0xf92   : > { %vm2417_vm5 = vmor %vm2415_vm4, %vm2416_vm13 }
 0xf93   : > { %v2412_v54 = vsub.f32 1.0, %v2411_v56 }
 0xf95   : > { %v2413_v43 = vmul.f32 %v4940_v53, %v2412_v54 }
 0xf97   : > { %v2414_v16 = vadd.f32 %v4940_v53, %v2413_v43 }
 0xf99   : > { %v2418_v45 = vsel %vm2417_vm5, %v4940_v53, %v2414_v16  ;;  %v2389_v49 = vpop.f32.mrf.mxu1 }
 0xf9a   : > { %v2423_v48 = vsel %vm2420_vm6, %v2422_v37, %v2418_v45  ;;  %v2390_v1 = vadd.f32 %v6045_v34, %v2389_v49 }
 0xf9b   : > { %v2455_v63 = vmul.f32 1.0614054, %v2423_v48 }
 0xf9c   : > { %v2399_v47 = vmul.f32 0.70710677, %v2390_v1  ;;  %v2396_v55 = vmul.f32 0.5, %v2390_v1 }
 0xf9d   : > { %v2458_v2 = vadd.f32 -1.4531521, %v2455_v63 }
 0xf9e   : > { %v2402_v3 = vand.u32 2147483647, %v2399_v47  ;;  %vm2501_vm9 = vcmp.ge.f32.partialorder %v2399_v47, 0.0 }
 0xf9f   : > { %v2461_v6 = vmul.f32 %v2458_v2, %v2423_v48 }
 0xfa0   : > { %v2405_v7 = vmul.f32 0.3275911, %v2402_v3  ;;  %v2483_v40 = vsub.f32 0.0, %v2402_v3 }
 0xfa1   : > { %v2464_v51 = vadd.f32 1.4214138, %v2461_v6 }
 0xfa2   : > { %v2408_v9 = vadd.f32 1.0, %v2405_v7  ;;  %v2486_v42 = vmul.f32 %v2483_v40, %v2402_v3 }
 0xfa3   : > { %v2467_v10 = vmul.f32 %v2464_v51, %v2423_v48 }
 0xfa4   : > { %4941 = vrcp.f32 %v2408_v9  ;;  %v2436_v30 = vand.u32 2147483648, %v2408_v9  ;;  %v2434_v24 = vand.u32 2147483647, %v2408_v9  ;;  %vm2430_vm15 = vweird.f32 %v2408_v9 }
 0xfa5   : > { %v2470_v11 = vadd.f32 -0.28449672, %v2467_v10  ;;  %4943 = vpow2.f32 %v2488_v8  ;;  %v2490_v53 = vmul.f32 1.442695, %v2486_v42 }
 0xfa6   : > { %v2437_v36 = vor.u32 1.1754944e-38, %v2436_v30  ;;  %vm2435_vm8 = vcmp.eq.f32.partialorder %v2434_v24, 8.507059e+37 }
 0xfa7   : > { %v2473_v15 = vmul.f32 %v2470_v11, %v2423_v48  ;;  %4945 = vpow2.f32 %v2490_v53 }
 0xfa9   : > { %v2476_v18 = vadd.f32 0.2548296, %v2473_v15 }
 0xfaa   : > { %v4942_v35 = vpop.eup %4941 }
 0xfab   : > { %v2479_v12 = vmul.f32 %v2476_v18, %v2423_v48  ;;  %v2426_v21 = vmul.f32 %v4942_v35, %v2408_v9  ;;  %v4944_v27 = vpop.eup %4943  ;;  %vm2431_vm14 = vweird.f32 %v4942_v35 }
 0xfac   : > { %vm2432_vm7 = vmor %vm2430_vm15, %vm2431_vm14  ;;  %vm2643_vm15 = vcmask 261121  }
 0xfad   : > { %v2494_v28 = vmul.f32 %v4944_v27, %v2479_v12  ;;  %v2427_v25 = vsub.f32 1.0, %v2426_v21  ;;  %v4946_v60 = vpop.eup %4945 }
 0xfaf   : > { %v2497_v22 = vsub.f32 1.0, %v2494_v28  ;;  %v2428_v17 = vmul.f32 %v4942_v35, %v2427_v25 }
 0xfb1   : > { %v2503_v32 = vsub.f32 0.0, %v2497_v22  ;;  %v2429_v14 = vadd.f32 %v4942_v35, %v2428_v17 }
 0xfb3   : > { %v2506_v26 = vsel %vm2500_vm0, %v2497_v22, %v2503_v32  ;;  %v2433_v38 = vsel %vm2432_vm7, %v4942_v35, %v2429_v14 }
 0xfb4   : > { %v2509_v4 = vadd.f32 1.0, %v2506_v26  ;;  %v2438_v0 = vsel %vm2435_vm8, %v2437_v36, %v2433_v38 }
 0xfb5   : > { %v2456_v44 = vmul.f32 1.0614054, %v2438_v0 }
 0xfb6   : > { %v2512_v46 = vmul.f32 %v2509_v4, %v2395_v39  ;;  %v4783_v39 = vld [vmem:[%s6889_s1 + $0x290] ss:$0 sm:$0xff] }
 0xfb7   : > { %v2459_v50 = vadd.f32 -1.4531521, %v2456_v44 }
 0xfb8   : > { %2547 = vmatmul.f32.vlgmr.msrb.gmra.mxu2 %v2512_v46 }
 0xfb9   : > { %v2462_v20 = vmul.f32 %v2459_v50, %v2438_v0 }
 0xfbb   : > { %v2465_v52 = vadd.f32 1.4214138, %v2462_v20 }
 0xfbd   : > { %v2468_v58 = vmul.f32 %v2465_v52, %v2438_v0 }
 0xfbf   : > { %v2471_v41 = vadd.f32 -0.28449672, %v2468_v58 }
 0xfc1   : > { %v2474_v56 = vmul.f32 %v2471_v41, %v2438_v0 }
 0xfc3   : > { %v2477_v59 = vadd.f32 0.2548296, %v2474_v56 }
 0xfc5   : > { %v2480_v54 = vmul.f32 %v2477_v59, %v2438_v0 }
 0xfc7   : > { %v2495_v61 = vmul.f32 %v4946_v60, %v2480_v54 }
 0xfc9   : > { %v2498_v23 = vsub.f32 1.0, %v2495_v61 }
 0xfcb   : > { %v2504_v43 = vsub.f32 0.0, %v2498_v23 }
 0xfcd   : > { %v2507_v62 = vsel %vm2501_vm9, %v2498_v23, %v2504_v43 }
 0xfce   : > { %v2510_v57 = vadd.f32 1.0, %v2507_v62 }
 0xfd0   : > { %v2513_v16 = vmul.f32 %v2510_v57, %v2396_v55 }
 0xfd2   : > { %2550 = vmatmul.f32.gmra.mxu2 %v2513_v16 }
 0xfe5   : > { %v2392_v37 = vpop.f32.mrf.mxu1 }
 0xfe6   : > { %v2393_v45 = vadd.f32 %v6045_v34, %v2392_v37 }
 0xfe8   : > { %v2400_v49 = vmul.f32 0.70710677, %v2393_v45  ;;  %v2397_v36 = vmul.f32 0.5, %v2393_v45 }
 0xfea   : > { %v2403_v48 = vand.u32 2147483647, %v2400_v49  ;;  %vm2502_vm4 = vcmp.ge.f32.partialorder %v2400_v49, 0.0 }
 0xfec   : > { %v2406_v29 = vmul.f32 0.3275911, %v2403_v48  ;;  %v2484_v9 = vsub.f32 0.0, %v2403_v48 }
 0xfee   : > { %v2409_v63 = vadd.f32 1.0, %v2406_v29  ;;  %v2487_v15 = vmul.f32 %v2484_v9, %v2403_v48 }
 0xff0   : > { %4947 = vrcp.f32 %v2409_v63  ;;  %v2451_v6 = vand.u32 2147483648, %v2409_v63  ;;  %v2449_v47 = vand.u32 2147483647, %v2409_v63  ;;  %vm2445_vm11 = vweird.f32 %v2409_v63 }
 0xff1   : > { %v2492_v12 = vmul.f32 1.442695, %v2487_v15 }
 0xff2   : > { %v2452_v51 = vor.u32 1.1754944e-38, %v2451_v6  ;;  %vm2450_vm13 = vcmp.eq.f32.partialorder %v2449_v47, 8.507059e+37 }
 0xff3   : > { %4949 = vpow2.f32 %v2492_v12 }
 0xff6   : > { %v4948_v2 = vpop.eup %4947 }
 0xff7   : > { %v2441_v13 = vmul.f32 %v4948_v2, %v2409_v63  ;;  %vm2446_vm10 = vweird.f32 %v4948_v2 }
 0xff8   : > { %vm2447_vm12 = vmor %vm2445_vm11, %vm2446_vm10 }
 0xff9   : > { %v2442_v3 = vsub.f32 1.0, %v2441_v13  ;;  %v4950_v22 = vpop.eup %4949 }
 0xffb   : > { %v2443_v7 = vmul.f32 %v4948_v2, %v2442_v3 }
 0xffd   : > { %v2444_v1 = vadd.f32 %v4948_v2, %v2443_v7  ;;  %v4784_v7 = vld [vmem:[%s6889_s1 + $0x298] ss:$0 sm:$0xff] }
 0xfff   : > { %v2448_v8 = vsel %vm2447_vm12, %v4948_v2, %v2444_v1 }
0x1000   : > { %v2453_v34 = vsel %vm2450_vm13, %v2452_v51, %v2448_v8  ;;  %v4785_v51 = vld [vmem:[%s6889_s1 + $0x2a0] ss:$0 sm:$0xff] }
0x1001   : > { %v2457_v10 = vmul.f32 1.0614054, %v2453_v34 }
0x1003   : > { %v2460_v11 = vadd.f32 -1.4531521, %v2457_v10 }
0x1005   : > { %v2463_v18 = vmul.f32 %v2460_v11, %v2453_v34 }
0x1007   : > { %v2466_v35 = vadd.f32 1.4214138, %v2463_v18 }
0x1009   : > { %v2469_v21 = vmul.f32 %v2466_v35, %v2453_v34 }
0x100b   : > { %v2472_v27 = vadd.f32 -0.28449672, %v2469_v21 }
0x100d   : > { %v2475_v28 = vmul.f32 %v2472_v27, %v2453_v34 }
0x100f   : > { %v2478_v25 = vadd.f32 0.2548296, %v2475_v28 }
0x1011   : > { %v2481_v30 = vmul.f32 %v2478_v25, %v2453_v34 }
0x1013   : > { %v2496_v17 = vmul.f32 %v4950_v22, %v2481_v30 }
0x1015   : > { %v2499_v24 = vsub.f32 1.0, %v2496_v17 }
0x1017   : > { %v2505_v32 = vsub.f32 0.0, %v2499_v24 }
0x1019   : > { %v2508_v14 = vsel %vm2502_vm4, %v2499_v24, %v2505_v32 }
0x101a   : > { %v2511_v26 = vadd.f32 1.0, %v2508_v14 }
0x101c   : > { %v2514_v38 = vmul.f32 %v2511_v26, %v2397_v36 }
0x101e   : > { %2553 = vmatmul.f32.gmra.mxu2 %v2514_v38 }
0x103b   : > { %v2548_v4 = vpop.f32.mrf.mxu2 }
0x103c   : > { %v2557_v40 = vadd.f32 %v2548_v4, %v5987_v5 }
0x103e   : > { %v2562_v0 = vadd.f32 %v4783_v39, %v2557_v40 }
0x1040   : > { %v2567_v44 = vsel %vm389_vm2, %v2562_v0, 0.0 }
0x1041   : > { %2568 = vadd.xlane.f32.xlu2 %v2567_v44 }
0x1055   : > { %v2551_v46 = vpop.f32.mrf.mxu2 }
0x1056   : > { %v2558_v50 = vadd.f32 %v2551_v46, %v5992_v19 }
0x1058   : > { %v2563_v42 = vadd.f32 %v4783_v39, %v2558_v50 }
0x105a   : > { %v2570_v20 = vsel %vm389_vm2, %v2563_v42, 0.0 }
0x105b   : > { %2571 = vadd.xlane.f32.xlu0 %v2570_v20 }
0x10a1   : > { %v2554_v52 = vpop.f32.mrf.mxu2 }
0x10a2   : > { %v2559_v53 = vadd.f32 %v2554_v52, %v5997_v31 }
0x10a4   : > { %v2564_v58 = vadd.f32 %v4783_v39, %v2559_v53 }
0x10a6   : > { %v2573_v41 = vsel %vm396_vm3, %v2564_v58, 0.0 }
0x10a7   : > { %2574 = vadd.xlane.f32.xlu2 %v2573_v41 }
0x10b4   : > { %v2569_v56 = vpop.xlane.xlu2 %2568 }
0x10b5   : > { %v2576_v5 = vmul.f32 %v2569_v56, %v5280_v33 }
0x10b7   : > { %v2579_v59 = vsub.f32 %v2562_v0, %v2576_v5 }
0x10b9   : > { %v2582_v54 = vmul.f32 %v2579_v59, %v2579_v59 }
0x10bb   : > { %v2585_v60 = vsel %vm389_vm2, %v2582_v54, 0.0 }
0x10bc   : > { %2586 = vadd.xlane.f32.xlu0 %v2585_v60 }
0x10ce   : > { %v2572_v19 = vpop.xlane.xlu0 %2571 }
0x10cf   : > { %v2577_v61 = vmul.f32 %v2572_v19, %v5280_v33 }
0x10d1   : > { %v2580_v23 = vsub.f32 %v2563_v42, %v2577_v61 }
0x10d3   : > { %v2583_v43 = vmul.f32 %v2580_v23, %v2580_v23 }
0x10d5   : > { %v2588_v62 = vsel %vm389_vm2, %v2583_v43, 0.0 }
0x10d6   : > { %2589 = vadd.xlane.f32.xlu2 %v2588_v62 }
0x111a   : > { %v2575_v31 = vpop.xlane.xlu2 %2574 }
0x111b   : > { %v2578_v55 = vmul.f32 %v2575_v31, %v5280_v33 }
0x111d   : > { %v2581_v57 = vsub.f32 %v2564_v58, %v2578_v55 }
0x111f   : > { %v2584_v16 = vmul.f32 %v2581_v57, %v2581_v57 }
0x1121   : > { %v2591_v37 = vsel %vm396_vm3, %v2584_v16, 0.0 }
0x1122   : > { %2592 = vadd.xlane.f32.xlu1 %v2591_v37 }
0x112f   : > { %v2587_v45 = vpop.xlane.xlu0 %2586 }
0x1130   : > { %v2594_v49 = vmul.f32 %v2587_v45, %v5280_v33  ;;  %v2721_v45 = vld [vmem:[%s6889_s1 + $0x2d0] sm:$0xff] }
0x1131   : > { %2749 = vmatpush.msrb.mxu3 %v2721_v45 }
0x1132   : > { %v2597_v48 = vadd.f32 1e-05, %v2594_v49  ;;  %v2720_v49 = vld [vmem:[%s6889_s1 + $0x2c8] sm:$0xff] }
0x1133   : > { %2750 = vmatpush.msrb.mxu3 %v2720_v49 }
0x1134   : > { %4951 = vrsqrt.f32 %v2597_v48  ;;  %vm2606_vm6 = vweird.f32 %v2597_v48 }
0x113a   : > { %v4952_v29 = vpop.eup %4951 }
0x113b   : > { %v2601_v63 = vmul.f32 %v4952_v29, %v2597_v48  ;;  %vm2607_vm5 = vweird.f32 %v4952_v29 }
0x113c   : > { %vm2608_vm14 = vmor %vm2606_vm6, %vm2607_vm5 }
0x113d   : > { %v2602_v2 = vmul.f32 %v4952_v29, %v2601_v63  ;;  %v2718_v63 = vld [vmem:[%s6889_s1 + $0x2b8] sm:$0xff] }
0x113f   : > { %v2603_v13 = vmul.f32 0.5, %v2602_v2 }
0x1141   : > { %v2604_v3 = vsub.f32 1.5, %v2603_v13 }
0x1143   : > { %v2605_v6 = vmul.f32 %v4952_v29, %v2604_v3 }
0x1145   : > { %v2609_v47 = vsel %vm2608_vm14, %v4952_v29, %v2605_v6  ;;  %v2719_v29 = vld [vmem:[%s6889_s1 + $0x2c0] sm:$0xff] }
0x1146   : > { %v2630_v1 = vmul.f32 %v2609_v47, %v2579_v59  ;;  %2751 = vmatpush.msrb.mxu3 %v2719_v29 }
0x1148   : > { %v2634_v8 = vmul.f32 %v4784_v7, %v2630_v1  ;;  %2752 = vmatpush.msrb.mxu3 %v2718_v63  ;;  %v4789_v63 = vld [vmem:[%s6889_s1 + $0x300] ss:$0 sm:$0xff] }
0x1149   : > { %v2590_v9 = vpop.xlane.xlu2 %2589 }
0x114a   : > { %v2595_v34 = vmul.f32 %v2590_v9, %v5280_v33  ;;  %v6126_v10 = vadd.f32 %v4785_v51, %v2634_v8 }
0x114c   : > { %v2598_v11 = vadd.f32 1e-05, %v2595_v34  ;;  %v2644_v15 = vsel %vm2643_vm15, %v6126_v10, 0.0 }
0x114d   : > { %2645 = vadd.xlane.f32.xlu0 %v2644_v15  ;;  %v4786_v15 = vld [vmem:[%s6889_s1 + $0x2a8] ss:$0 sm:$0xff] }
0x114e   : > { %4953 = vrsqrt.f32 %v2598_v11  ;;  %vm2616_vm7 = vweird.f32 %v2598_v11 }
0x1154   : > { %v4954_v18 = vpop.eup %4953 }
0x1155   : > { %v2611_v35 = vmul.f32 %v4954_v18, %v2598_v11  ;;  %vm2617_vm0 = vweird.f32 %v4954_v18 }
0x1156   : > { %vm2618_vm8 = vmor %vm2616_vm7, %vm2617_vm0  ;;  %vm2727_vm0 = vcmask 1046528  }
0x1157   : > { %v2612_v12 = vmul.f32 %v4954_v18, %v2611_v35 }
0x1159   : > { %v2613_v21 = vmul.f32 0.5, %v2612_v12 }
0x115b   : > { %v2614_v27 = vsub.f32 1.5, %v2613_v21 }
0x115d   : > { %v2615_v28 = vmul.f32 %v4954_v18, %v2614_v27  ;;  %v4787_v27 = vld [vmem:[%s6889_s1 + $0x2b0] ss:$0 sm:$0xff] }
0x115f   : > { %v2619_v25 = vsel %vm2618_vm8, %v4954_v18, %v2615_v28 }
0x1160   : > { %v2631_v30 = vmul.f32 %v2619_v25, %v2580_v23 }
0x1162   : > { %v2635_v22 = vmul.f32 %v4784_v7, %v2631_v30 }
0x1164   : > { %v6130_v17 = vadd.f32 %v4785_v51, %v2635_v22 }
0x1166   : > { %v2647_v24 = vsel %vm389_vm2, %v6130_v17, 0.0 }
0x1167   : > { %2648 = vadd.xlane.f32.xlu2 %v2647_v24 }
0x1195   : > { %v2593_v32 = vpop.xlane.xlu1 %2592 }
0x1196   : > { %v2596_v14 = vmul.f32 %v2593_v32, %v5280_v33 }
0x1198   : > { %v2599_v36 = vadd.f32 1e-05, %v2596_v14 }
0x119a   : > { %4955 = vrsqrt.f32 %v2599_v36  ;;  %vm2626_vm10 = vweird.f32 %v2599_v36 }
0x11a0   : > { %v4956_v26 = vpop.eup %4955 }
0x11a1   : > { %v2621_v38 = vmul.f32 %v4956_v26, %v2599_v36  ;;  %vm2627_vm9 = vweird.f32 %v4956_v26 }
0x11a2   : > { %vm2628_vm11 = vmor %vm2626_vm10, %vm2627_vm9  ;;  %vm2944_vm10 = vcmask 257024  }
0x11a3   : > { %v2622_v39 = vmul.f32 %v4956_v26, %v2621_v38  ;;  %v2765_v38 = vld [vmem:[%s6889_s1 + $0x2f8] sm:$0xff] }
0x11a4   : > { %2786 = vmatpush.msrb.mxu0 %v2765_v38 }
0x11a5   : > { %v2623_v4 = vmul.f32 0.5, %v2622_v39 }
0x11a7   : > { %v2624_v40 = vsub.f32 1.5, %v2623_v4 }
0x11a9   : > { %v2625_v0 = vmul.f32 %v4956_v26, %v2624_v40 }
0x11ab   : > { %v2629_v44 = vsel %vm2628_vm11, %v4956_v26, %v2625_v0 }
0x11ac   : > { %v2632_v46 = vmul.f32 %v2629_v44, %v2581_v57 }
0x11ae   : > { %v2636_v50 = vmul.f32 %v4784_v7, %v2632_v46 }
0x11b0   : > { %v6135_v42 = vadd.f32 %v4785_v51, %v2636_v50 }
0x11b2   : > { %v2650_v20 = vsel %vm396_vm3, %v6135_v42, 0.0 }
0x11b3   : > { %2651 = vadd.xlane.f32.xlu1 %v2650_v20 }
0x11c0   : > { %v2646_v52 = vpop.xlane.xlu0 %2645 }
0x11c1   : > { %v2653_v53 = vmul.f32 %v2646_v52, %v5280_v33 }
0x11c3   : > { %v2656_v58 = vsub.f32 %v6126_v10, %v2653_v53 }
0x11c5   : > { %v2659_v41 = vmul.f32 %v2656_v58, %v2656_v58 }
0x11c7   : > { %v2662_v56 = vsel %vm2643_vm15, %v2659_v41, 0.0 }
0x11c8   : > { %2663 = vadd.xlane.f32.xlu0 %v2662_v56 }
0x11da   : > { %v2649_v5 = vpop.xlane.xlu2 %2648 }
0x11db   : > { %v2654_v59 = vmul.f32 %v2649_v5, %v5280_v33 }
0x11dd   : > { %v2657_v54 = vsub.f32 %v6130_v17, %v2654_v59  ;;  %v2764_v59 = vld [vmem:[%s6889_s1 + $0x2f0] sm:$0xff] }
0x11de   : > { %2787 = vmatpush.msrb.mxu0 %v2764_v59  ;;  %v2884_v59 = vld [vmem:[%s6889_s1 + $0x340] sm:$0xff] }
0x11df   : > { %v2660_v60 = vmul.f32 %v2657_v54, %v2657_v54 }
0x11e1   : > { %v2665_v19 = vsel %vm389_vm2, %v2660_v60, 0.0  ;;  %v2762_v60 = vld [vmem:[%s6889_s1 + $0x2e0] sm:$0xff] }
0x11e2   : > { %2666 = vadd.xlane.f32.xlu2 %v2665_v19  ;;  %v6193_v19 = vld [vmem:[%s6889_s1 + $0x308] sm:$0xf] }
0x1226   : > { %v2652_v61 = vpop.xlane.xlu1 %2651 }
0x1227   : > { %v2655_v23 = vmul.f32 %v2652_v61, %v5280_v33  ;;  %v2945_v61 = vsel %vm2944_vm10, %v6193_v19, 0.0 }
0x1228   : > { %2946 = vadd.xlane.f32.xlu0 %v2945_v61 }
0x1229   : > { %v6147_v43 = vsub.f32 %v6135_v42, %v2655_v23  ;;  %v4788_v23 = vld [vmem:[%s6889_s1 + $0x2d8] ss:$0 sm:$0xff] }
0x122b   : > { %v2661_v62 = vmul.f32 %v6147_v43, %v6147_v43 }
0x122d   : > { %v2668_v31 = vsel %vm396_vm3, %v2661_v62, 0.0 }
0x122e   : > { %2669 = vadd.xlane.f32.xlu1 %v2668_v31 }
0x123b   : > { %v2664_v55 = vpop.xlane.xlu0 %2663 }
0x123c   : > { %v2671_v57 = vmul.f32 %v2664_v55, %v5280_v33 }
0x123e   : > { %v2674_v16 = vadd.f32 1e-05, %v2671_v57 }
0x1240   : > { %4957 = vrsqrt.f32 %v2674_v16  ;;  %vm2683_vm13 = vweird.f32 %v2674_v16 }
0x1246   : > { %v4958_v37 = vpop.eup %4957 }
0x1247   : > { %v2678_v48 = vmul.f32 %v4958_v37, %v2674_v16  ;;  %vm2684_vm12 = vweird.f32 %v4958_v37 }
0x1248   : > { %vm2685_vm4 = vmor %vm2683_vm13, %vm2684_vm12 }
0x1249   : > { %v2679_v2 = vmul.f32 %v4958_v37, %v2678_v48 }
0x124b   : > { %v2680_v6 = vmul.f32 0.5, %v2679_v2 }
0x124d   : > { %v2681_v47 = vsub.f32 1.5, %v2680_v6 }
0x124f   : > { %v2682_v1 = vmul.f32 %v4958_v37, %v2681_v47 }
0x1251   : > { %v2686_v9 = vsel %vm2685_vm4, %v4958_v37, %v2682_v1 }
0x1252   : > { %v2707_v18 = vmul.f32 %v2686_v9, %v2656_v58 }
0x1254   : > { %v2711_v21 = vmul.f32 %v4786_v15, %v2707_v18 }
0x1255   : > { %v2667_v13 = vpop.xlane.xlu2 %2666 }
0x1256   : > { %v2672_v3 = vmul.f32 %v2667_v13, %v5280_v33  ;;  %v2715_v22 = vadd.f32 %v4787_v27, %v2711_v21 }
0x1258   : > { %v2675_v7 = vadd.f32 1e-05, %v2672_v3  ;;  %v2728_v32 = vrot.slane %v2715_v22, 1 }
0x125a   : > { %4959 = vrsqrt.f32 %v2675_v7  ;;  %vm2693_vm6 = vweird.f32 %v2675_v7 }
0x1260   : > { %v4960_v51 = vpop.eup %4959 }
0x1261   : > { %v2688_v8 = vmul.f32 %v4960_v51, %v2675_v7  ;;  %vm2694_vm5 = vweird.f32 %v4960_v51 }
0x1262   : > { %vm2695_vm14 = vmor %vm2693_vm6, %vm2694_vm5 }
0x1263   : > { %v2689_v34 = vmul.f32 %v4960_v51, %v2688_v8  ;;  %v6218_v8 = vld [vmem:[%s6889_s1 + $0x370] sm:$0xff] }
0x1265   : > { %v2690_v11 = vmul.f32 0.5, %v2689_v34  ;;  %v6225_v34 = vld [vmem:[%s6889_s1 + $0x368] sm:$0xff] }
0x1267   : > { %v2691_v35 = vsub.f32 1.5, %v2690_v11 }
0x1269   : > { %v2692_v12 = vmul.f32 %v4960_v51, %v2691_v35 }
0x126b   : > { %v2696_v28 = vsel %vm2695_vm14, %v4960_v51, %v2692_v12  ;;  %v6213_v51 = vld [vmem:[%s6889_s1 + $0x378] sm:$0xff] }
0x126c   : > { %v2708_v25 = vmul.f32 %v2696_v28, %v2657_v54  ;;  %v2763_v54 = vld [vmem:[%s6889_s1 + $0x2e8] sm:$0xff] }
0x126d   : > { %2788 = vmatpush.msrb.mxu0 %v2763_v54 }
0x126e   : > { %v2712_v30 = vmul.f32 %v4786_v15, %v2708_v25  ;;  %v6238_v25 = vld [vmem:[%s6889_s1 + $0x380] ss:$0 sm:$0xff] }
0x126f   : > { %2789 = vmatpush.msrb.mxu0 %v2762_v60 }
0x1270   : > { %v2716_v24 = vadd.f32 %v4787_v27, %v2712_v30 }
0x1271   : > { %2986 = vmatpush.msra.mxu0 %v6213_v51 }
0x1272   : > { %v2729_v14 = vrot.slane %v2716_v24, 1  ;;  %v6243_v24 = vld [vmem:[%s6889_s1 + $0x388] ss:$0 sm:$0xff] }
0x1273   : > { %2987 = vmatpush.msra.mxu0 %v6218_v8 }
0x1274   : > { %v2730_v36 = vsel %vm2727_vm0, %v2728_v32, %v2729_v14 }
0x1275   : > { %4605 = vmatmul.msk.f32.vlgmr.msrb.gmra.mxu3 %vm389_vm2, %v2730_v36  ;;  %2988 = vmatpush.msra.mxu0 %v6225_v34 }
0x129b   : > { %v2947_v37 = vpop.xlane.xlu0 %2946 }
0x129c   : > { %v2948_v45 = vmul.f32 %v2947_v37, %v5280_v33  ;;  %v4792_v37 = vld [vmem:[%s6889_s1 + $0x310] ss:$0 sm:$0xff] }
0x129e   : > { %v2949_v49 = vsub.f32 %v6193_v19, %v2948_v45 }
0x12a0   : > { %v2950_v48 = vmul.f32 %v2949_v49, %v2949_v49 }
0x12a1   : > { %v2670_v26 = vpop.xlane.xlu1 %2669 }
0x12a2   : > { %v2673_v39 = vmul.f32 %v2670_v26, %v5280_v33  ;;  %v2951_v29 = vsel %vm2944_vm10, %v2950_v48, 0.0  ;;  %v4793_v48 = vld [vmem:[%s6889_s1 + $0x318] ss:$0 sm:$0xff] }
0x12a3   : > { %2952 = vadd.xlane.f32.xlu0 %v2951_v29 }
0x12a4   : > { %v2676_v4 = vadd.f32 1e-05, %v2673_v39 }
0x12a6   : > { %4961 = vrsqrt.f32 %v2676_v4  ;;  %vm2703_vm8 = vweird.f32 %v2676_v4 }
0x12ac   : > { %v4962_v40 = vpop.eup %4961 }
0x12ad   : > { %v2698_v0 = vmul.f32 %v4962_v40, %v2676_v4  ;;  %vm2704_vm7 = vweird.f32 %v4962_v40 }
0x12ae   : > { %vm2705_vm9 = vmor %vm2703_vm8, %vm2704_vm7 }
0x12af   : > { %v2699_v44 = vmul.f32 %v4962_v40, %v2698_v0 }
0x12b1   : > { %v2700_v46 = vmul.f32 0.5, %v2699_v44 }
0x12b3   : > { %v2701_v50 = vsub.f32 1.5, %v2700_v46 }
0x12b5   : > { %v2702_v20 = vmul.f32 %v4962_v40, %v2701_v50 }
0x12b7   : > { %v2706_v52 = vsel %vm2705_vm9, %v4962_v40, %v2702_v20  ;;  %v2852_v20 = vld [vmem:[%s6889_s1 + $0x338] sm:$0xff]  ;;  %vm3026_vm9 = vcmask 31744  }
0x12b8   : > { %v2709_v53 = vmul.f32 %v2706_v52, %v6147_v43  ;;  %v2887_v52 = vld [vmem:[%s6889_s1 + $0x358] sm:$0xff]  ;;  %2871 = vmatpush.msrb.mxu1 %v2852_v20 }
0x12b9   : > { %2900 = vmatpush.msra.mxu3 %v2887_v52 }
0x12ba   : > { %v2713_v58 = vmul.f32 %v4786_v15, %v2709_v53  ;;  %v6231_v15 = vld [vmem:[%s6889_s1 + $0x360] sm:$0xff]  ;;  %v2851_v53 = vld [vmem:[%s6889_s1 + $0x330] sm:$0xff] }
0x12bb   : > { %2989 = vmatpush.msra.mxu0 %v6231_v15  ;;  %2872 = vmatpush.msrb.mxu1 %v2851_v53 }
0x12bc   : > { %v2717_v41 = vadd.f32 %v4787_v27, %v2713_v58  ;;  %v2886_v58 = vld [vmem:[%s6889_s1 + $0x350] sm:$0xff] }
0x12bd   : > { %2901 = vmatpush.msra.mxu3 %v2886_v58 }
0x12be   : > { %v2731_v56 = vrot.slane %v2717_v41, 1  ;;  %v2850_v41 = vld [vmem:[%s6889_s1 + $0x328] sm:$0xff] }
0x12bf   : > { %2873 = vmatpush.msrb.mxu1 %v2850_v41 }
0x12c0   : > { %v2732_v5 = vsel %vm2727_vm0, %v2729_v14, %v2731_v56  ;;  %v2885_v56 = vld [vmem:[%s6889_s1 + $0x348] sm:$0xff] }
0x12c1   : > { %4606 = vmatmul.msk.f32.gmra.mxu3 %vm389_vm2, %v2732_v5  ;;  %v2849_v5 = vld [vmem:[%s6889_s1 + $0x320] sm:$0xff] }
0x12c2   : > { %2902 = vmatpush.msra.mxu3 %v2885_v56  ;;  %2874 = vmatpush.msrb.mxu1 %v2849_v5 }
0x12c4   : > { %2903 = vmatpush.msra.mxu3 %v2884_v59 }
0x12f8   : > { %v2754_v43 = vpop.f32.mrf.mxu3 }
0x12f9   : > { %v2755_v62 = vadd.f32 %v4788_v23, %v2754_v43 }
0x12fb   : > { %v2760_v31 = vmax.f32 %v2755_v62, 0.0 }
0x12fd   : > { %4607 = vmatmul.msk.f32.vlgmr.msrb.gmra.mxu0 %vm389_vm2, %v2760_v31 }
0x1316   : > { %v2953_v1 = vpop.xlane.xlu0 %2952 }
0x1317   : > { %v2954_v9 = vmul.f32 %v2953_v1, %v5280_v33 }
0x1319   : > { %v2955_v11 = vadd.f32 1e-05, %v2954_v9 }
0x131b   : > { %4963 = vrsqrt.f32 %v2955_v11  ;;  %vm2962_vm11 = vweird.f32 %v2955_v11 }
0x1321   : > { %v4964_v18 = vpop.eup %4963 }
0x1322   : > { %v2957_v35 = vmul.f32 %v4964_v18, %v2955_v11  ;;  %vm2963_vm12 = vweird.f32 %v4964_v18 }
0x1323   : > { %vm2964_vm13 = vmor %vm2962_vm11, %vm2963_vm12  ;;  %vm3095_vm11 = vcmask 130048  }
0x1324   : > { %v2958_v12 = vmul.f32 %v4964_v18, %v2957_v35 }
0x1326   : > { %v2959_v21 = vmul.f32 0.5, %v2958_v12 }
0x1328   : > { %v2960_v27 = vsub.f32 1.5, %v2959_v21 }
0x132a   : > { %v2961_v28 = vmul.f32 %v4964_v18, %v2960_v27 }
0x132c   : > { %v2965_v30 = vsel %vm2964_vm13, %v4964_v18, %v2961_v28 }
0x132d   : > { %v2966_v22 = vmul.f32 %v2965_v30, %v2949_v49 }
0x132f   : > { %v2968_v36 = vmul.f32 %v6238_v25, %v2966_v22 }
0x1331   : > { %v2970_v38 = vadd.f32 %v6243_v24, %v2968_v36 }
0x1344   : > { %v2757_v55 = vpop.f32.mrf.mxu3 }
0x1345   : > { %v2758_v57 = vadd.f32 %v4788_v23, %v2757_v55 }
0x1347   : > { %v2761_v16 = vmax.f32 %v2758_v57, 0.0 }
0x1349   : > { %4608 = vmatmul.msk.f32.gmra.mxu0 %vm389_vm2, %v2761_v16 }
0x1351   : > { %4613 = vmatmul.msk.f32.vlgmr.msra.gmra.mxu0 %vm389_vm2, %v2970_v38 }
0x137a   : > { %v2791_v2 = vpop.f32.mrf.mxu0 }
0x137b   : > { %v2792_v13 = vadd.f32 %v4789_v63, %v2791_v2 }
0x137d   : > { %v2799_v3 = vsel %vm389_vm2, %v2792_v13, 0.0 }
0x137e   : > { %2800 = vadd.xlane.f32.xlu2 %v2799_v3 }
0x13c6   : > { %v2794_v6 = vpop.f32.mrf.mxu0 }
0x13c7   : > { %v2795_v7 = vadd.f32 %v4789_v63, %v2794_v6 }
0x13c9   : > { %v2802_v47 = vsel %vm389_vm2, %v2795_v7, 0.0 }
0x13ca   : > { %2803 = vadd.xlane.f32.xlu1 %v2802_v47 }
0x13ce   : > { %v2991_v23 = vpop.f32.mrf.mxu0 }
0x13cf   : > { %4614 = vmatpush.xpose.msk.msra.mxu2 %vm389_vm2, %v2991_v23 }
0x13f1   : > { %v2801_v32 = vpop.xlane.xlu2 %2800 }
0x13f2   : > { %v2805_v14 = vmul.f32 %v2801_v32, %v5280_v33 }
0x13f4   : > { %v2807_v26 = vsub.f32 %v2792_v13, %v2805_v14 }
0x13f6   : > { %v2809_v39 = vmul.f32 %v2807_v26, %v2807_v26 }
0x13f8   : > { %v2811_v4 = vsel %vm389_vm2, %v2809_v39, 0.0 }
0x13f9   : > { %2812 = vadd.xlane.f32.xlu2 %v2811_v4 }
0x143d   : > { %v2804_v40 = vpop.xlane.xlu1 %2803 }
0x143e   : > { %v2806_v0 = vmul.f32 %v2804_v40, %v5280_v33 }
0x1440   : > { %v2808_v44 = vsub.f32 %v2795_v7, %v2806_v0 }
0x1442   : > { %v2810_v46 = vmul.f32 %v2808_v44, %v2808_v44 }
0x1444   : > { %v2814_v50 = vsel %vm389_vm2, %v2810_v46, 0.0 }
0x1445   : > { %2815 = vadd.xlane.f32.xlu1 %v2814_v50 }
0x146c   : > { %v2813_v54 = vpop.xlane.xlu2 %2812 }
0x146d   : > { %v2817_v60 = vmul.f32 %v2813_v54, %v5280_v33 }
0x146f   : > { %v2819_v61 = vadd.f32 1e-05, %v2817_v60 }
0x1471   : > { %4965 = vrsqrt.f32 %v2819_v61  ;;  %vm2827_vm5 = vweird.f32 %v2819_v61 }
0x1477   : > { %v4966_v43 = vpop.eup %4965 }
0x1478   : > { %v2822_v62 = vmul.f32 %v4966_v43, %v2819_v61  ;;  %vm2828_vm4 = vweird.f32 %v4966_v43 }
0x1479   : > { %vm2829_vm6 = vmor %vm2827_vm5, %vm2828_vm4 }
0x147a   : > { %v2823_v31 = vmul.f32 %v4966_v43, %v2822_v62 }
0x147c   : > { %v2824_v55 = vmul.f32 0.5, %v2823_v31  ;;  %v6312_v31 = vld [vmem:[%s6889_s1 + $0x408] sm:$0xff] }
0x147e   : > { %v2825_v57 = vsub.f32 1.5, %v2824_v55  ;;  %v6317_v55 = vld [vmem:[%s6889_s1 + $0x400] sm:$0xff] }
0x1480   : > { %v2826_v16 = vmul.f32 %v4966_v43, %v2825_v57 }
0x1482   : > { %v2830_v45 = vsel %vm2829_vm6, %v4966_v43, %v2826_v16  ;;  %v6323_v16 = vld [vmem:[%s6889_s1 + $0x3f8] sm:$0xff] }
0x1483   : > { %v2841_v49 = vmul.f32 %v2830_v45, %v2807_v26  ;;  %v6329_v45 = vld [vmem:[%s6889_s1 + $0x3f0] sm:$0xff] }
0x1485   : > { %v2844_v29 = vmul.f32 %v4792_v37, %v2841_v49 }
0x1487   : > { %v2847_v63 = vadd.f32 %v4793_v48, %v2844_v29 }
0x1489   : > { %4609 = vmatmul.msk.f32.vlgmr.msrb.gmra.mxu1 %vm389_vm2, %v2847_v63  ;;  %4611 = vmatmul.msk.f32.vlgmr.msra.gmra.mxu3 %vm389_vm2, %v2847_v63 }
0x14b8   : > { %v2816_v2 = vpop.xlane.xlu1 %2815 }
0x14b9   : > { %v2818_v13 = vmul.f32 %v2816_v2, %v5280_v33 }
0x14bb   : > { %v2820_v3 = vadd.f32 1e-05, %v2818_v13 }
0x14bd   : > { %4967 = vrsqrt.f32 %v2820_v3  ;;  %vm2837_vm7 = vweird.f32 %v2820_v3 }
0x14c3   : > { %v4968_v6 = vpop.eup %4967 }
0x14c4   : > { %v2832_v7 = vmul.f32 %v4968_v6, %v2820_v3  ;;  %vm2838_vm14 = vweird.f32 %v4968_v6 }
0x14c5   : > { %vm2839_vm8 = vmor %vm2837_vm7, %vm2838_vm14 }
0x14c6   : > { %v2833_v47 = vmul.f32 %v4968_v6, %v2832_v7  ;;  %v6336_v7 = vld [vmem:[%s6889_s1 + $0x3d0] sm:$0xff] }
0x14c7   : > { %3159 = vmatpush.msrb.mxu3 %v6336_v7 }
0x14c8   : > { %v2834_v1 = vmul.f32 0.5, %v2833_v47  ;;  %v6341_v47 = vld [vmem:[%s6889_s1 + $0x3c8] sm:$0xff] }
0x14c9   : > { %3160 = vmatpush.msrb.mxu3 %v6341_v47 }
0x14ca   : > { %v2835_v9 = vsub.f32 1.5, %v2834_v1  ;;  %v2920_v1 = vld [vmem:[%s6889_s1 + $0x3a8] sm:$0xff] }
0x14cb   : > { %3135 = vmatpush.msrb.mxu0 %v2920_v1 }
0x14cc   : > { %v2836_v11 = vmul.f32 %v4968_v6, %v2835_v9  ;;  %v2919_v9 = vld [vmem:[%s6889_s1 + $0x3a0] sm:$0xff] }
0x14cd   : > { %3136 = vmatpush.msrb.mxu0 %v2919_v9 }
0x14ce   : > { %v2840_v18 = vsel %vm2839_vm8, %v4968_v6, %v2836_v11  ;;  %v6353_v11 = vld [vmem:[%s6889_s1 + $0x3c0] sm:$0xff]  ;;  %vm3278_vm8 = vcmask 523264  }
0x14cf   : > { %v2842_v35 = vmul.f32 %v2840_v18, %v2808_v44  ;;  %v2918_v18 = vld [vmem:[%s6889_s1 + $0x398] sm:$0xff]  ;;  %3161 = vmatpush.msrb.mxu3 %v6353_v11 }
0x14d0   : > { %3137 = vmatpush.msrb.mxu0 %v2918_v18 }
0x14d1   : > { %v2845_v12 = vmul.f32 %v4792_v37, %v2842_v35  ;;  %v6362_v35 = vld [vmem:[%s6889_s1 + $0x3b8] sm:$0xff] }
0x14d2   : > { %3162 = vmatpush.msrb.mxu3 %v6362_v35 }
0x14d3   : > { %v2848_v21 = vadd.f32 %v4793_v48, %v2845_v12 }
0x14d5   : > { %4610 = vmatmul.msk.f32.gmra.mxu1 %vm389_vm2, %v2848_v21  ;;  %4612 = vmatmul.msk.f32.gmra.mxu3 %vm389_vm2, %v2848_v21  ;;  %v2917_v21 = vld [vmem:[%s6889_s1 + $0x390] sm:$0xff] }
0x14d6   : > { %3138 = vmatpush.msrb.mxu0 %v2917_v21 }
0x14d8   : > { %3370 = vmatpush.msra.mxu0 %v6213_v51 }
0x14da   : > { %3371 = vmatpush.msra.mxu0 %v6218_v8  ;;  %v6391_v8 = vld [vmem:[%s6889_s1 + $0x3b0] ss:$0 sm:$0xff] }
0x14dc   : > { %3372 = vmatpush.msra.mxu0 %v6225_v34 }
0x14dd   : > { %4619 = vmatmul.msk.f32.vlgmr.msrb.gmra.mxu3 %vm389_vm2, %v6193_v19 }
0x14de   : > { %3373 = vmatpush.msra.mxu0 %v6231_v15 }
0x1506   : > { %v2876_v27 = vpop.f32.mrf.mxu1 }
0x1507   : > { %v6289_v28 = vmul.f32 0.17677669, %v2876_v27  ;;  %v6381_v27 = vld [vmem:[%s6889_s1 + $0x3d8] ss:$0 sm:$0xff] }
0x1509   : > { %4615 = vmatmul.msk.f32.vlgmr.msra.gmra.mxu2 %vm389_vm2, %v6289_v28 }
0x150c   : > { %v6293_v30 = vpop.f32.mrf.mxu3 }
0x1552   : > { %v2879_v22 = vpop.f32.mrf.mxu1 }
0x1553   : > { %v6295_v32 = vmul.f32 0.17677669, %v2879_v22 }
0x1555   : > { %4616 = vmatmul.msk.f32.gmra.mxu2 %vm389_vm2, %v6295_v32 }
0x1558   : > { %v6299_v14 = vpop.f32.mrf.mxu3 }
0x1559   : > { %3113 = vmatpush.msra.mxu1 %v6299_v14 }
0x155b   : > { %3114 = vmatpush.msra.mxu1 %v6293_v30 }
0x155d   : > { %3269 = vmatpush.msrb.mxu1 %v6312_v31 }
0x155f   : > { %3270 = vmatpush.msrb.mxu1 %v6317_v55 }
0x1560   : > { %v3164_v22 = vpop.f32.mrf.mxu3 }
0x1561   : > { %3271 = vmatpush.msrb.mxu1 %v6323_v16 }
0x1563   : > { %3272 = vmatpush.msrb.mxu1 %v6329_v45 }
0x158c   : > { %v3020_v36 = vpop.f32.mrf.mxu2 }
0x158d   : > { %v3027_v26 = vsel %vm3026_vm9, %v3020_v36, -inf }
0x158e   : > { %3028 = vmax.xlane.f32.xlu0 %v3027_v26 }
0x15d8   : > { %v3023_v38 = vpop.f32.mrf.mxu2 }
0x15d9   : > { %v3030_v39 = vsel %vm3026_vm9, %v3023_v38, -inf }
0x15da   : > { %3031 = vmax.xlane.f32.xlu2 %v3030_v39 }
0x1601   : > { %v3029_v4 = vpop.xlane.xlu0 %3028 }
0x1602   : > { %v3033_v40 = vsub.f32 %v3020_v36, %v3029_v4 }
0x1604   : > { %v3035_v0 = vmul.f32 1.442695, %v3033_v40 }
0x1606   : > { %4969 = vpow2.f32 %v3035_v0 }
0x160c   : > { %v4970_v44 = vpop.eup %4969 }
0x160d   : > { %v3039_v46 = vsel %vm3026_vm9, %v4970_v44, 0.0 }
0x160e   : > { %3040 = vadd.xlane.f32.xlu1 %v3039_v46 }
0x164d   : > { %v3032_v50 = vpop.xlane.xlu2 %3031 }
0x164e   : > { %v3034_v20 = vsub.f32 %v3023_v38, %v3032_v50 }
0x1650   : > { %v3037_v52 = vmul.f32 1.442695, %v3034_v20 }
0x1652   : > { %4971 = vpow2.f32 %v3037_v52 }
0x1658   : > { %v4972_v53 = vpop.eup %4971 }
0x1659   : > { %v3042_v58 = vsel %vm3026_vm9, %v4972_v53, 0.0 }
0x165a   : > { %3043 = vadd.xlane.f32.xlu0 %v3042_v58 }
0x1681   : > { %v3041_v41 = vpop.xlane.xlu1 %3040 }
0x1682   : > { %4973 = vrcp.f32 %v3041_v41 }
0x1688   : > { %v4974_v5 = vpop.eup %4973 }
0x1689   : > { %v3047_v59 = vmul.f32 %v4974_v5, %v4970_v44 }
0x168b   : > { %v3049_v61 = vadd.f32 1e-08, %v3047_v59 }
0x168d   : > { %v3051_v43 = vsel %vm3026_vm9, %v3049_v61, 0.0 }
0x16cd   : > { %v3044_v56 = vpop.xlane.xlu0 %3043 }
0x16ce   : > { %4975 = vrcp.f32 %v3044_v56 }
0x16d4   : > { %v4976_v54 = vpop.eup %4975 }
0x16d5   : > { %v3048_v60 = vmul.f32 %v4976_v54, %v4972_v53 }
0x16d7   : > { %v3050_v23 = vadd.f32 1e-08, %v3048_v60 }
0x16d9   : > { %v3052_v62 = vsel %vm3026_vm9, %v3050_v23, 0.0 }
0x16da   : > { %v3053_v57 = vadd.f32 %v3052_v62, %v3051_v43 }
0x16dc   : > { %v3054_v37 = vrot.slane %v3053_v57, 4 }
0x16de   : > { %v3055_v49 = vadd.f32 %v3054_v37, %v3053_v57 }
0x16e0   : > { %v3056_v48 = vrot.slane %v3055_v49, 2 }
0x16e2   : > { %v3057_v29 = vadd.f32 %v3056_v48, %v3055_v49 }
0x16e4   : > { %v3058_v63 = vrot.slane %v3057_v29, 1 }
0x16e6   : > { %v3059_v2 = vadd.f32 %v3058_v63, %v3057_v29  ;;  %v4796_v63 = vld [vmem:[%s6889_s1 + $0x3e0] ss:$0 sm:$0xff] }
0x16e8   : > { %4977 = vrcp.f32 %v3059_v2  ;;  %v4797_v2 = vld [vmem:[%s6889_s1 + $0x3e8] ss:$0 sm:$0xff] }
0x16ee   : > { %v4978_v13 = vpop.eup %4977 }
0x16ef   : > { %v3061_v3 = vmul.f32 %v4978_v13, %v3049_v61  ;;  %v3062_v6 = vmul.f32 %v4978_v13, %v3050_v23 }
0x16f1   : > { %3063 = vxpose.xlu2.b32.start [1/2] (short) (narrow) %v3061_v3, 8 }
0x16f9   : > { %3064 = vxpose.xlu2.b32.end [2/2] (short) (narrow) %v3062_v6, 8 }
0x178a   : > { %v3079_v12 = vpop.trf.xlu2 }
0x178b   : > { %4617 = vmatmul.msk.f32.vlgmr.msra.gmra.mxu1 %vm3095_vm11, %v3079_v12 }
0x178c   : > { %3489 = vmatpush.msra.mxu1 %v6299_v14 }
0x178e   : > { %3490 = vmatpush.msra.mxu1 %v6293_v30  ;;  %v3165_v30 = vadd.f32 %v6381_v27, %v3164_v22 }
0x1790   : > { %3188 = vrot.lane.b32.xlu1 %v3165_v30, %s5130_s21 }
0x1798   : > { %3204 = vrot.lane.b32.xlu1 %v6193_v19, %s5131_s29 }
0x1802   : > { %v3189_v52 = vpop.permute.xlu1 %3188 }
0x1808   : > { %v3116_v51 = vpop.f32.mrf.mxu1 }
0x1809   : > { %4618 = vmatmul.msk.f32.vlgmr.msrb.gmra.mxu0 %vm389_vm2, %v3116_v51 }
0x180a   : > { %3510 = vmatpush.msrb.mxu0 %v2920_v1  ;;  %v3205_v59 = vpop.permute.xlu1 %3204 }
0x180c   : > { %3511 = vmatpush.msrb.mxu0 %v2919_v9 }
0x180e   : > { %3512 = vmatpush.msrb.mxu0 %v2918_v18 }
0x1810   : > { %3513 = vmatpush.msrb.mxu0 %v2917_v21 }
0x1886   : > { %v3140_v34 = vpop.f32.mrf.mxu0 }
0x1887   : > { %v3141_v15 = vadd.f32 %v6391_v8, %v3140_v34 }
0x1889   : > { %v3167_v14 = vadd.f32 %v3165_v30, %v3141_v15 }
0x188b   : > { %v4620_v36 = vmul.f32 -1.442695, %v3167_v14 }
0x188d   : > { %4979 = vpow2.f32 %v4620_v36 }
0x1893   : > { %v4980_v26 = vpop.eup %4979 }
0x1894   : > { %v3171_v19 = vadd.f32 1.0, %v4980_v26 }
0x1896   : > { %4981 = vrcp.f32 %v3171_v19  ;;  %v3183_v40 = vand.u32 2147483648, %v3171_v19  ;;  %v3181_v44 = vand.u32 2147483647, %v3171_v19  ;;  %vm3177_vm13 = vweird.f32 %v3171_v19 }
0x1898   : > { %v3184_v50 = vor.u32 1.1754944e-38, %v3183_v40  ;;  %vm3182_vm5 = vcmp.eq.f32.partialorder %v3181_v44, 8.507059e+37  ;;  %v6441_v40 = vld [vmem:[%s6889_s1 + $0x438] sm:$0xff] }
0x189c   : > { %v4982_v38 = vpop.eup %4981 }
0x189d   : > { %v3173_v39 = vmul.f32 %v4982_v38, %v3171_v19  ;;  %vm3178_vm12 = vweird.f32 %v4982_v38 }
0x189e   : > { %vm3179_vm4 = vmor %vm3177_vm13, %vm3178_vm12 }
0x189f   : > { %v3174_v4 = vsub.f32 1.0, %v3173_v39  ;;  %v6429_v39 = vld [vmem:[%s6889_s1 + $0x448] sm:$0xff] }
0x18a1   : > { %v3175_v0 = vmul.f32 %v4982_v38, %v3174_v4  ;;  %v6435_v4 = vld [vmem:[%s6889_s1 + $0x440] sm:$0xff] }
0x18a3   : > { %v3176_v46 = vadd.f32 %v4982_v38, %v3175_v0  ;;  %v6447_v0 = vld [vmem:[%s6889_s1 + $0x430] sm:$0xff] }
0x18a5   : > { %v3180_v20 = vsel %vm3179_vm4, %v4982_v38, %v3176_v46  ;;  %v6424_v38 = vld [vmem:[%s6889_s1 + $0x450] sm:$0xff]  ;;  %v6459_v46 = vld [vmem:[%s6889_s1 + $0x428] sm:$0xff] }
0x18a6   : > { %v3185_v53 = vsel %vm3182_vm5, %v3184_v50, %v3180_v20  ;;  %3290 = vmatpush.msrb.mxu2 %v6424_v38  ;;  %v6465_v50 = vld [vmem:[%s6889_s1 + $0x420] sm:$0xff] }
0x18a7   : > { %v3191_v58 = vmul.f32 %v3189_v52, %v3185_v53  ;;  %v3198_v54 = vsub.f32 1.0, %v3185_v53  ;;  %v3207_v61 = vmul.f32 %v3205_v59, %v3185_v53 }
0x18a8   : > { %3291 = vmatpush.msrb.mxu2 %v6429_v39 }
0x18a9   : > { %3193 = vrot.lane.b32.xlu0 %v3191_v58, %s5130_s21 }
0x18aa   : > { %3292 = vmatpush.msrb.mxu2 %v6435_v4 }
0x18ac   : > { %3293 = vmatpush.msrb.mxu2 %v6441_v40 }
0x18ae   : > { %3294 = vmatpush.msrb.mxu2 %v6447_v0 }
0x18b0   : > { %3295 = vmatpush.msrb.mxu2 %v6459_v46 }
0x18b2   : > { %3296 = vmatpush.msrb.mxu2 %v6465_v50 }
0x191b   : > { %v3194_v41 = vpop.permute.xlu0 %3193 }
0x191c   : > { %v3196_v56 = vadd.f32 %v3194_v41, %v3141_v15 }
0x191e   : > { %4983 = vtanh.f32 %v3196_v56 }
0x1924   : > { %v4984_v5 = vpop.eup %4983 }
0x1925   : > { %3200 = vrot.lane.b32.xlu0 %v4984_v5, %s5129_s20 }
0x1997   : > { %v3201_v60 = vpop.permute.xlu0 %3200 }
0x1998   : > { %v3203_v23 = vmul.f32 %v3201_v60, %v3198_v54 }
0x199a   : > { %v6396_v43 = vadd.f32 %v3207_v61, %v3203_v23 }
0x199c   : > { %3210 = vrot.lane.b32.xlu0 %v6396_v43, %s5129_s20 }
0x1a0e   : > { %v3211_v62 = vpop.permute.xlu0 %3210 }
0x1a0f   : > { %v3213_v57 = vsel %vm2944_vm10, %v3211_v62, 0.0 }
0x1a10   : > { %3214 = vadd.xlane.f32.xlu1 %v3213_v57 }
0x1a83   : > { %v3215_v37 = vpop.xlane.xlu1 %3214 }
0x1a84   : > { %v3216_v49 = vmul.f32 %v3215_v37, %v5280_v33 }
0x1a86   : > { %v3217_v48 = vsub.f32 %v6396_v43, %v3216_v49 }
0x1a88   : > { %v3218_v29 = vmul.f32 %v3217_v48, %v3217_v48 }
0x1a8a   : > { %3220 = vrot.lane.b32.xlu0 %v3218_v29, %s5129_s20 }
0x1a92   : > { %3241 = vrot.lane.b32.xlu0 %v4796_v63, %s5131_s29 }
0x1a9a   : > { %3247 = vrot.lane.b32.xlu0 %v4797_v2, %s5131_s29 }
0x1afc   : > { %v3221_v13 = vpop.permute.xlu0 %3220 }
0x1afd   : > { %v3223_v3 = vsel %vm2944_vm10, %v3221_v13, 0.0 }
0x1afe   : > { %3224 = vadd.xlane.f32.xlu2 %v3223_v3 }
0x1b04   : > { %v6414_v22 = vpop.permute.xlu0 %3241 }
0x1b0c   : > { %v6416_v36 = vpop.permute.xlu0 %3247 }
0x1b71   : > { %v3225_v6 = vpop.xlane.xlu2 %3224 }
0x1b72   : > { %v3226_v1 = vmul.f32 %v3225_v6, %v5280_v33 }
0x1b74   : > { %v3227_v9 = vadd.f32 1e-05, %v3226_v1 }
0x1b76   : > { %4985 = vrsqrt.f32 %v3227_v9  ;;  %vm3234_vm14 = vweird.f32 %v3227_v9 }
0x1b7c   : > { %v4986_v18 = vpop.eup %4985 }
0x1b7d   : > { %v3229_v12 = vmul.f32 %v4986_v18, %v3227_v9  ;;  %vm3235_vm6 = vweird.f32 %v4986_v18 }
0x1b7e   : > { %vm3236_vm7 = vmor %vm3234_vm14, %vm3235_vm6 }
0x1b7f   : > { %v3230_v21 = vmul.f32 %v4986_v18, %v3229_v12 }
0x1b81   : > { %v3231_v30 = vmul.f32 0.5, %v3230_v21 }
0x1b83   : > { %v3232_v51 = vsub.f32 1.5, %v3231_v30 }
0x1b85   : > { %v3233_v34 = vmul.f32 %v4986_v18, %v3232_v51 }
0x1b87   : > { %v3237_v15 = vsel %vm3236_vm7, %v4986_v18, %v3233_v34 }
0x1b88   : > { %v3238_v14 = vmul.f32 %v3237_v15, %v3217_v48 }
0x1b8a   : > { %v3244_v26 = vmul.f32 %v6414_v22, %v3238_v14 }
0x1b8c   : > { %v3250_v19 = vadd.f32 %v6416_v36, %v3244_v26 }
0x1b8e   : > { %3253 = vrot.lane.b32.xlu0 %v3250_v19, %s5129_s20 }
0x1c00   : > { %v3254_v44 = vpop.permute.xlu0 %3253 }
0x1c01   : > { %4621 = vmatmul.msk.f32.vlgmr.msrb.gmra.mxu1 %vm389_vm2, %v3254_v44 }
0x1c02   : > { %3628 = vmatpush.msrb.mxu1 %v6312_v31  ;;  %v6470_v31 = vld [vmem:[%s6889_s1 + $0x418] sm:$0xff] }
0x1c03   : > { %3297 = vmatpush.msrb.mxu2 %v6470_v31 }
0x1c04   : > { %3629 = vmatpush.msrb.mxu1 %v6317_v55  ;;  %v6481_v55 = vld [vmem:[%s6889_s1 + $0x410] ss:$0 sm:$0xff] }
0x1c05   : > { %3532 = vmatpush.msra.mxu2 %v6336_v7  ;;  %v4799_v7 = vld [vmem:[%s6889_s1 + $0x458] ss:$0 sm:$0xff] }
0x1c06   : > { %3630 = vmatpush.msrb.mxu1 %v6323_v16  ;;  %3309 = vrot.lane.b32.xlu1 %v4799_v7, %s5131_s29 }
0x1c07   : > { %3533 = vmatpush.msra.mxu2 %v6341_v47 }
0x1c08   : > { %3631 = vmatpush.msrb.mxu1 %v6329_v45 }
0x1c09   : > { %3534 = vmatpush.msra.mxu2 %v6353_v11 }
0x1c0b   : > { %3535 = vmatpush.msra.mxu2 %v6362_v35 }
0x1c78   : > { %v6490_v35 = vpop.permute.xlu1 %3309 }
0x1c7e   : > { %v3274_v16 = vpop.f32.mrf.mxu1 }
0x1c7f   : > { %v3275_v45 = vadd.f32 %v6481_v55, %v3274_v16 }
0x1c81   : > { %v3277_v20 = vmax.f32 %v3275_v45, 0.0 }
0x1c83   : > { %4622 = vmatmul.msk.f32.vlgmr.msrb.gmra.mxu2 %vm3278_vm8, %v3277_v20 }
0x1d06   : > { %v3299_v47 = vpop.f32.mrf.mxu2 }
0x1d07   : > { %3303 = vrot.lane.b32.xlu0 %v3299_v47, %s5131_s29 }
0x1d79   : > { %v3304_v11 = vpop.permute.xlu0 %3303 }
0x1d7a   : > { %v3306_v52 = vadd.f32 %v3304_v11, %v6396_v43 }
0x1d7c   : > { %v6494_v53 = vadd.f32 %v6490_v35, %v3306_v52 }
0x1d7e   : > { %3314 = vrot.lane.b32.xlu0 %v6494_v53, %s5129_s20 }
0x1df0   : > { %v3315_v58 = vpop.permute.xlu0 %3314 }
0x1df1   : > { %4629 = vmatmul.msk.f32.vlgmr.msra.gmra.mxu2 %vm389_vm2, %v3315_v58  ;;  %v3317_v41 = vsel %vm2944_vm10, %v3315_v58, 0.0 }
0x1df2   : > { %3318 = vadd.xlane.f32.xlu0 %v3317_v41 }
0x1e06   : > { %3344 = vrot.lane.b32.xlu0 %v6238_v25, %s5131_s29 }
0x1e0e   : > { %3349 = vrot.lane.b32.xlu0 %v6243_v24, %s5131_s29 }
0x1e65   : > { %v3319_v56 = vpop.xlane.xlu0 %3318 }
0x1e66   : > { %v3320_v5 = vmul.f32 %v3319_v56, %v5280_v33 }
0x1e68   : > { %v3321_v59 = vsub.f32 %v6494_v53, %v3320_v5 }
0x1e6a   : > { %v3322_v54 = vmul.f32 %v3321_v59, %v3321_v59 }
0x1e6c   : > { %3324 = vrot.lane.b32.xlu1 %v3322_v54, %s5129_s20 }
0x1e78   : > { %v3345_v37 = vpop.permute.xlu0 %3344 }
0x1e80   : > { %v3350_v13 = vpop.permute.xlu0 %3349 }
0x1ede   : > { %v3325_v60 = vpop.permute.xlu1 %3324 }
0x1edf   : > { %v3327_v61 = vsel %vm2944_vm10, %v3325_v60, 0.0 }
0x1ee0   : > { %3328 = vadd.xlane.f32.xlu1 %v3327_v61 }
0x1f53   : > { %v3329_v23 = vpop.xlane.xlu1 %3328 }
0x1f54   : > { %v3330_v43 = vmul.f32 %v3329_v23, %v5280_v33 }
0x1f56   : > { %v3331_v62 = vadd.f32 1e-05, %v3330_v43 }
0x1f58   : > { %4987 = vrsqrt.f32 %v3331_v62  ;;  %vm3338_vm13 = vweird.f32 %v3331_v62 }
0x1f5e   : > { %v4988_v25 = vpop.eup %4987 }
0x1f5f   : > { %v3333_v57 = vmul.f32 %v4988_v25, %v3331_v62  ;;  %vm3339_vm12 = vweird.f32 %v4988_v25 }
0x1f60   : > { %vm3340_vm4 = vmor %vm3338_vm13, %vm3339_vm12 }
0x1f61   : > { %v3334_v24 = vmul.f32 %v4988_v25, %v3333_v57 }
0x1f63   : > { %v3335_v49 = vmul.f32 0.5, %v3334_v24 }
0x1f65   : > { %v3336_v48 = vsub.f32 1.5, %v3335_v49 }
0x1f67   : > { %v3337_v29 = vmul.f32 %v4988_v25, %v3336_v48 }
0x1f69   : > { %v3341_v63 = vsel %vm3340_vm4, %v4988_v25, %v3337_v29 }
0x1f6a   : > { %v3342_v2 = vmul.f32 %v3341_v63, %v3321_v59 }
0x1f6c   : > { %v3347_v3 = vmul.f32 %v3345_v37, %v3342_v2 }
0x1f6e   : > { %v3352_v6 = vadd.f32 %v3350_v13, %v3347_v3 }
0x1f70   : > { %3354 = vrot.lane.b32.xlu1 %v3352_v6, %s5129_s20 }
0x1fe2   : > { %v3355_v1 = vpop.permute.xlu1 %3354 }
0x1fe3   : > { %4623 = vmatmul.msk.f32.vlgmr.msra.gmra.mxu0 %vm389_vm2, %v3355_v1 }
0x2060   : > { %v3375_v9 = vpop.f32.mrf.mxu0 }
0x2061   : > { %4624 = vmatpush.xpose.msk.msra.mxu3 %vm389_vm2, %v3375_v9 }
0x2064   : > { %4625 = vmatmul.msk.f32.vlgmr.msra.gmra.mxu3 %vm389_vm2, %v6289_v28 }
0x2065   : > { %3648 = vmatpush.msrb.mxu3 %v6424_v38 }
0x2067   : > { %3649 = vmatpush.msrb.mxu3 %v6429_v39 }
0x2069   : > { %3650 = vmatpush.msrb.mxu3 %v6435_v4  ;;  %v3537_v4 = vpop.f32.mrf.mxu2 }
0x206b   : > { %3651 = vmatpush.msrb.mxu3 %v6441_v40  ;;  %v3538_v40 = vadd.f32 %v6381_v27, %v3537_v4 }
0x206c   : > { %4626 = vmatmul.msk.f32.gmra.mxu3 %vm389_vm2, %v6295_v32 }
0x206d   : > { %3652 = vmatpush.msrb.mxu3 %v6447_v0 }
0x206f   : > { %3653 = vmatpush.msrb.mxu3 %v6459_v46 }
0x2071   : > { %3654 = vmatpush.msrb.mxu3 %v6465_v50 }
0x2073   : > { %3655 = vmatpush.msrb.mxu3 %v6470_v31 }
0x20e7   : > { %v3398_v28 = vpop.f32.mrf.mxu3 }
0x20e8   : > { %3705 = vst.msk [vmem:[%s321_s18] sm:$0xff] %vm3026_vm9, %v3398_v28  ;;  %v3404_v18 = vsel %vm3026_vm9, %v3398_v28, -inf }
0x20e9   : > { %3405 = vmax.xlane.f32.xlu0 %v3404_v18 }
0x20ef   : > { %v3401_v12 = vpop.f32.mrf.mxu3 }
0x20f0   : > { %3706 = vst.msk [vmem:[%s321_s18 + $0x8] sm:$0xff] %vm3026_vm9, %v3401_v12  ;;  %v3407_v32 = vsel %vm3026_vm9, %v3401_v12, -inf  ;;  %s4660_s18 = sshll.u32 %s5196_s28, 2 }
0x20f1   : > { %3408 = vmax.xlane.f32.xlu2 %v3407_v32  ;;  %s4255_s13 = scalar_lea.hbm %s6875_s2, %s4660_s18  ;;  %s5049_s18 = scalar_lea.hbm %s6875_s2, 8 }
0x215c   : > { %v3406_v21 = vpop.xlane.xlu0 %3405 }
0x215d   : > { %v3410_v30 = vsub.f32 %v3398_v28, %v3406_v21 }
0x215f   : > { %v3412_v51 = vmul.f32 1.442695, %v3410_v30 }
0x2161   : > { %4989 = vpow2.f32 %v3412_v51 }
0x2164   : > { %v3409_v34 = vpop.xlane.xlu2 %3408 }
0x2165   : > { %v3411_v15 = vsub.f32 %v3401_v12, %v3409_v34 }
0x2167   : > { %v4990_v14 = vpop.eup %4989  ;;  %v3414_v26 = vmul.f32 1.442695, %v3411_v15 }
0x2168   : > { %v3416_v19 = vsel %vm3026_vm9, %v4990_v14, 0.0 }
0x2169   : > { %4991 = vpow2.f32 %v3414_v26  ;;  %3417 = vadd.xlane.f32.xlu2 %v3416_v19 }
0x216f   : > { %v4992_v38 = vpop.eup %4991 }
0x2170   : > { %v3419_v39 = vsel %vm3026_vm9, %v4992_v38, 0.0 }
0x2171   : > { %3420 = vadd.xlane.f32.xlu2 %v3419_v39 }
0x2189   : > { %3561 = vrot.lane.b32.xlu2 %v3538_v40, %s5130_s21 }
0x21dc   : > { %v3418_v0 = vpop.xlane.xlu2 %3417 }
0x21dd   : > { %4993 = vrcp.f32 %v3418_v0 }
0x21e3   : > { %v4994_v46 = vpop.eup %4993 }
0x21e4   : > { %v3421_v44 = vpop.xlane.xlu2 %3420  ;;  %v6537_v50 = vmul.f32 %v4994_v46, %v4990_v14 }
0x21e5   : > { %4995 = vrcp.f32 %v3421_v44 }
0x21e6   : > { %v3426_v45 = vadd.f32 1e-08, %v6537_v50 }
0x21e8   : > { %v3428_v7 = vsel %vm3026_vm9, %v3426_v45, 0.0 }
0x21eb   : > { %v4996_v31 = vpop.eup %4995 }
0x21ec   : > { %v6539_v16 = vmul.f32 %v4996_v31, %v4992_v38 }
0x21ee   : > { %v3427_v20 = vadd.f32 1e-08, %v6539_v16 }
0x21f0   : > { %v3429_v27 = vsel %vm3026_vm9, %v3427_v20, 0.0 }
0x21f1   : > { %v3430_v47 = vadd.f32 %v3429_v27, %v3428_v7 }
0x21f3   : > { %v3431_v11 = vrot.slane %v3430_v47, 4 }
0x21f5   : > { %v3432_v52 = vadd.f32 %v3431_v11, %v3430_v47 }
0x21f7   : > { %v3433_v58 = vrot.slane %v3432_v52, 2 }
0x21f9   : > { %v3434_v41 = vadd.f32 %v3433_v58, %v3432_v52 }
0x21fb   : > { %v3435_v56 = vrot.slane %v3434_v41, 1 }
0x21fd   : > { %v3436_v5 = vadd.f32 %v3435_v56, %v3434_v41 }
0x21ff   : > { %4997 = vrcp.f32 %v3436_v5 }
0x2205   : > { %v4998_v59 = vpop.eup %4997 }
0x2206   : > { %v3438_v54 = vmul.f32 %v4998_v59, %v3426_v45  ;;  %v3439_v60 = vmul.f32 %v4998_v59, %v3427_v20 }
0x2208   : > { %3440 = vxpose.xlu1.b32.start [1/2] (short) (narrow) %v3438_v54, 8 }
0x2210   : > { %3441 = vxpose.xlu1.b32.end [2/2] (short) (narrow) %v3439_v60, 8 }
0x22ac   : > { %v3456_v61 = vpop.trf.xlu1 }
0x22ad   : > { %4627 = vmatmul.msk.f32.vlgmr.msra.gmra.mxu1 %vm3095_vm11, %v3456_v61  ;;  %v3707_v61 = vld [vmem:[%s6889_s1 + $0x460] sm:$0xff] }
0x232a   : > { %v3492_v23 = vpop.f32.mrf.mxu1 }
0x232b   : > { %4628 = vmatmul.msk.f32.vlgmr.msrb.gmra.mxu0 %vm389_vm2, %v3492_v23 }
0x23a8   : > { %v3515_v43 = vpop.f32.mrf.mxu0 }
0x23a9   : > { %v3516_v62 = vadd.f32 %v6391_v8, %v3515_v43  ;;  %v3562_v8 = vpop.permute.xlu2 %3561 }
0x23ab   : > { %v3540_v25 = vadd.f32 %v3538_v40, %v3516_v62 }
0x23ad   : > { %v4630_v57 = vmul.f32 -1.442695, %v3540_v25 }
0x23af   : > { %4999 = vpow2.f32 %v4630_v57 }
0x23b5   : > { %v5000_v24 = vpop.eup %4999 }
0x23b6   : > { %v3544_v37 = vadd.f32 1.0, %v5000_v24 }
0x23b8   : > { %5001 = vrcp.f32 %v3544_v37  ;;  %v3556_v63 = vand.u32 2147483648, %v3544_v37  ;;  %v3554_v13 = vand.u32 2147483647, %v3544_v37  ;;  %vm3550_vm11 = vweird.f32 %v3544_v37 }
0x23ba   : > { %v3557_v6 = vor.u32 1.1754944e-38, %v3556_v63  ;;  %vm3555_vm6 = vcmp.eq.f32.partialorder %v3554_v13, 8.507059e+37  ;;  %v3786_v63 = vld [vmem:[%s6889_s1 + $0x4b8] sm:$0xff]  ;;  %v3784_v13 = vld [vmem:[%s6889_s1 + $0x4a8] sm:$0xff] }
0x23bb   : > { %3825 = vmatpush.msrb.mxu2 %v3786_v63  ;;  %v3950_v63 = vld [vmem:[%s6889_s1 + $0x538] sm:$0xff] }
0x23be   : > { %v5002_v49 = vpop.eup %5001 }
0x23bf   : > { %v3546_v48 = vmul.f32 %v5002_v49, %v3544_v37  ;;  %vm3551_vm9 = vweird.f32 %v5002_v49 }
0x23c0   : > { %vm3552_vm5 = vmor %vm3550_vm11, %vm3551_vm9  ;;  %vm4020_vm9 = vcmask 269568  }
0x23c1   : > { %v3547_v29 = vsub.f32 1.0, %v3546_v48 }
0x23c3   : > { %v3548_v2 = vmul.f32 %v5002_v49, %v3547_v29 }
0x23c5   : > { %v3549_v3 = vadd.f32 %v5002_v49, %v3548_v2  ;;  %v3785_v2 = vld [vmem:[%s6889_s1 + $0x4b0] sm:$0xff] }
0x23c6   : > { %3826 = vmatpush.msrb.mxu2 %v3785_v2 }
0x23c7   : > { %v3553_v1 = vsel %vm3552_vm5, %v5002_v49, %v3549_v3  ;;  %v3783_v3 = vld [vmem:[%s6889_s1 + $0x4a0] sm:$0xff] }
0x23c8   : > { %v3558_v9 = vsel %vm3555_vm6, %v3557_v6, %v3553_v1  ;;  %3827 = vmatpush.msrb.mxu2 %v3784_v13 }
0x23c9   : > { %v3564_v28 = vmul.f32 %v3562_v8, %v3558_v9  ;;  %v3571_v21 = vsub.f32 1.0, %v3558_v9  ;;  %v3577_v51 = vmul.f32 %v3558_v9, %v6494_v53 }
0x23ca   : > { %3828 = vmatpush.msrb.mxu2 %v3783_v3  ;;  %v3949_v3 = vld [vmem:[%s6889_s1 + $0x530] sm:$0xff] }
0x23cb   : > { %3566 = vrot.lane.b32.xlu0 %v3564_v28, %s5130_s21  ;;  %s4668_s21 = sshll.u32 %s5196_s28, 4 }
0x243d   : > { %v3567_v18 = vpop.permute.xlu0 %3566 }
0x243e   : > { %v3569_v12 = vadd.f32 %v3567_v18, %v3516_v62 }
0x2440   : > { %5003 = vtanh.f32 %v3569_v12 }
0x2446   : > { %v5004_v32 = vpop.eup %5003 }
0x2447   : > { %3573 = vrot.lane.b32.xlu2 %v5004_v32, %s5129_s20 }
0x24a1   : > { %v3574_v30 = vpop.permute.xlu2 %3573 }
0x24a2   : > { %v3576_v34 = vmul.f32 %v3574_v30, %v3571_v21  ;;  %v4800_v30 = vld [vmem:[%s6889_s1 + $0x480] ss:$0 sm:$0xff] }
0x24a4   : > { %v3578_v15 = vadd.f32 %v3577_v51, %v3576_v34 }
0x24a6   : > { %3580 = vrot.lane.b32.xlu2 %v3578_v15, %s5129_s20 }
0x2500   : > { %v3581_v14 = vpop.permute.xlu2 %3580 }
0x2501   : > { %v3583_v26 = vsel %vm2944_vm10, %v3581_v14, 0.0 }
0x2502   : > { %3584 = vadd.xlane.f32.xlu0 %v3583_v26  ;;  %v3761_v26 = vld [vmem:[%s6889_s1 + $0x490] sm:$0xff] }
0x2575   : > { %v3585_v19 = vpop.xlane.xlu0 %3584 }
0x2576   : > { %v3586_v38 = vmul.f32 %v3585_v19, %v5280_v33 }
0x2578   : > { %v3587_v39 = vsub.f32 %v3578_v15, %v3586_v38 }
0x257a   : > { %v3588_v4 = vmul.f32 %v3587_v39, %v3587_v39 }
0x257c   : > { %3590 = vrot.lane.b32.xlu2 %v3588_v4, %s5129_s20 }
0x25d6   : > { %v3591_v40 = vpop.permute.xlu2 %3590 }
0x25d7   : > { %v3593_v0 = vsel %vm2944_vm10, %v3591_v40, 0.0 }
0x25d8   : > { %3594 = vadd.xlane.f32.xlu2 %v3593_v0 }
0x264b   : > { %v3595_v53 = vpop.xlane.xlu2 %3594 }
0x264c   : > { %v3596_v44 = vmul.f32 %v3595_v53, %v5280_v33 }
0x264e   : > { %v3597_v46 = vadd.f32 1e-05, %v3596_v44 }
0x2650   : > { %5005 = vrsqrt.f32 %v3597_v46  ;;  %vm3604_vm7 = vweird.f32 %v3597_v46 }
0x2656   : > { %v5006_v31 = vpop.eup %5005 }
0x2657   : > { %v3599_v45 = vmul.f32 %v5006_v31, %v3597_v46  ;;  %vm3605_vm14 = vweird.f32 %v5006_v31 }
0x2658   : > { %vm3606_vm12 = vmor %vm3604_vm7, %vm3605_vm14 }
0x2659   : > { %v3600_v20 = vmul.f32 %v5006_v31, %v3599_v45  ;;  %v3868_v45 = vld [vmem:[%s6889_s1 + $0x4f8] sm:$0xff] }
0x265b   : > { %v3601_v7 = vmul.f32 0.5, %v3600_v20 }
0x265d   : > { %v3602_v27 = vsub.f32 1.5, %v3601_v7  ;;  %v3867_v7 = vld [vmem:[%s6889_s1 + $0x4f0] sm:$0xff] }
0x265f   : > { %v3603_v47 = vmul.f32 %v5006_v31, %v3602_v27  ;;  %v3866_v27 = vld [vmem:[%s6889_s1 + $0x4e8] sm:$0xff] }
0x2661   : > { %v3607_v11 = vsel %vm3606_vm12, %v5006_v31, %v3603_v47  ;;  %v3869_v31 = vld [vmem:[%s6889_s1 + $0x500] sm:$0xff] }
0x2662   : > { %v3608_v52 = vmul.f32 %v3607_v11, %v3587_v39  ;;  %v3762_v39 = vld [vmem:[%s6889_s1 + $0x498] sm:$0xff]  ;;  %3904 = vmatpush.msra.mxu1 %v3869_v31  ;;  %v3865_v11 = vld [vmem:[%s6889_s1 + $0x4e0] sm:$0xff] }
0x2664   : > { %v3609_v58 = vmul.f32 %v3608_v52, %v6414_v22  ;;  %v3710_v22 = vld [vmem:[%s6889_s1 + $0x478] sm:$0xff]  ;;  %3905 = vmatpush.msra.mxu1 %v3868_v45 }
0x2665   : > { %3725 = vmatpush.msra.mxu0 %v3710_v22  ;;  %v4802_v22 = vld [vmem:[%s6889_s1 + $0x4c0] ss:$0 sm:$0xff] }
0x2666   : > { %v3610_v41 = vadd.f32 %v3609_v58, %v6416_v36  ;;  %v3709_v36 = vld [vmem:[%s6889_s1 + $0x470] sm:$0xff]  ;;  %3906 = vmatpush.msra.mxu1 %v3867_v7 }
0x2667   : > { %3726 = vmatpush.msra.mxu0 %v3709_v36 }
0x2668   : > { %3612 = vrot.lane.b32.xlu1 %v3610_v41, %s5129_s20  ;;  %3907 = vmatpush.msra.mxu1 %v3866_v27 }
0x266a   : > { %3908 = vmatpush.msra.mxu1 %v3865_v11 }
0x26da   : > { %v3613_v56 = vpop.permute.xlu1 %3612 }
0x26db   : > { %4631 = vmatmul.msk.f32.vlgmr.msrb.gmra.mxu1 %vm389_vm2, %v3613_v56 }
0x2758   : > { %v3633_v5 = vpop.f32.mrf.mxu1 }
0x2759   : > { %v3634_v59 = vadd.f32 %v6481_v55, %v3633_v5  ;;  %v3708_v55 = vld [vmem:[%s6889_s1 + $0x468] sm:$0xff] }
0x275a   : > { %3727 = vmatpush.msra.mxu0 %v3708_v55 }
0x275b   : > { %v3636_v54 = vmax.f32 %v3634_v59, 0.0  ;;  %v3864_v59 = vld [vmem:[%s6889_s1 + $0x4d8] sm:$0xff] }
0x275c   : > { %3728 = vmatpush.msra.mxu0 %v3707_v61  ;;  %3909 = vmatpush.msra.mxu1 %v3864_v59 }
0x275d   : > { %4632 = vmatmul.msk.f32.vlgmr.msrb.gmra.mxu3 %vm3278_vm8, %v3636_v54  ;;  %v3863_v54 = vld [vmem:[%s6889_s1 + $0x4d0] sm:$0xff] }
0x275e   : > { %3910 = vmatpush.msra.mxu1 %v3863_v54 }
0x27e0   : > { %v3657_v60 = vpop.f32.mrf.mxu3 }
0x27e1   : > { %3661 = vrot.lane.b32.xlu0 %v3657_v60, %s5131_s29  ;;  %s6579_s29 = sand.u32 1, %s5115_s25   ;;  %v3862_v60 = vld [vmem:[%s6889_s1 + $0x4c8] sm:$0xff] }
0x27e2   : > { %s4478_s16 = sshll.u32 %s6579_s29, 2  ;;  %3911 = vmatpush.msra.mxu1 %v3862_v60  ;;  %s4479_s23 = sshll.u32 %s6579_s29, 4 }
0x27e3   : > { %s6582_s17 = scalar_lea.vmem [#allocation2], %s4478_s16  ;;  %s6779_s16 = scalar_lea.vmem [#allocation4], %s4479_s23 }
0x27e4   : > { %s4276_s23 = scalar_lea.hbm %s6878_s5, %s4668_s21  ;;  %s4257_s0 = sshll.u32 %s6582_s17, 4  ;;  %s4258_s0 = int_to_ptr.vmem [resolvable:$true] %s4257_s0 }
0x2853   : > { %v3662_v23 = vpop.permute.xlu0 %3661 }
0x2854   : > { %v3664_v43 = vadd.f32 %v3662_v23, %v3578_v15 }
0x2856   : > { %v3665_v62 = vadd.f32 %v3664_v43, %v6490_v35 }
0x2858   : > { %3667 = vrot.lane.b32.xlu2 %v3665_v62, %s5129_s20 }
0x28b2   : > { %v3668_v25 = vpop.permute.xlu2 %3667 }
0x28b3   : > { %3670 = vst.msk [vmem:[%s6582_s17] sm:$0xf] %vm2944_vm10, %v3668_v25  ;;  %4633 = vmatmul.msk.f32.vlgmr.msra.gmra.mxu0 %vm389_vm2, %v3668_v25 }
0x2930   : > { %v3730_v57 = vpop.f32.mrf.mxu0 }
0x2931   : > { %v3735_v24 = vsel %vm2944_vm10, %v3730_v57, 0.0 }
0x2932   : > { %3736 = vadd.xlane.f32.xlu0 %v3735_v24 }
0x29a5   : > { %v3737_v37 = vpop.xlane.xlu0 %3736 }
0x29a6   : > { %v3738_v35 = vmul.f32 %v3737_v37, %v5280_v33 }
0x29a8   : > { %v3739_v49 = vsub.f32 %v3730_v57, %v3738_v35 }
0x29aa   : > { %v3740_v48 = vmul.f32 %v3739_v49, %v3739_v49 }
0x29ac   : > { %v3741_v29 = vsel %vm2944_vm10, %v3740_v48, 0.0  ;;  %v3952_v48 = vld [vmem:[%s6889_s1 + $0x548] sm:$0xff] }
0x29ad   : > { %3742 = vadd.xlane.f32.xlu2 %v3741_v29  ;;  %v3951_v29 = vld [vmem:[%s6889_s1 + $0x540] sm:$0xff]  ;;  %3987 = vmatpush.msrb.mxu0 %v3952_v48 }
0x29af   : > { %3988 = vmatpush.msrb.mxu0 %v3951_v29 }
0x29b1   : > { %3989 = vmatpush.msrb.mxu0 %v3950_v63 }
0x29b3   : > { %3990 = vmatpush.msrb.mxu0 %v3949_v3 }
0x2a20   : > { %v3743_v6 = vpop.xlane.xlu2 %3742 }
0x2a21   : > { %v3744_v1 = vmul.f32 %v3743_v6, %v5280_v33  ;;  %v4801_v33 = vld [vmem:[%s6889_s1 + $0x488] ss:$0 sm:$0xff] }
0x2a23   : > { %v3745_v8 = vadd.f32 1e-05, %v3744_v1  ;;  %v3948_v1 = vld [vmem:[%s6889_s1 + $0x528] sm:$0xff] }
0x2a24   : > { %3991 = vmatpush.msrb.mxu0 %v3948_v1 }
0x2a25   : > { %5007 = vrsqrt.f32 %v3745_v8  ;;  %vm3752_vm13 = vweird.f32 %v3745_v8 }
0x2a2b   : > { %v5008_v9 = vpop.eup %5007 }
0x2a2c   : > { %v3747_v28 = vmul.f32 %v5008_v9, %v3745_v8  ;;  %vm3753_vm10 = vweird.f32 %v5008_v9 }
0x2a2d   : > { %vm3754_vm4 = vmor %vm3752_vm13, %vm3753_vm10 }
0x2a2e   : > { %v3748_v18 = vmul.f32 %v5008_v9, %v3747_v28 }
0x2a30   : > { %v3749_v12 = vmul.f32 0.5, %v3748_v18 }
0x2a32   : > { %v3750_v32 = vsub.f32 1.5, %v3749_v12 }
0x2a34   : > { %v3751_v21 = vmul.f32 %v5008_v9, %v3750_v32 }
0x2a36   : > { %v3755_v51 = vsel %vm3754_vm4, %v5008_v9, %v3751_v21 }
0x2a37   : > { %v3756_v34 = vmul.f32 %v3755_v51, %v3739_v49 }
0x2a39   : > { %v3758_v15 = vmul.f32 %v4800_v30, %v3756_v34  ;;  %v3946_v34 = vld [vmem:[%s6889_s1 + $0x518] sm:$0xff] }
0x2a3b   : > { %v3760_v14 = vadd.f32 %v4801_v33, %v3758_v15  ;;  %v3947_v33 = vld [vmem:[%s6889_s1 + $0x520] sm:$0xff]  ;;  %v3945_v15 = vld [vmem:[%s6889_s1 + $0x510] sm:$0xff] }
0x2a3c   : > { %3992 = vmatpush.msrb.mxu0 %v3947_v33 }
0x2a3d   : > { %v3767_v19 = vperm.slane %v3760_v14, 0  ;;  %v3764_v40 = vrot.slane %v3760_v14, 1  ;;  %v3765_v46 = vrot.slane %v3760_v14, 2  ;;  %v3766_v58 = vrot.slane %v3760_v14, 3  ;;  %v4803_v14 = vld [vmem:[%s6889_s1 + $0x508] ss:$0 sm:$0xff] }
0x2a3e   : > { %3993 = vmatpush.msrb.mxu0 %v3946_v34 }
0x2a3f   : > { %v3775_v38 = vadd.f32 %v3767_v19, %v3761_v26  ;;  %v3776_v4 = vadd.f32 %v3767_v19, %v3762_v39  ;;  %v3768_v0 = vperm.slane %v3764_v40, 0  ;;  %v3769_v20 = vperm.slane %v3765_v46, 0 }
0x2a40   : > { %v3770_v41 = vperm.slane %v3766_v58, 0  ;;  %3994 = vmatpush.msrb.mxu0 %v3945_v15 }
0x2a41   : > { %4634 = vmatmul.msk.f32.vlgmr.msrb.gmra.mxu2 %vm389_vm2, %v3775_v38  ;;  %v3777_v53 = vadd.f32 %v3768_v0, %v3761_v26  ;;  %v3778_v44 = vadd.f32 %v3768_v0, %v3762_v39  ;;  %v3779_v47 = vadd.f32 %v3769_v20, %v3761_v26  ;;  %v3780_v52 = vadd.f32 %v3769_v20, %v3762_v39 }
0x2a42   : > { %v3781_v56 = vadd.f32 %v3770_v41, %v3761_v26  ;;  %v3782_v5 = vadd.f32 %v3770_v41, %v3762_v39 }
0x2a49   : > { %4635 = vmatmul.msk.f32.gmra.mxu2 %vm389_vm2, %v3776_v4 }
0x2a51   : > { %4636 = vmatmul.msk.f32.gmra.mxu2 %vm389_vm2, %v3777_v53 }
0x2a59   : > { %4637 = vmatmul.msk.f32.gmra.mxu2 %vm389_vm2, %v3778_v44 }
0x2a61   : > { %4638 = vmatmul.msk.f32.gmra.mxu2 %vm389_vm2, %v3779_v47 }
0x2a69   : > { %4639 = vmatmul.msk.f32.gmra.mxu2 %vm389_vm2, %v3780_v52 }
0x2a71   : > { %4640 = vmatmul.msk.f32.gmra.mxu2 %vm389_vm2, %v3781_v56 }
0x2a79   : > { %4641 = vmatmul.msk.f32.gmra.mxu2 %vm389_vm2, %v3782_v5 }
0x2ac4   : > { %v3830_v36 = vpop.f32.mrf.mxu2 }
0x2ac5   : > { %v3831_v55 = vadd.f32 %v4802_v22, %v3830_v36 }
0x2ac7   : > { %v3854_v61 = vmax.f32 %v3831_v55, 0.0 }
0x2ac9   : > { %4642 = vmatmul.msk.f32.vlgmr.msra.gmra.mxu1 %vm3278_vm8, %v3854_v61 }
0x2acc   : > { %v3833_v23 = vpop.f32.mrf.mxu2 }
0x2acd   : > { %v3834_v43 = vadd.f32 %v4802_v22, %v3833_v23 }
0x2acf   : > { %v3855_v62 = vmax.f32 %v3834_v43, 0.0  ;;  %v4804_v43 = vld [vmem:[%s6889_s1 + $0x550] ss:$0 sm:$0xff]  ;;  %s4259_s1 = sshll.u32 %s4255_s13, 4  ;;  %s4260_s1 = int_to_ptr.hbm [resolvable:$true] %s4259_s1 }
0x2ad0   : > { %s5043_s4 = sshra.s32 %s4260_s1, 4  ;;  %s5044_s4 = int_to_ptr.hbm [resolvable:$true] %s5043_s4 }
0x2ad1   : > { %4643 = vmatmul.msk.f32.gmra.mxu1 %vm3278_vm8, %v3855_v62  ;;  %s5045_s6 = scalar_lea.hbm %s5044_s4, 4  ;;  %p5050_p0 = scmp.lt.s32.totalorder %s5044_s4, %s6875_s2 }
0x2ad2   : > { %p5046_p11 = scmp.ne.s32.totalorder %s5044_s4, %s5045_s6  ;;  %p5051_p1 = scmp.lt.s32.totalorder %s5049_s18, %s5045_s6 }
0x2ad4   : > { %v3836_v25 = vpop.f32.mrf.mxu2  ;;  %p5047_p12 = pnand %p5046_p11, %p5213_p5  ;;  %p5052_p2 = por %p5051_p1, %p5050_p0 }
0x2ad5   : > { %v3837_v57 = vadd.f32 %v4802_v22, %v3836_v25 }
0x2ad6   : > { %p5048_p13 = pneg %p5047_p12 }
0x2ad7   : > { %v3856_v24 = vmax.f32 %v3837_v57, 0.0 }
0x2ad8   : > { %p5053_p3 = pnand %p5052_p2, %p5048_p13 }
0x2ad9   : > { %4644 = vmatmul.msk.f32.gmra.mxu1 %vm3278_vm8, %v3856_v24 }
0x2adc   : > { %v3839_v37 = vpop.f32.mrf.mxu2 }
0x2add   : > { %v3840_v35 = vadd.f32 %v4802_v22, %v3839_v37 }
0x2adf   : > { %v3857_v49 = vmax.f32 %v3840_v35, 0.0 }
0x2ae1   : > { %4645 = vmatmul.msk.f32.gmra.mxu1 %vm3278_vm8, %v3857_v49 }
0x2ae4   : > { %v3842_v2 = vpop.f32.mrf.mxu2 }
0x2ae5   : > { %v3843_v13 = vadd.f32 %v4802_v22, %v3842_v2 }
0x2ae7   : > { %v3858_v6 = vmax.f32 %v3843_v13, 0.0  ;;  %v5132_v13 = vmov 32  }
0x2ae8   : > { %4764 = vset.pattern.permute.xlu0 %v5132_v13  ;;  %4765 = vset.pattern.permute.xlu1 %v5132_v13 }
0x2ae9   : > { %4646 = vmatmul.msk.f32.gmra.mxu1 %vm3278_vm8, %v3858_v6  ;;  %4766 = vset.pattern.permute.xlu2 %v5132_v13 }
0x2aec   : > { %v3845_v8 = vpop.f32.mrf.mxu2 }
0x2aed   : > { %v3846_v9 = vadd.f32 %v4802_v22, %v3845_v8 }
0x2aef   : > { %v3859_v28 = vmax.f32 %v3846_v9, 0.0 }
0x2af1   : > { %4647 = vmatmul.msk.f32.gmra.mxu1 %vm3278_vm8, %v3859_v28 }
0x2af4   : > { %v3848_v18 = vpop.f32.mrf.mxu2 }
0x2af5   : > { %v3849_v12 = vadd.f32 %v4802_v22, %v3848_v18 }
0x2af7   : > { %v3860_v32 = vmax.f32 %v3849_v12, 0.0 }
0x2af9   : > { %4648 = vmatmul.msk.f32.gmra.mxu1 %vm3278_vm8, %v3860_v32 }
0x2afc   : > { %v3851_v21 = vpop.f32.mrf.mxu2 }
0x2afd   : > { %v3852_v30 = vadd.f32 %v4802_v22, %v3851_v21 }
0x2aff   : > { %v3861_v51 = vmax.f32 %v3852_v30, 0.0 }
0x2b01   : > { %4649 = vmatmul.msk.f32.gmra.mxu1 %vm3278_vm8, %v3861_v51 }
0x2b46   : > { %v3913_v26 = vpop.f32.mrf.mxu1 }
0x2b47   : > { %v3914_v19 = vadd.f32 %v4803_v14, %v3913_v26 }
0x2b49   : > { %v3937_v38 = vmax.f32 %v3914_v19, 0.0 }
0x2b4b   : > { %4650 = vmatmul.msk.f32.vlgmr.msrb.gmra.mxu0 %vm3278_vm8, %v3937_v38 }
0x2b4e   : > { %v3916_v39 = vpop.f32.mrf.mxu1 }
0x2b4f   : > { %v3917_v4 = vadd.f32 %v4803_v14, %v3916_v39 }
0x2b51   : > { %v3938_v40 = vmax.f32 %v3917_v4, 0.0 }
0x2b53   : > { %4651 = vmatmul.msk.f32.gmra.mxu0 %vm3278_vm8, %v3938_v40 }
0x2b56   : > { %v3919_v0 = vpop.f32.mrf.mxu1 }
0x2b57   : > { %v3920_v53 = vadd.f32 %v4803_v14, %v3919_v0 }
0x2b59   : > { %v3939_v44 = vmax.f32 %v3920_v53, 0.0 }
0x2b5b   : > { %4652 = vmatmul.msk.f32.gmra.mxu0 %vm3278_vm8, %v3939_v44 }
0x2b5e   : > { %v3922_v46 = vpop.f32.mrf.mxu1 }
0x2b5f   : > { %v3923_v31 = vadd.f32 %v4803_v14, %v3922_v46 }
0x2b61   : > { %v3940_v45 = vmax.f32 %v3923_v31, 0.0 }
0x2b63   : > { %4653 = vmatmul.msk.f32.gmra.mxu0 %vm3278_vm8, %v3940_v45 }
0x2b66   : > { %v3925_v20 = vpop.f32.mrf.mxu1 }
0x2b67   : > { %v3926_v7 = vadd.f32 %v4803_v14, %v3925_v20 }
0x2b69   : > { %v3941_v27 = vmax.f32 %v3926_v7, 0.0 }
0x2b6b   : > { %4654 = vmatmul.msk.f32.gmra.mxu0 %vm3278_vm8, %v3941_v27 }
0x2b6e   : > { %v3928_v47 = vpop.f32.mrf.mxu1 }
0x2b6f   : > { %v3929_v11 = vadd.f32 %v4803_v14, %v3928_v47 }
0x2b71   : > { %v3942_v52 = vmax.f32 %v3929_v11, 0.0 }
0x2b73   : > { %4655 = vmatmul.msk.f32.gmra.mxu0 %vm3278_vm8, %v3942_v52 }
0x2b76   : > { %v3931_v58 = vpop.f32.mrf.mxu1 }
0x2b77   : > { %v3932_v41 = vadd.f32 %v4803_v14, %v3931_v58 }
0x2b79   : > { %v3943_v56 = vmax.f32 %v3932_v41, 0.0 }
0x2b7b   : > { %4656 = vmatmul.msk.f32.gmra.mxu0 %vm3278_vm8, %v3943_v56 }
0x2b7e   : > { %v3934_v5 = vpop.f32.mrf.mxu1 }
0x2b7f   : > { %v3935_v59 = vadd.f32 %v4803_v14, %v3934_v5 }
0x2b81   : > { %v3944_v54 = vmax.f32 %v3935_v59, 0.0 }
0x2b83   : > { %4657 = vmatmul.msk.f32.gmra.mxu0 %vm3278_vm8, %v3944_v54  ;;  %vm4171_vm8 = vcmask 7168  }
0x2bc8   : > { %v3996_v60 = vpop.f32.mrf.mxu0 }
0x2bc9   : > { %v6698_v25 = vadd.f32 %v4804_v43, %v3996_v60 }
0x2bcb   : > { %v4021_v49 = vsel %vm4020_vm9, %v6698_v25, -inf }
0x2bd0   : > { %v3999_v22 = vpop.f32.mrf.mxu0 }
0x2bd1   : > { %v6714_v1 = vadd.f32 %v4804_v43, %v3999_v22 }
0x2bd3   : > { %v4028_v15 = vsel %vm4020_vm9, %v6714_v1, -inf }
0x2bd8   : > { %v4002_v36 = vpop.f32.mrf.mxu0 }
0x2bd9   : > { %v6700_v57 = vadd.f32 %v4804_v43, %v4002_v36 }
0x2bdb   : > { %v4022_v48 = vsel %vm4020_vm9, %v6700_v57, -inf }
0x2be0   : > { %v4005_v55 = vpop.f32.mrf.mxu0 }
0x2be1   : > { %v6716_v8 = vadd.f32 %v4804_v43, %v4005_v55 }
0x2be3   : > { %v4029_v14 = vsel %vm4020_vm9, %v6716_v8, -inf }
0x2be8   : > { %v4008_v61 = vpop.f32.mrf.mxu0 }
0x2be9   : > { %v6696_v62 = vadd.f32 %v4804_v43, %v4008_v61 }
0x2beb   : > { %v4023_v37 = vsel %vm4020_vm9, %v6696_v62, -inf }
0x2bec   : > { %v4024_v63 = vmax.f32 %v4021_v49, %v4023_v37 }
0x2bf0   : > { %v4011_v23 = vpop.f32.mrf.mxu0 }
0x2bf1   : > { %v6712_v3 = vadd.f32 %v4804_v43, %v4011_v23 }
0x2bf3   : > { %v4030_v21 = vsel %vm4020_vm9, %v6712_v3, -inf }
0x2bf4   : > { %v4031_v38 = vmax.f32 %v4028_v15, %v4030_v21 }
0x2bf8   : > { %v4014_v24 = vpop.f32.mrf.mxu0 }
0x2bf9   : > { %v6704_v35 = vadd.f32 %v4804_v43, %v4014_v24 }
0x2bfb   : > { %v4025_v29 = vsel %vm4020_vm9, %v6704_v35, -inf }
0x2bfc   : > { %v4026_v2 = vmax.f32 %v4022_v48, %v4025_v29 }
0x2bfe   : > { %v4027_v6 = vmax.f32 %v4024_v63, %v4026_v2 }
0x2c00   : > { %v4035_v9 = vsub.f32 %v6698_v25, %v4027_v6  ;;  %v4037_v28 = vsub.f32 %v6700_v57, %v4027_v6  ;;  %v4039_v18 = vsub.f32 %v6696_v62, %v4027_v6  ;;  %v4041_v12 = vsub.f32 %v6704_v35, %v4027_v6  ;;  %v4017_v32 = vpop.f32.mrf.mxu0 }
0x2c01   : > { %v6724_v30 = vadd.f32 %v4804_v43, %v4017_v32 }
0x2c02   : > { %v4043_v51 = vmul.f32 1.442695, %v4035_v9  ;;  %v4047_v33 = vmul.f32 1.442695, %v4037_v28  ;;  %v4051_v34 = vmul.f32 1.442695, %v4039_v18 }
0x2c03   : > { %v4055_v26 = vmul.f32 1.442695, %v4041_v12  ;;  %v4032_v19 = vsel %vm4020_vm9, %v6724_v30, -inf }
0x2c04   : > { %5009 = vpow2.f32 %v4043_v51  ;;  %v4033_v39 = vmax.f32 %v4029_v14, %v4032_v19 }
0x2c05   : > { %5011 = vpow2.f32 %v4047_v33 }
0x2c06   : > { %5013 = vpow2.f32 %v4051_v34  ;;  %v4034_v4 = vmax.f32 %v4031_v38, %v4033_v39 }
0x2c07   : > { %5015 = vpow2.f32 %v4055_v26 }
0x2c08   : > { %v4036_v40 = vsub.f32 %v6714_v1, %v4034_v4  ;;  %v4038_v0 = vsub.f32 %v6716_v8, %v4034_v4  ;;  %v4040_v53 = vsub.f32 %v6712_v3, %v4034_v4  ;;  %v4042_v44 = vsub.f32 %v6724_v30, %v4034_v4 }
0x2c0a   : > { %v5010_v46 = vpop.eup %5009  ;;  %v4045_v31 = vmul.f32 1.442695, %v4036_v40  ;;  %v4049_v45 = vmul.f32 1.442695, %v4038_v0  ;;  %v4053_v20 = vmul.f32 1.442695, %v4040_v53 }
0x2c0b   : > { %v5012_v7 = vpop.eup %5011  ;;  %v4059_v27 = vsel %vm4020_vm9, %v5010_v46, 0.0  ;;  %v4057_v47 = vmul.f32 1.442695, %v4042_v44 }
0x2c0c   : > { %v5014_v11 = vpop.eup %5013  ;;  %v4060_v52 = vsel %vm4020_vm9, %v5012_v7, 0.0  ;;  %5017 = vpow2.f32 %v4045_v31 }
0x2c0d   : > { %v5016_v58 = vpop.eup %5015  ;;  %v4061_v41 = vadd.f32 %v4060_v52, %v4059_v27  ;;  %5019 = vpow2.f32 %v4049_v45  ;;  %v4062_v56 = vsel %vm4020_vm9, %v5014_v11, 0.0 }
0x2c0e   : > { %5021 = vpow2.f32 %v4053_v20  ;;  %v4064_v59 = vsel %vm4020_vm9, %v5016_v58, 0.0 }
0x2c0f   : > { %v4063_v5 = vadd.f32 %v4062_v56, %v4061_v41  ;;  %5023 = vpow2.f32 %v4057_v47 }
0x2c11   : > { %v4065_v54 = vadd.f32 %v4064_v59, %v4063_v5 }
0x2c12   : > { %v5018_v60 = vpop.eup %5017 }
0x2c13   : > { %v5020_v22 = vpop.eup %5019  ;;  %5025 = vrcp.f32 %v4065_v54  ;;  %v4066_v36 = vsel %vm4020_vm9, %v5018_v60, 0.0 }
0x2c14   : > { %v5022_v55 = vpop.eup %5021  ;;  %v4067_v61 = vsel %vm4020_vm9, %v5020_v22, 0.0 }
0x2c15   : > { %v5024_v23 = vpop.eup %5023  ;;  %v4068_v43 = vadd.f32 %v4067_v61, %v4066_v36  ;;  %v4069_v24 = vsel %vm4020_vm9, %v5022_v55, 0.0 }
0x2c16   : > { %v4071_v49 = vsel %vm4020_vm9, %v5024_v23, 0.0 }
0x2c17   : > { %v4070_v37 = vadd.f32 %v4069_v24, %v4068_v43 }
0x2c19   : > { %v5026_v48 = vpop.eup %5025  ;;  %v4072_v29 = vadd.f32 %v4071_v49, %v4070_v37 }
0x2c1a   : > { %v4077_v63 = vmul.f32 %v5026_v48, %v5012_v7  ;;  %v4075_v2 = vmul.f32 %v5026_v48, %v5010_v46  ;;  %v4079_v9 = vmul.f32 %v5026_v48, %v5014_v11  ;;  %v6747_v18 = vmul.f32 %v5026_v48, %v5016_v58 }
0x2c1b   : > { %5027 = vrcp.f32 %v4072_v29 }
0x2c1c   : > { %4095 = vperm.xlu1 %4765, %v4077_v63   ;;  %4085 = vperm.xlu0 %4764, %v4075_v2  }
0x2c21   : > { %v5028_v13 = vpop.eup %5027 }
0x2c22   : > { %v4078_v6 = vmul.f32 %v5028_v13, %v5020_v22  ;;  %v6745_v28 = vmul.f32 %v5028_v13, %v5024_v23  ;;  %v4076_v12 = vmul.f32 %v5028_v13, %v5018_v60  ;;  %v4080_v32 = vmul.f32 %v5028_v13, %v5022_v55 }
0x2c24   : > { %4100 = vperm.xlu2 %4766, %v4078_v6   ;;  %4105 = vperm.xlu1 %4765, %v4079_v9  }
0x2c25   : > { %4147 = vrot.lane.b32.xlu0 %v4075_v2, %s5129_s20 }
0x2c2c   : > { %4120 = vperm.xlu2 %4766, %v6745_v28   ;;  %4115 = vperm.xlu1 %4765, %v6747_v18  }
0x2c2d   : > { %4155 = vrot.lane.b32.xlu0 %v4079_v9, %s5129_s20 }
0x2c34   : > { %4151 = vrot.lane.b32.xlu2 %v4077_v63, %s5129_s20  ;;  %4090 = vperm.xlu1 %4765, %v4076_v12  }
0x2c35   : > { %4153 = vrot.lane.b32.xlu0 %v4078_v6, %s5129_s20 }
0x2c3c   : > { %4157 = vrot.lane.b32.xlu2 %v4080_v32, %s5129_s20  ;;  %4110 = vperm.xlu1 %4765, %v4080_v32  }
0x2c44   : > { %4149 = vrot.lane.b32.xlu1 %v4076_v12, %s5129_s20 }
0x2c7e   : > { %v4101_v21 = vpop.permute.xlu2 %4100 }
0x2c7f   : > { %v4126_v58 = vmul.f32 %v4101_v21, %v6716_v8 }
0x2c81   : > { %v4139_v5 = vsel %vm389_vm2, %v4126_v58, 0.0 }
0x2c86   : > { %v4121_v51 = vpop.permute.xlu2 %4120 }
0x2c8e   : > { %v4152_v33 = vpop.permute.xlu2 %4151  ;;  %v4096_v34 = vpop.permute.xlu1 %4095 }
0x2c8f   : > { %4174 = vst.msk [vmem:[%s6760_s15 + $0x10] sm:$0xff] %vm4171_vm8, %v4152_v33  ;;  %v4086_v15 = vpop.permute.xlu0 %4085  ;;  %v4125_v19 = vmul.f32 %v4096_v34, %v6700_v57 }
0x2c90   : > { %v4123_v38 = vmul.f32 %v4086_v15, %v6698_v25 }
0x2c91   : > { %v4132_v40 = vsel %vm389_vm2, %v4125_v19, 0.0 }
0x2c92   : > { %v4131_v0 = vsel %vm389_vm2, %v4123_v38, 0.0 }
0x2c93   : > { %v4133_v44 = vadd.f32 %v4132_v40, %v4131_v0 }
0x2c96   : > { %v4158_v14 = vpop.permute.xlu2 %4157  ;;  %v4106_v26 = vpop.permute.xlu1 %4105 }
0x2c97   : > { %4177 = vst.msk [vmem:[%s6760_s15 + $0x28] sm:$0xff] %vm4171_vm8, %v4158_v14  ;;  %v4148_v39 = vpop.permute.xlu0 %4147  ;;  %v4127_v4 = vmul.f32 %v4106_v26, %v6696_v62 }
0x2c98   : > { %4172 = vst.msk [vmem:[%s6760_s15] sm:$0xff] %vm4171_vm8, %v4148_v39 }
0x2c99   : > { %v4134_v53 = vsel %vm389_vm2, %v4127_v4, 0.0 }
0x2c9a   : > { %v4135_v31 = vadd.f32 %v4134_v53, %v4133_v44 }
0x2c9e   : > { %v4116_v46 = vpop.permute.xlu1 %4115 }
0x2c9f   : > { %v4129_v57 = vmul.f32 %v4116_v46, %v6704_v35  ;;  %v4156_v25 = vpop.permute.xlu0 %4155 }
0x2ca0   : > { %4176 = vst.msk [vmem:[%s6760_s15 + $0x20] sm:$0xff] %vm4171_vm8, %v4156_v25 }
0x2ca1   : > { %v4136_v45 = vsel %vm389_vm2, %v4129_v57, 0.0 }
0x2ca2   : > { %v4137_v20 = vadd.f32 %v4136_v45, %v4135_v31 }
0x2ca4   : > { %4145 = vst.msk [vmem:[%s6779_s16] sm:$0xff] %vm389_vm2, %v4137_v20  ;;  %v4182_v62 = vrot.slane %v4137_v20, 7 }
0x2ca6   : > { %v4091_v7 = vpop.permute.xlu1 %4090  ;;  %v4188_v27 = vsub.f32 %v6126_v10, %v4182_v62  ;;  %v4130_v10 = vmul.f32 %v4121_v51, %v6724_v30 }
0x2ca7   : > { %v4154_v47 = vpop.permute.xlu0 %4153  ;;  %v4124_v11 = vmul.f32 %v4091_v7, %v6714_v1 }
0x2ca8   : > { %4175 = vst.msk [vmem:[%s6760_s15 + $0x18] sm:$0xff] %vm4171_vm8, %v4154_v47  ;;  %v4191_v35 = vmul.f32 %v4188_v27, %v4188_v27  ;;  %v4143_v1 = vsel %vm389_vm2, %v4130_v10, 0.0 }
0x2ca9   : > { %v4138_v41 = vsel %vm389_vm2, %v4124_v11, 0.0 }
0x2caa   : > { %v4194_v52 = vsel %vm2643_vm15, %v4191_v35, 0.0  ;;  %v4140_v54 = vadd.f32 %v4139_v5, %v4138_v41 }
0x2cab   : > { %4195 = vadd.xlane.f32.xlu0 %v4194_v52 }
0x2cae   : > { %v4111_v56 = vpop.permute.xlu1 %4110 }
0x2caf   : > { %v4128_v59 = vmul.f32 %v4111_v56, %v6712_v3 }
0x2cb1   : > { %v4141_v60 = vsel %vm389_vm2, %v4128_v59, 0.0 }
0x2cb2   : > { %v4142_v22 = vadd.f32 %v4141_v60, %v4140_v54 }
0x2cb4   : > { %v4144_v36 = vadd.f32 %v4143_v1, %v4142_v22 }
0x2cb6   : > { %4146 = vst.msk [vmem:[%s6779_s16 + $0x8] sm:$0xff] %vm389_vm2, %v4144_v36  ;;  %v4150_v8 = vpop.permute.xlu1 %4149  ;;  %v4183_v55 = vrot.slane %v4144_v36, 7 }
0x2cb7   : > { %4173 = vst.msk [vmem:[%s6760_s15 + $0x8] sm:$0xff] %vm4171_vm8, %v4150_v8 }
0x2cb8   : > { %v4190_v61 = vsub.f32 %v6135_v42, %v4183_v55  ;;  %v4184_v30 = vsel %vm373_vm1, %v4182_v62, %v4183_v55 }
0x2cb9   : > { %v4189_v3 = vsub.f32 %v6130_v17, %v4184_v30 }
0x2cba   : > { %v4193_v23 = vmul.f32 %v4190_v61, %v4190_v61 }
0x2cbb   : > { %v4192_v43 = vmul.f32 %v4189_v3, %v4189_v3 }
0x2cbc   : > { %v4200_v24 = vsel %vm396_vm3, %v4193_v23, 0.0 }
0x2cbd   : > { %4201 = vadd.xlane.f32.xlu2 %v4200_v24  ;;  %v4197_v37 = vsel %vm389_vm2, %v4192_v43, 0.0 }
0x2cbe   : > { %4198 = vadd.xlane.f32.xlu1 %v4197_v37 }
0x2cbf   : > { %4161 = vrot.lane.b32.xlu0 %v6745_v28, %s5129_s20 }
0x2cd7   : > { %4159 = vrot.lane.b32.xlu1 %v6747_v18, %s5129_s20  ;;  %s4223_s20 = scalar_lea.sflag [#allocation3], %s6579_s29 }
0x2ce6   : > { %3671 = vxpose.xlu2.b32.start [1/2] (short) (narrow) %v6537_v50, 8 }
0x2cee   : > { %3672 = vxpose.xlu2.b32.end [2/2] (short) (narrow) %v6539_v16, 8 }
0x2cef   : > { %5056 = shalt.err (!%p5053_p3)
}
0x2cf0   : > { %4669 = dma.vmem_to_hbm [thread:$0]  (%p5213_p5), %s4258_s0, 64, %s4260_s1, %s4223_s20  }
0x2cf1   : > { %s4277_s17 = sshll.u32 %s6779_s16, 4  ;;  %s4279_s21 = sshll.u32 %s4276_s23, 4  ;;  %s4278_s17 = int_to_ptr.vmem [resolvable:$true] %s4277_s17  ;;  %s4280_s21 = int_to_ptr.hbm [resolvable:$true] %s4279_s21 }
0x2cf2   : > { %s4237_s10 = scalar_lea.sflag [#allocation5], %s6579_s29  ;;  %s5071_s13 = sshra.s32 %s4280_s21, 4  ;;  %s5072_s13 = int_to_ptr.hbm [resolvable:$true] %s5071_s13 }
0x2cf3   : > { %s5073_s22 = scalar_lea.hbm %s5072_s13, 16  ;;  %s5077_s14 = scalar_lea.hbm %s6878_s5, 32 }
0x2cf4   : > { %p5074_p4 = scmp.ne.s32.totalorder %s5072_s13, %s5073_s22  ;;  %p5078_p9 = scmp.lt.s32.totalorder %s5072_s13, %s6878_s5 }
0x2cf5   : > { %p5079_p10 = scmp.lt.s32.totalorder %s5077_s14, %s5073_s22 }
0x2cf6   : > { %p5075_p7 = pnand %p5074_p4, %p5213_p5 }
0x2cf7   : > { %p5080_p11 = por %p5079_p10, %p5078_p9 }
0x2cf8   : > { %p5076_p8 = pneg %p5075_p7 }
0x2cfa   : > { %p5081_p12 = pnand %p5080_p11, %p5076_p8 }
0x2cfc   : > { %5084 = shalt.err (!%p5081_p12)
}
0x2cfd   : > { %s5133_s0 = smov 128   ;;  %s5134_s1 = smov 8   ;;  %vm4220_vm1 = vcmask 0   ;;  %vm3703_vm2 = vcmask 125952  }
0x2cfe   : > { %4670 = dma.vmem_to_hbm [thread:$0]  (%p5213_p5), %s4278_s17, 256, %s4280_s21, %s4237_s10, %s5133_s0, %s5133_s0, %s5134_s1  }
0x2cff   : > { %s329_s16 = scalar_lea.vmem %s6880_s7, %s5234_s19  ;;  %s4482_s23 = sshll.u32 %s5234_s19, 2 }
0x2d00   : > { %s316_s9 = scalar_lea.vmem %s6876_s3, %s4482_s23 }
0x2d1e   : > { %v4196_v17 = vpop.xlane.xlu0 %4195 }
0x2d1f   : > { %v4206_v48 = vrot.slane %v4196_v17, 1 }
0x2d30   : > { %v4202_v42 = vpop.xlane.xlu2 %4201 }
0x2d31   : > { %v4209_v50 = vrot.slane %v4202_v42, 1  ;;  %v4199_v16 = vpop.xlane.xlu1 %4198  ;;  %v4162_v49 = vpop.permute.xlu0 %4161 }
0x2d32   : > { %v4207_v29 = vrot.slane %v4199_v16, 1  ;;  %4179 = vst.msk [vmem:[%s6760_s15 + $0x38] sm:$0xff] %vm4171_vm8, %v4162_v49 }
0x2d34   : > { %v4208_v63 = vsel %vm2727_vm0, %v4206_v48, %v4207_v29  ;;  %v4210_v2 = vsel %vm2727_vm0, %v4207_v29, %v4209_v50 }
0x2d35   : > { %v4213_v13 = vadd.f32 %v4210_v2, %v4208_v63 }
0x2d37   : > { %v4214_v6 = vrot.slane %v4213_v13, 4 }
0x2d39   : > { %v4215_v9 = vadd.f32 %v4214_v6, %v4213_v13 }
0x2d3b   : > { %v4216_v28 = vrot.slane %v4215_v9, 2 }
0x2d3d   : > { %v4217_v18 = vadd.f32 %v4216_v28, %v4215_v9 }
0x2d3f   : > { %v4218_v12 = vrot.slane %v4217_v18, 1 }
0x2d41   : > { %v4219_v32 = vadd.f32 %v4218_v12, %v4217_v18 }
0x2d43   : > { %4221 = vst.msk [vmem:[%s329_s16] sm:$0x1] %vm4220_vm1, %v4219_v32 }
0x2d49   : > { %v4160_v21 = vpop.permute.xlu1 %4159 }
0x2d4a   : > { %4178 = vst.msk [vmem:[%s6760_s15 + $0x30] sm:$0xff] %vm4171_vm8, %v4160_v21 }
0x2d7f   : > { %v3687_v51 = vpop.trf.xlu2 }
0x2d80   : > { %3704 = vst.msk [vmem:[%s316_s9] sm:$0xf] %vm3703_vm2, %v3687_v51 }
0x2d81 PF: > { %p4680_p5 = scmp.ge.s32.totalorder %s5123_s27, 2  ;;  %s4300_s17 = sand.u32 1, %s5111_s24  }
0x2d82   : > { %s4301_s21 = scalar_lea.sflag [#allocation3], %s4300_s17 }
0x2d83   : > { %p4674_p13 = pnand %p4680_p5, %p5217_p6 }
0x2d85   : > { %p4675_p0 = pneg %p4674_p13 }
0x2d87   : > { %5102 = dma.done.wait (%p4675_p0), %s4301_s21, 64  }
0x2d88   : > { %5104 = vsyncadd (%p4675_p0), %s4301_s21, 4294967232  ;;  %s4326_s19 = scalar_lea.sflag [#allocation5], %s4300_s17 }
0x2d89   : > { %5106 = dma.done.wait (%p4675_p0), %s4326_s19, 256  }
0x2d8a   : > { %5108 = vsyncadd (%p4675_p0), %s4326_s19, 4294967040  ;;  %s6894_s15 = sld [smem:[#allocation8_spill]]  ;;  %p21_p1 = scmp.ge.s32.totalorder %s5200_s30, 4  }
0x2d8b   : > { %s6895_s24 = smov %s5115_s25  ;;  %s6896_s25 = smov %s5119_s26 }
0x2d8c   : > { %s6898_s27 = smov %s5200_s30  ;;  %23 = sbr.rel (!%p21_p1) target bundleno = 10 (0xa), region = 128 }
0x2d90   : > { %s6897_s26 = smov %s6894_s15 }
0x2d91   :  { %4346 = vsyncpa [#allocation3], 1 }
0x2d92   :  { %4348 = vsyncpa [#allocation3 + $0x1], 1 }
0x2d93   :  { %4349 = vsyncpa [#allocation5], 1 }
0x2d94   :  { %4351 = vsyncpa [#allocation5 + $0x1], 1 }

</bundles_post_ra>
